<compile_context>
chip_gen: v7x
topology: tpu7x:2x2x1
jax: 0.10.0
libtpu: 0.0.40
codegen_flags: <defaults>
</compile_context>

<pallas_src>
from functools import partial

import jax
import jax.numpy as jnp
from jax.experimental import pallas as pl
from jax.experimental.pallas import tpu as pltpu


# --------------------------- Fused QNetwork kernel --------------------------
def qnetwork_kernel(xcol_ref, w1c_ref, w2c_ref, wf1_hbm_ref, wf2_ref, b_ref,
                    out_ref,
                    wf1_vmem, wf1_sem, h1pad_ref, patch2_ref, feat_ref):
    # xcol_ref  : (B*H*W, 9*Cin)    bf16  conv1 im2col operand (wrapper-built)
    # w1c_ref   : (9*Cin, 32)       bf16
    # w2c_ref   : (9*32, 64)        bf16
    # wf1_hbm   : (H*W*64, 128)     bf16  (memory_space=ANY -> manual DMA)
    # wf2_ref   : (128, A_pad)      bf16  (A padded to 128 lanes)
    # b_ref     : (1, 384+A_pad)    f32   [b1@0 | b2@128 | bf1@256 | bf2@384]
    # out_ref   : (B, A_pad)        f32
    # wf1_vmem  : (H*W*64, 128)     bf16  VMEM landing buffer for wf1
    # wf1_sem   : DMA semaphore
    # h1pad_ref : (B, H+2, W+2, 32) f32   zero-padded conv1 activation
    # patch2_ref: (B*H*W, 288)      f32   conv2 im2col scratch
    # feat_ref  : (B, H*W*64)       f32   lane-dense flattened features
    B, Hp, Wp, C1 = h1pad_ref.shape
    H, W = Hp - 2, Wp - 2
    C2 = w2c_ref.shape[-1]
    A_pad = wf2_ref.shape[-1]
    R = B * H * W
    bf16 = jnp.bfloat16

    # Kick off the dominant HBM transfer first; it overlaps all conv work.
    wf1_copy = pltpu.make_async_copy(wf1_hbm_ref, wf1_vmem, wf1_sem)
    wf1_copy.start()

    # Lane-aligned bias slices out of the packed bias row.
    b1 = b_ref[:, 0:C1]                         # (1, 32)
    b2 = b_ref[:, 128:128 + C2]                 # (1, 64)
    bf1 = b_ref[:, 256:384]                     # (1, 128)
    bf2 = b_ref[:, 384:384 + A_pad]             # (1, A_pad)

    # ---- conv1: one K=9*Cin MXU matmul on the wrapper-built im2col ---------
    acc1 = jnp.dot(xcol_ref[...], w1c_ref[...],
                   preferred_element_type=jnp.float32)
    h1 = jnp.maximum(acc1 + b1, 0.0)            # (R, 32) f32

    # ---- re-pad conv1 output: one bulk memset + interior write -------------
    h1pad_ref[...] = jnp.zeros(h1pad_ref.shape, jnp.float32)
    h1pad_ref[:, 1:1 + H, 1:1 + W, :] = h1.reshape(B, H, W, C1)
    h1p = h1pad_ref[...]                        # (B, H+2, W+2, 32) f32

    # ---- conv2: build K=288 im2col patch in VMEM, one MXU matmul -----------
    for kh in range(3):
        for kw in range(3):
            tap = kh * 3 + kw
            patch2_ref[:, tap * C1:(tap + 1) * C1] = (
                h1p[:, kh:kh + H, kw:kw + W, :].reshape(R, C1))
    acc2 = jnp.dot(patch2_ref[...].astype(bf16), w2c_ref[...],
                   preferred_element_type=jnp.float32)
    h2 = jnp.maximum(acc2 + b2, 0.0)            # (R, 64) f32

    # ---- flatten (b,h,w,c)->(b,h*w*c): two positions per store -------------
    # Each store is a full 128-lane, lane-aligned unmasked vst.
    h2_3d = h2.reshape(B, H * W, C2)
    for p in range(0, H * W, 2):
        pair = jnp.concatenate([h2_3d[:, p, :], h2_3d[:, p + 1, :]], axis=-1)
        feat_ref[:, p * C2:(p + 2) * C2] = pair
    feat = feat_ref[...].astype(bf16)           # (B, H*W*64) bf16

    # ---- fc1 -> relu -> fc2 (output padded to full 128-lane width) ---------
    wf1_copy.wait()                             # DMA hidden behind conv work
    hfc = jnp.dot(feat, wf1_vmem[...],
                  preferred_element_type=jnp.float32) + bf1
    hfc = jnp.maximum(hfc, 0.0).astype(bf16)
    out_ref[...] = jnp.dot(hfc, wf2_ref[...],
                           preferred_element_type=jnp.float32) + bf2


# ------------------------------- Wrapper ------------------------------------
@partial(jax.jit, static_argnames=("actions_dim",))
def qnetwork_forward(x, params, actions_dim):
    """x: NHWC observation (B,H,W,C) or single (H,W,C). Returns (B, actions)."""
    if x.ndim == 3:
        x = x[None]                             # torch: x.unsqueeze(0)
    B, H, W, Cin = x.shape
    (w1c, w2c, wf1, wf2, biases) = params
    A_pad = wf2.shape[-1]
    C1 = w1c.shape[-1]
    C2 = w2c.shape[-1]
    R = B * H * W
    assert (H * W) % 2 == 0, "flatten pairing assumes even H*W"

    # conv1 im2col built in the wrapper (input is tiny; XLA fuses these ops).
    x_pad = jnp.pad(x, ((0, 0), (1, 1), (1, 1), (0, 0)))
    taps = [x_pad[:, kh:kh + H, kw:kw + W, :]
            for kh in range(3) for kw in range(3)]
    x_col = (jnp.concatenate(taps, axis=-1)
                .reshape(R, 9 * Cin).astype(jnp.bfloat16))

    vmem = pl.BlockSpec(memory_space=pltpu.MemorySpace.VMEM)
    anyspace = pl.BlockSpec(memory_space=pl.ANY)   # wf1 stays in HBM; kernel DMAs it

    flops = 2 * (R * (9 * Cin) * C1 + R * (9 * C1) * C2
                 + B * (H * W * C2) * 128 + B * 128 * A_pad)
    bytes_accessed = (x_col.size * 2 + w1c.size * 2 + w2c.size * 2
                      + wf1.size * 2 + wf2.size * 2 + biases.size * 4
                      + B * A_pad * 4)

    out_pad = pl.pallas_call(
        qnetwork_kernel,
        out_shape=jax.ShapeDtypeStruct((B, A_pad), jnp.float32),
        in_specs=[vmem, vmem, vmem, anyspace, vmem, vmem],
        out_specs=vmem,
        scratch_shapes=[
            pltpu.VMEM((H * W * C2, 128), jnp.bfloat16),     # wf1 landing buf
            pltpu.SemaphoreType.DMA,                          # its semaphore
            pltpu.VMEM((B, H + 2, W + 2, C1), jnp.float32),   # padded conv1 act
            pltpu.VMEM((R, 9 * C1), jnp.float32),             # conv2 im2col
            pltpu.VMEM((B, H * W * C2), jnp.float32),         # flattened feats
        ],
        cost_estimate=pl.CostEstimate(flops=flops, transcendentals=0,
                                      bytes_accessed=bytes_accessed),
    )(x_col, w1c, w2c, wf1, wf2, biases)

    return out_pad[:, :actions_dim]


# ---------------------- Deterministic synthetic params ----------------------
def make_params(obs_shape, actions_dim, key):
    H, W, Cin = obs_shape
    ks = jax.random.split(key, 8)
    # PyTorch-layout "master" copies (OIHW convs, (out,in) linears), f32.
    w1_oihw = jax.random.normal(ks[0], (32, Cin, 3, 3), jnp.float32) * 0.1
    b1 = jax.random.normal(ks[1], (32,), jnp.float32) * 0.1
    w2_oihw = jax.random.normal(ks[2], (64, 32, 3, 3), jnp.float32) * 0.05
    b2 = jax.random.normal(ks[3], (64,), jnp.float32) * 0.1
    wf1_t = jax.random.normal(ks[4], (128, 64 * H * W), jnp.float32) * 0.02
    bf1 = jax.random.normal(ks[5], (128,), jnp.float32) * 0.1
    wf2_t = jax.random.normal(ks[6], (actions_dim, 128), jnp.float32) * 0.05
    bf2 = jax.random.normal(ks[7], (actions_dim,), jnp.float32) * 0.1
    torch_params = (w1_oihw, b1, w2_oihw, b2, wf1_t, bf1, wf2_t, bf2)

    # Kernel layout (bf16 weights, packed f32 biases):
    # conv weights: OIHW -> HWIO -> (3*3*I, O); row order (kh, kw, ci) matches
    # the im2col column order used in the wrapper / kernel.
    w1c = (jnp.transpose(w1_oihw, (2, 3, 1, 0))
              .reshape(3 * 3 * Cin, 32).astype(jnp.bfloat16))
    w2c = (jnp.transpose(w2_oihw, (2, 3, 1, 0))
              .reshape(3 * 3 * 32, 64).astype(jnp.bfloat16))
    # fc1: torch flattens NCHW -> (c,h,w); our features flatten NHWC -> (h,w,c)
    wf1 = (wf1_t.reshape(128, 64, H, W)
               .transpose(2, 3, 1, 0)                          # (H,W,64,128)
               .reshape(H * W * 64, 128).astype(jnp.bfloat16))
    # fc2: pad output width A up to a full 128-lane multiple with zero columns.
    A_pad = ((actions_dim + 127) // 128) * 128
    wf2 = (jnp.zeros((128, A_pad), jnp.float32)
              .at[:, :actions_dim].set(wf2_t.T)).astype(jnp.bfloat16)
    # Biases packed into one lane-aligned row: [b1@0 | b2@128 | bf1@256 | bf2@384].
    biases = jnp.zeros((1, 384 + A_pad), jnp.float32)
    biases = biases.at[0, 0:32].set(b1)
    biases = biases.at[0, 128:128 + 64].set(b2)
    biases = biases.at[0, 256:256 + 128].set(bf1)
    biases = biases.at[0, 384:384 + actions_dim].set(bf2)

    kernel_params = (w1c, w2c, wf1, wf2, biases)
    return torch_params, kernel_params


# ------------------------- Pure-JAX reference (torch semantics) -------------
def reference_forward(x, torch_params):
    (w1_oihw, b1, w2_oihw, b2, wf1_t, bf1, wf2_t, bf2) = torch_params
    if x.ndim == 3:
        x = x[None]
    xc = jnp.transpose(x, (0, 3, 1, 2))          # NHWC -> NCHW (torch permute)
    dn = ('NCHW', 'OIHW', 'NCHW')
    y = jax.lax.conv_general_dilated(xc, w1_oihw, (1, 1), [(1, 1), (1, 1)],
                                     dimension_numbers=dn)
    y = jnp.maximum(y + b1[None, :, None, None], 0.0)
    y = jax.lax.conv_general_dilated(y, w2_oihw, (1, 1), [(1, 1), (1, 1)],
                                     dimension_numbers=dn)
    y = jnp.maximum(y + b2[None, :, None, None], 0.0)
    y = y.reshape(y.shape[0], -1)                # CHW flatten (torch)
    y = jnp.maximum(y @ wf1_t.T + bf1, 0.0)
    return y @ wf2_t.T + bf2


if __name__ == "__main__":
    B = 2
    obs_shape = (8, 8, 4)       # (H, W, C) as in the torch module's obs_shape
    actions_dim = 6

    key = jax.random.PRNGKey(0)
    kx, kp = jax.random.split(key)
    x = jax.random.normal(kx, (B,) + obs_shape, jnp.float32)

    torch_params, kernel_params = make_params(obs_shape, actions_dim, kp)

    out = qnetwork_forward(x, kernel_params, actions_dim=actions_dim)
    out = jax.block_until_ready(out)

    ref = reference_forward(x, torch_params)
    assert out.shape == (B, actions_dim)
    # tolerance loosened vs. a pure-f32 version because matmul operands are
    # bf16 (weights stored/streamed in bf16); accumulation remains f32.
    assert jnp.allclose(out, ref, rtol=2e-2, atol=2e-2), (
        f"mismatch: max abs err {jnp.max(jnp.abs(out - ref))}")

    print("KERNEL_OK")
</pallas_src>

<mosaic_0001>
module attributes {stable_mosaic.version = 11 : i64} {
  func.func @qnetwork_kernel(%arg0: memref<128x36xbf16, #tpu.memory_space<vmem>>, %arg1: memref<36x32xbf16, #tpu.memory_space<vmem>>, %arg2: memref<288x64xbf16, #tpu.memory_space<vmem>>, %arg3: memref<4096x128xbf16, #tpu.memory_space<any>>, %arg4: memref<128x128xbf16, #tpu.memory_space<vmem>>, %arg5: memref<1x512xf32, #tpu.memory_space<vmem>>, %arg6: memref<2x128xf32, #tpu.memory_space<vmem>>, %arg7: memref<4096x128xbf16, #tpu.memory_space<vmem>>, %arg8: memref<!tpu.dma_semaphore, #tpu.memory_space<semaphore_mem>>, %arg9: memref<2x10x10x32xf32, #tpu.memory_space<vmem>>, %arg10: memref<128x288xf32, #tpu.memory_space<vmem>>, %arg11: memref<2x4096xf32, #tpu.memory_space<vmem>>) attributes {dimension_semantics = [], scalar_prefetch = 0 : i64, scratch_operands = 5 : i64, tpu.core_type = #tpu.core_type<tc>} {
    tpu.enqueue_dma source(%arg3 : memref<4096x128xbf16, #tpu.memory_space<any>>) target(%arg7 : memref<4096x128xbf16, #tpu.memory_space<vmem>>) target_semaphore(%arg8 : memref<!tpu.dma_semaphore, #tpu.memory_space<semaphore_mem>>)
    %c0 = arith.constant 0 : index
    %c0_0 = arith.constant 0 : index
    %0 = vector.load %arg5[%c0, %c0_0] : memref<1x512xf32, #tpu.memory_space<vmem>>, vector<1x32xf32>
    %c0_1 = arith.constant 0 : index
    %c128 = arith.constant 128 : index
    %1 = vector.load %arg5[%c0_1, %c128] : memref<1x512xf32, #tpu.memory_space<vmem>>, vector<1x64xf32>
    %c0_2 = arith.constant 0 : index
    %c256 = arith.constant 256 : index
    %2 = vector.load %arg5[%c0_2, %c256] : memref<1x512xf32, #tpu.memory_space<vmem>>, vector<1x128xf32>
    %c0_3 = arith.constant 0 : index
    %c384 = arith.constant 384 : index
    %3 = vector.load %arg5[%c0_3, %c384] : memref<1x512xf32, #tpu.memory_space<vmem>>, vector<1x128xf32>
    %c0_4 = arith.constant 0 : index
    %c0_5 = arith.constant 0 : index
    %4 = vector.load %arg0[%c0_4, %c0_5] : memref<128x36xbf16, #tpu.memory_space<vmem>>, vector<128x36xbf16>
    %c0_6 = arith.constant 0 : index
    %c0_7 = arith.constant 0 : index
    %5 = vector.load %arg1[%c0_6, %c0_7] : memref<36x32xbf16, #tpu.memory_space<vmem>>, vector<36x32xbf16>
    %cst = arith.constant dense<0.000000e+00> : vector<128x32xf32>
    %6 = tpu.matmul %4, %5, %cst {dimension_numbers = #tpu.dot_dimension_numbers<[1], [0], [0], [1], [0, 0, 1, 1], [], []>} : vector<128x36xbf16>, vector<36x32xbf16>, vector<128x32xf32> -> vector<128x32xf32>
    %7 = vector.broadcast %0 : vector<1x32xf32> to vector<128x32xf32>
    %8 = arith.addf %6, %7 : vector<128x32xf32>
    %cst_8 = arith.constant 0.000000e+00 : f32
    %9 = vector.broadcast %cst_8 : f32 to vector<128x32xf32>
    %10 = arith.maximumf %8, %9 : vector<128x32xf32>
    %cst_9 = arith.constant 0.000000e+00 : f32
    %11 = vector.broadcast %cst_9 : f32 to vector<2x10x10x32xf32>
    %c0_10 = arith.constant 0 : index
    %c0_11 = arith.constant 0 : index
    %c0_12 = arith.constant 0 : index
    %c0_13 = arith.constant 0 : index
    %12 = vector.load %arg9[%c0_10, %c0_11, %c0_12, %c0_13] : memref<2x10x10x32xf32, #tpu.memory_space<vmem>>, vector<2x10x10x32xf32>
    tpu.vector_store %arg9[%c0_10, %c0_11, %c0_12, %c0_13], %11 {strides = array<i32>} : memref<2x10x10x32xf32, #tpu.memory_space<vmem>>, vector<2x10x10x32xf32>,
    %13 = vector.shape_cast %10 : vector<128x32xf32> to vector<2x8x8x32xf32>
    %c0_14 = arith.constant 0 : index
    %c1 = arith.constant 1 : index
    %c1_15 = arith.constant 1 : index
    %c0_16 = arith.constant 0 : index
    %14 = vector.load %arg9[%c0_14, %c1, %c1_15, %c0_16] : memref<2x10x10x32xf32, #tpu.memory_space<vmem>>, vector<2x8x8x32xf32>
    tpu.vector_store %arg9[%c0_14, %c1, %c1_15, %c0_16], %13 {strides = array<i32>} : memref<2x10x10x32xf32, #tpu.memory_space<vmem>>, vector<2x8x8x32xf32>,
    %c0_17 = arith.constant 0 : index
    %c0_18 = arith.constant 0 : index
    %c0_19 = arith.constant 0 : index
    %c0_20 = arith.constant 0 : index
    %15 = vector.load %arg9[%c0_17, %c0_18, %c0_19, %c0_20] : memref<2x10x10x32xf32, #tpu.memory_space<vmem>>, vector<2x10x10x32xf32>
    %16 = vector.extract_strided_slice %15 {offsets = [0, 0, 0, 0], sizes = [2, 8, 8, 32], strides = [1, 1, 1, 1]} : vector<2x10x10x32xf32> to vector<2x8x8x32xf32>
    %17 = vector.shape_cast %16 : vector<2x8x8x32xf32> to vector<128x32xf32>
    %c0_21 = arith.constant 0 : index
    %c0_22 = arith.constant 0 : index
    %18 = vector.load %arg10[%c0_21, %c0_22] : memref<128x288xf32, #tpu.memory_space<vmem>>, vector<128x32xf32>
    tpu.vector_store %arg10[%c0_21, %c0_22], %17 {strides = array<i32>} : memref<128x288xf32, #tpu.memory_space<vmem>>, vector<128x32xf32>,
    %19 = vector.extract_strided_slice %15 {offsets = [0, 0, 1, 0], sizes = [2, 8, 8, 32], strides = [1, 1, 1, 1]} : vector<2x10x10x32xf32> to vector<2x8x8x32xf32>
    %20 = vector.shape_cast %19 : vector<2x8x8x32xf32> to vector<128x32xf32>
    %c0_23 = arith.constant 0 : index
    %c32 = arith.constant 32 : index
    %21 = vector.load %arg10[%c0_23, %c32] : memref<128x288xf32, #tpu.memory_space<vmem>>, vector<128x32xf32>
    tpu.vector_store %arg10[%c0_23, %c32], %20 {strides = array<i32>} : memref<128x288xf32, #tpu.memory_space<vmem>>, vector<128x32xf32>,
    %22 = vector.extract_strided_slice %15 {offsets = [0, 0, 2, 0], sizes = [2, 8, 8, 32], strides = [1, 1, 1, 1]} : vector<2x10x10x32xf32> to vector<2x8x8x32xf32>
    %23 = vector.shape_cast %22 : vector<2x8x8x32xf32> to vector<128x32xf32>
    %c0_24 = arith.constant 0 : index
    %c64 = arith.constant 64 : index
    %24 = vector.load %arg10[%c0_24, %c64] : memref<128x288xf32, #tpu.memory_space<vmem>>, vector<128x32xf32>
    tpu.vector_store %arg10[%c0_24, %c64], %23 {strides = array<i32>} : memref<128x288xf32, #tpu.memory_space<vmem>>, vector<128x32xf32>,
    %25 = vector.extract_strided_slice %15 {offsets = [0, 1, 0, 0], sizes = [2, 8, 8, 32], strides = [1, 1, 1, 1]} : vector<2x10x10x32xf32> to vector<2x8x8x32xf32>
    %26 = vector.shape_cast %25 : vector<2x8x8x32xf32> to vector<128x32xf32>
    %c0_25 = arith.constant 0 : index
    %c96 = arith.constant 96 : index
    %27 = vector.load %arg10[%c0_25, %c96] : memref<128x288xf32, #tpu.memory_space<vmem>>, vector<128x32xf32>
    tpu.vector_store %arg10[%c0_25, %c96], %26 {strides = array<i32>} : memref<128x288xf32, #tpu.memory_space<vmem>>, vector<128x32xf32>,
    %28 = vector.extract_strided_slice %15 {offsets = [0, 1, 1, 0], sizes = [2, 8, 8, 32], strides = [1, 1, 1, 1]} : vector<2x10x10x32xf32> to vector<2x8x8x32xf32>
    %29 = vector.shape_cast %28 : vector<2x8x8x32xf32> to vector<128x32xf32>
    %c0_26 = arith.constant 0 : index
    %c128_27 = arith.constant 128 : index
    %30 = vector.load %arg10[%c0_26, %c128_27] : memref<128x288xf32, #tpu.memory_space<vmem>>, vector<128x32xf32>
    tpu.vector_store %arg10[%c0_26, %c128_27], %29 {strides = array<i32>} : memref<128x288xf32, #tpu.memory_space<vmem>>, vector<128x32xf32>,
    %31 = vector.extract_strided_slice %15 {offsets = [0, 1, 2, 0], sizes = [2, 8, 8, 32], strides = [1, 1, 1, 1]} : vector<2x10x10x32xf32> to vector<2x8x8x32xf32>
    %32 = vector.shape_cast %31 : vector<2x8x8x32xf32> to vector<128x32xf32>
    %c0_28 = arith.constant 0 : index
    %c160 = arith.constant 160 : index
    %33 = vector.load %arg10[%c0_28, %c160] : memref<128x288xf32, #tpu.memory_space<vmem>>, vector<128x32xf32>
    tpu.vector_store %arg10[%c0_28, %c160], %32 {strides = array<i32>} : memref<128x288xf32, #tpu.memory_space<vmem>>, vector<128x32xf32>,
    %34 = vector.extract_strided_slice %15 {offsets = [0, 2, 0, 0], sizes = [2, 8, 8, 32], strides = [1, 1, 1, 1]} : vector<2x10x10x32xf32> to vector<2x8x8x32xf32>
    %35 = vector.shape_cast %34 : vector<2x8x8x32xf32> to vector<128x32xf32>
    %c0_29 = arith.constant 0 : index
    %c192 = arith.constant 192 : index
    %36 = vector.load %arg10[%c0_29, %c192] : memref<128x288xf32, #tpu.memory_space<vmem>>, vector<128x32xf32>
    tpu.vector_store %arg10[%c0_29, %c192], %35 {strides = array<i32>} : memref<128x288xf32, #tpu.memory_space<vmem>>, vector<128x32xf32>,
    %37 = vector.extract_strided_slice %15 {offsets = [0, 2, 1, 0], sizes = [2, 8, 8, 32], strides = [1, 1, 1, 1]} : vector<2x10x10x32xf32> to vector<2x8x8x32xf32>
    %38 = vector.shape_cast %37 : vector<2x8x8x32xf32> to vector<128x32xf32>
    %c0_30 = arith.constant 0 : index
    %c224 = arith.constant 224 : index
    %39 = vector.load %arg10[%c0_30, %c224] : memref<128x288xf32, #tpu.memory_space<vmem>>, vector<128x32xf32>
    tpu.vector_store %arg10[%c0_30, %c224], %38 {strides = array<i32>} : memref<128x288xf32, #tpu.memory_space<vmem>>, vector<128x32xf32>,
    %40 = vector.extract_strided_slice %15 {offsets = [0, 2, 2, 0], sizes = [2, 8, 8, 32], strides = [1, 1, 1, 1]} : vector<2x10x10x32xf32> to vector<2x8x8x32xf32>
    %41 = vector.shape_cast %40 : vector<2x8x8x32xf32> to vector<128x32xf32>
    %c0_31 = arith.constant 0 : index
    %c256_32 = arith.constant 256 : index
    %42 = vector.load %arg10[%c0_31, %c256_32] : memref<128x288xf32, #tpu.memory_space<vmem>>, vector<128x32xf32>
    tpu.vector_store %arg10[%c0_31, %c256_32], %41 {strides = array<i32>} : memref<128x288xf32, #tpu.memory_space<vmem>>, vector<128x32xf32>,
    %c0_33 = arith.constant 0 : index
    %c0_34 = arith.constant 0 : index
    %43 = vector.load %arg10[%c0_33, %c0_34] : memref<128x288xf32, #tpu.memory_space<vmem>>, vector<128x288xf32>
    %44 = arith.truncf %43 : vector<128x288xf32> to vector<128x288xbf16>
    %c0_35 = arith.constant 0 : index
    %c0_36 = arith.constant 0 : index
    %45 = vector.load %arg2[%c0_35, %c0_36] : memref<288x64xbf16, #tpu.memory_space<vmem>>, vector<288x64xbf16>
    %cst_37 = arith.constant dense<0.000000e+00> : vector<128x64xf32>
    %46 = tpu.matmul %44, %45, %cst_37 {dimension_numbers = #tpu.dot_dimension_numbers<[1], [0], [0], [1], [0, 0, 1, 1], [], []>} : vector<128x288xbf16>, vector<288x64xbf16>, vector<128x64xf32> -> vector<128x64xf32>
    %47 = vector.broadcast %1 : vector<1x64xf32> to vector<128x64xf32>
    %48 = arith.addf %46, %47 : vector<128x64xf32>
    %cst_38 = arith.constant 0.000000e+00 : f32
    %49 = vector.broadcast %cst_38 : f32 to vector<128x64xf32>
    %50 = arith.maximumf %48, %49 : vector<128x64xf32>
    %51 = vector.shape_cast %50 : vector<128x64xf32> to vector<2x64x64xf32>
    %52 = vector.extract_strided_slice %51 {offsets = [0, 0, 0], sizes = [2, 1, 64], strides = [1, 1, 1]} : vector<2x64x64xf32> to vector<2x1x64xf32>
    %53 = vector.shape_cast %52 : vector<2x1x64xf32> to vector<2x64xf32>
    %54 = vector.extract_strided_slice %51 {offsets = [0, 1, 0], sizes = [2, 1, 64], strides = [1, 1, 1]} : vector<2x64x64xf32> to vector<2x1x64xf32>
    %55 = vector.shape_cast %54 : vector<2x1x64xf32> to vector<2x64xf32>
    %56 = tpu.concatenate %53, %55 in 1 : vector<2x64xf32>, vector<2x64xf32> -> vector<2x128xf32>
    %c0_39 = arith.constant 0 : index
    %c0_40 = arith.constant 0 : index
    %57 = vector.load %arg11[%c0_39, %c0_40] : memref<2x4096xf32, #tpu.memory_space<vmem>>, vector<2x128xf32>
    tpu.vector_store %arg11[%c0_39, %c0_40], %56 {strides = array<i32>} : memref<2x4096xf32, #tpu.memory_space<vmem>>, vector<2x128xf32>,
    %58 = vector.extract_strided_slice %51 {offsets = [0, 2, 0], sizes = [2, 1, 64], strides = [1, 1, 1]} : vector<2x64x64xf32> to vector<2x1x64xf32>
    %59 = vector.shape_cast %58 : vector<2x1x64xf32> to vector<2x64xf32>
    %60 = vector.extract_strided_slice %51 {offsets = [0, 3, 0], sizes = [2, 1, 64], strides = [1, 1, 1]} : vector<2x64x64xf32> to vector<2x1x64xf32>
    %61 = vector.shape_cast %60 : vector<2x1x64xf32> to vector<2x64xf32>
    %62 = tpu.concatenate %59, %61 in 1 : vector<2x64xf32>, vector<2x64xf32> -> vector<2x128xf32>
    %c0_41 = arith.constant 0 : index
    %c128_42 = arith.constant 128 : index
    %63 = vector.load %arg11[%c0_41, %c128_42] : memref<2x4096xf32, #tpu.memory_space<vmem>>, vector<2x128xf32>
    tpu.vector_store %arg11[%c0_41, %c128_42], %62 {strides = array<i32>} : memref<2x4096xf32, #tpu.memory_space<vmem>>, vector<2x128xf32>,
    %64 = vector.extract_strided_slice %51 {offsets = [0, 4, 0], sizes = [2, 1, 64], strides = [1, 1, 1]} : vector<2x64x64xf32> to vector<2x1x64xf32>
    %65 = vector.shape_cast %64 : vector<2x1x64xf32> to vector<2x64xf32>
    %66 = vector.extract_strided_slice %51 {offsets = [0, 5, 0], sizes = [2, 1, 64], strides = [1, 1, 1]} : vector<2x64x64xf32> to vector<2x1x64xf32>
    %67 = vector.shape_cast %66 : vector<2x1x64xf32> to vector<2x64xf32>
    %68 = tpu.concatenate %65, %67 in 1 : vector<2x64xf32>, vector<2x64xf32> -> vector<2x128xf32>
    %c0_43 = arith.constant 0 : index
    %c256_44 = arith.constant 256 : index
    %69 = vector.load %arg11[%c0_43, %c256_44] : memref<2x4096xf32, #tpu.memory_space<vmem>>, vector<2x128xf32>
    tpu.vector_store %arg11[%c0_43, %c256_44], %68 {strides = array<i32>} : memref<2x4096xf32, #tpu.memory_space<vmem>>, vector<2x128xf32>,
    %70 = vector.extract_strided_slice %51 {offsets = [0, 6, 0], sizes = [2, 1, 64], strides = [1, 1, 1]} : vector<2x64x64xf32> to vector<2x1x64xf32>
    %71 = vector.shape_cast %70 : vector<2x1x64xf32> to vector<2x64xf32>
    %72 = vector.extract_strided_slice %51 {offsets = [0, 7, 0], sizes = [2, 1, 64], strides = [1, 1, 1]} : vector<2x64x64xf32> to vector<2x1x64xf32>
    %73 = vector.shape_cast %72 : vector<2x1x64xf32> to vector<2x64xf32>
    %74 = tpu.concatenate %71, %73 in 1 : vector<2x64xf32>, vector<2x64xf32> -> vector<2x128xf32>
    %c0_45 = arith.constant 0 : index
    %c384_46 = arith.constant 384 : index
    %75 = vector.load %arg11[%c0_45, %c384_46] : memref<2x4096xf32, #tpu.memory_space<vmem>>, vector<2x128xf32>
    tpu.vector_store %arg11[%c0_45, %c384_46], %74 {strides = array<i32>} : memref<2x4096xf32, #tpu.memory_space<vmem>>, vector<2x128xf32>,
    %76 = vector.extract_strided_slice %51 {offsets = [0, 8, 0], sizes = [2, 1, 64], strides = [1, 1, 1]} : vector<2x64x64xf32> to vector<2x1x64xf32>
    %77 = vector.shape_cast %76 : vector<2x1x64xf32> to vector<2x64xf32>
    %78 = vector.extract_strided_slice %51 {offsets = [0, 9, 0], sizes = [2, 1, 64], strides = [1, 1, 1]} : vector<2x64x64xf32> to vector<2x1x64xf32>
    %79 = vector.shape_cast %78 : vector<2x1x64xf32> to vector<2x64xf32>
    %80 = tpu.concatenate %77, %79 in 1 : vector<2x64xf32>, vector<2x64xf32> -> vector<2x128xf32>
    %c0_47 = arith.constant 0 : index
    %c512 = arith.constant 512 : index
    %81 = vector.load %arg11[%c0_47, %c512] : memref<2x4096xf32, #tpu.memory_space<vmem>>, vector<2x128xf32>
    tpu.vector_store %arg11[%c0_47, %c512], %80 {strides = array<i32>} : memref<2x4096xf32, #tpu.memory_space<vmem>>, vector<2x128xf32>,
    %82 = vector.extract_strided_slice %51 {offsets = [0, 10, 0], sizes = [2, 1, 64], strides = [1, 1, 1]} : vector<2x64x64xf32> to vector<2x1x64xf32>
    %83 = vector.shape_cast %82 : vector<2x1x64xf32> to vector<2x64xf32>
    %84 = vector.extract_strided_slice %51 {offsets = [0, 11, 0], sizes = [2, 1, 64], strides = [1, 1, 1]} : vector<2x64x64xf32> to vector<2x1x64xf32>
    %85 = vector.shape_cast %84 : vector<2x1x64xf32> to vector<2x64xf32>
    %86 = tpu.concatenate %83, %85 in 1 : vector<2x64xf32>, vector<2x64xf32> -> vector<2x128xf32>
    %c0_48 = arith.constant 0 : index
    %c640 = arith.constant 640 : index
    %87 = vector.load %arg11[%c0_48, %c640] : memref<2x4096xf32, #tpu.memory_space<vmem>>, vector<2x128xf32>
    tpu.vector_store %arg11[%c0_48, %c640], %86 {strides = array<i32>} : memref<2x4096xf32, #tpu.memory_space<vmem>>, vector<2x128xf32>,
    %88 = vector.extract_strided_slice %51 {offsets = [0, 12, 0], sizes = [2, 1, 64], strides = [1, 1, 1]} : vector<2x64x64xf32> to vector<2x1x64xf32>
    %89 = vector.shape_cast %88 : vector<2x1x64xf32> to vector<2x64xf32>
    %90 = vector.extract_strided_slice %51 {offsets = [0, 13, 0], sizes = [2, 1, 64], strides = [1, 1, 1]} : vector<2x64x64xf32> to vector<2x1x64xf32>
    %91 = vector.shape_cast %90 : vector<2x1x64xf32> to vector<2x64xf32>
    %92 = tpu.concatenate %89, %91 in 1 : vector<2x64xf32>, vector<2x64xf32> -> vector<2x128xf32>
    %c0_49 = arith.constant 0 : index
    %c768 = arith.constant 768 : index
    %93 = vector.load %arg11[%c0_49, %c768] : memref<2x4096xf32, #tpu.memory_space<vmem>>, vector<2x128xf32>
    tpu.vector_store %arg11[%c0_49, %c768], %92 {strides = array<i32>} : memref<2x4096xf32, #tpu.memory_space<vmem>>, vector<2x128xf32>,
    %94 = vector.extract_strided_slice %51 {offsets = [0, 14, 0], sizes = [2, 1, 64], strides = [1, 1, 1]} : vector<2x64x64xf32> to vector<2x1x64xf32>
    %95 = vector.shape_cast %94 : vector<2x1x64xf32> to vector<2x64xf32>
    %96 = vector.extract_strided_slice %51 {offsets = [0, 15, 0], sizes = [2, 1, 64], strides = [1, 1, 1]} : vector<2x64x64xf32> to vector<2x1x64xf32>
    %97 = vector.shape_cast %96 : vector<2x1x64xf32> to vector<2x64xf32>
    %98 = tpu.concatenate %95, %97 in 1 : vector<2x64xf32>, vector<2x64xf32> -> vector<2x128xf32>
    %c0_50 = arith.constant 0 : index
    %c896 = arith.constant 896 : index
    %99 = vector.load %arg11[%c0_50, %c896] : memref<2x4096xf32, #tpu.memory_space<vmem>>, vector<2x128xf32>
    tpu.vector_store %arg11[%c0_50, %c896], %98 {strides = array<i32>} : memref<2x4096xf32, #tpu.memory_space<vmem>>, vector<2x128xf32>,
    %100 = vector.extract_strided_slice %51 {offsets = [0, 16, 0], sizes = [2, 1, 64], strides = [1, 1, 1]} : vector<2x64x64xf32> to vector<2x1x64xf32>
    %101 = vector.shape_cast %100 : vector<2x1x64xf32> to vector<2x64xf32>
    %102 = vector.extract_strided_slice %51 {offsets = [0, 17, 0], sizes = [2, 1, 64], strides = [1, 1, 1]} : vector<2x64x64xf32> to vector<2x1x64xf32>
    %103 = vector.shape_cast %102 : vector<2x1x64xf32> to vector<2x64xf32>
    %104 = tpu.concatenate %101, %103 in 1 : vector<2x64xf32>, vector<2x64xf32> -> vector<2x128xf32>
    %c0_51 = arith.constant 0 : index
    %c1024 = arith.constant 1024 : index
    %105 = vector.load %arg11[%c0_51, %c1024] : memref<2x4096xf32, #tpu.memory_space<vmem>>, vector<2x128xf32>
    tpu.vector_store %arg11[%c0_51, %c1024], %104 {strides = array<i32>} : memref<2x4096xf32, #tpu.memory_space<vmem>>, vector<2x128xf32>,
    %106 = vector.extract_strided_slice %51 {offsets = [0, 18, 0], sizes = [2, 1, 64], strides = [1, 1, 1]} : vector<2x64x64xf32> to vector<2x1x64xf32>
    %107 = vector.shape_cast %106 : vector<2x1x64xf32> to vector<2x64xf32>
    %108 = vector.extract_strided_slice %51 {offsets = [0, 19, 0], sizes = [2, 1, 64], strides = [1, 1, 1]} : vector<2x64x64xf32> to vector<2x1x64xf32>
    %109 = vector.shape_cast %108 : vector<2x1x64xf32> to vector<2x64xf32>
    %110 = tpu.concatenate %107, %109 in 1 : vector<2x64xf32>, vector<2x64xf32> -> vector<2x128xf32>
    %c0_52 = arith.constant 0 : index
    %c1152 = arith.constant 1152 : index
    %111 = vector.load %arg11[%c0_52, %c1152] : memref<2x4096xf32, #tpu.memory_space<vmem>>, vector<2x128xf32>
    tpu.vector_store %arg11[%c0_52, %c1152], %110 {strides = array<i32>} : memref<2x4096xf32, #tpu.memory_space<vmem>>, vector<2x128xf32>,
    %112 = vector.extract_strided_slice %51 {offsets = [0, 20, 0], sizes = [2, 1, 64], strides = [1, 1, 1]} : vector<2x64x64xf32> to vector<2x1x64xf32>
    %113 = vector.shape_cast %112 : vector<2x1x64xf32> to vector<2x64xf32>
    %114 = vector.extract_strided_slice %51 {offsets = [0, 21, 0], sizes = [2, 1, 64], strides = [1, 1, 1]} : vector<2x64x64xf32> to vector<2x1x64xf32>
    %115 = vector.shape_cast %114 : vector<2x1x64xf32> to vector<2x64xf32>
    %116 = tpu.concatenate %113, %115 in 1 : vector<2x64xf32>, vector<2x64xf32> -> vector<2x128xf32>
    %c0_53 = arith.constant 0 : index
    %c1280 = arith.constant 1280 : index
    %117 = vector.load %arg11[%c0_53, %c1280] : memref<2x4096xf32, #tpu.memory_space<vmem>>, vector<2x128xf32>
    tpu.vector_store %arg11[%c0_53, %c1280], %116 {strides = array<i32>} : memref<2x4096xf32, #tpu.memory_space<vmem>>, vector<2x128xf32>,
    %118 = vector.extract_strided_slice %51 {offsets = [0, 22, 0], sizes = [2, 1, 64], strides = [1, 1, 1]} : vector<2x64x64xf32> to vector<2x1x64xf32>
    %119 = vector.shape_cast %118 : vector<2x1x64xf32> to vector<2x64xf32>
    %120 = vector.extract_strided_slice %51 {offsets = [0, 23, 0], sizes = [2, 1, 64], strides = [1, 1, 1]} : vector<2x64x64xf32> to vector<2x1x64xf32>
    %121 = vector.shape_cast %120 : vector<2x1x64xf32> to vector<2x64xf32>
    %122 = tpu.concatenate %119, %121 in 1 : vector<2x64xf32>, vector<2x64xf32> -> vector<2x128xf32>
    %c0_54 = arith.constant 0 : index
    %c1408 = arith.constant 1408 : index
    %123 = vector.load %arg11[%c0_54, %c1408] : memref<2x4096xf32, #tpu.memory_space<vmem>>, vector<2x128xf32>
    tpu.vector_store %arg11[%c0_54, %c1408], %122 {strides = array<i32>} : memref<2x4096xf32, #tpu.memory_space<vmem>>, vector<2x128xf32>,
    %124 = vector.extract_strided_slice %51 {offsets = [0, 24, 0], sizes = [2, 1, 64], strides = [1, 1, 1]} : vector<2x64x64xf32> to vector<2x1x64xf32>
    %125 = vector.shape_cast %124 : vector<2x1x64xf32> to vector<2x64xf32>
    %126 = vector.extract_strided_slice %51 {offsets = [0, 25, 0], sizes = [2, 1, 64], strides = [1, 1, 1]} : vector<2x64x64xf32> to vector<2x1x64xf32>
    %127 = vector.shape_cast %126 : vector<2x1x64xf32> to vector<2x64xf32>
    %128 = tpu.concatenate %125, %127 in 1 : vector<2x64xf32>, vector<2x64xf32> -> vector<2x128xf32>
    %c0_55 = arith.constant 0 : index
    %c1536 = arith.constant 1536 : index
    %129 = vector.load %arg11[%c0_55, %c1536] : memref<2x4096xf32, #tpu.memory_space<vmem>>, vector<2x128xf32>
    tpu.vector_store %arg11[%c0_55, %c1536], %128 {strides = array<i32>} : memref<2x4096xf32, #tpu.memory_space<vmem>>, vector<2x128xf32>,
    %130 = vector.extract_strided_slice %51 {offsets = [0, 26, 0], sizes = [2, 1, 64], strides = [1, 1, 1]} : vector<2x64x64xf32> to vector<2x1x64xf32>
    %131 = vector.shape_cast %130 : vector<2x1x64xf32> to vector<2x64xf32>
    %132 = vector.extract_strided_slice %51 {offsets = [0, 27, 0], sizes = [2, 1, 64], strides = [1, 1, 1]} : vector<2x64x64xf32> to vector<2x1x64xf32>
    %133 = vector.shape_cast %132 : vector<2x1x64xf32> to vector<2x64xf32>
    %134 = tpu.concatenate %131, %133 in 1 : vector<2x64xf32>, vector<2x64xf32> -> vector<2x128xf32>
    %c0_56 = arith.constant 0 : index
    %c1664 = arith.constant 1664 : index
    %135 = vector.load %arg11[%c0_56, %c1664] : memref<2x4096xf32, #tpu.memory_space<vmem>>, vector<2x128xf32>
    tpu.vector_store %arg11[%c0_56, %c1664], %134 {strides = array<i32>} : memref<2x4096xf32, #tpu.memory_space<vmem>>, vector<2x128xf32>,
    %136 = vector.extract_strided_slice %51 {offsets = [0, 28, 0], sizes = [2, 1, 64], strides = [1, 1, 1]} : vector<2x64x64xf32> to vector<2x1x64xf32>
    %137 = vector.shape_cast %136 : vector<2x1x64xf32> to vector<2x64xf32>
    %138 = vector.extract_strided_slice %51 {offsets = [0, 29, 0], sizes = [2, 1, 64], strides = [1, 1, 1]} : vector<2x64x64xf32> to vector<2x1x64xf32>
    %139 = vector.shape_cast %138 : vector<2x1x64xf32> to vector<2x64xf32>
    %140 = tpu.concatenate %137, %139 in 1 : vector<2x64xf32>, vector<2x64xf32> -> vector<2x128xf32>
    %c0_57 = arith.constant 0 : index
    %c1792 = arith.constant 1792 : index
    %141 = vector.load %arg11[%c0_57, %c1792] : memref<2x4096xf32, #tpu.memory_space<vmem>>, vector<2x128xf32>
    tpu.vector_store %arg11[%c0_57, %c1792], %140 {strides = array<i32>} : memref<2x4096xf32, #tpu.memory_space<vmem>>, vector<2x128xf32>,
    %142 = vector.extract_strided_slice %51 {offsets = [0, 30, 0], sizes = [2, 1, 64], strides = [1, 1, 1]} : vector<2x64x64xf32> to vector<2x1x64xf32>
    %143 = vector.shape_cast %142 : vector<2x1x64xf32> to vector<2x64xf32>
    %144 = vector.extract_strided_slice %51 {offsets = [0, 31, 0], sizes = [2, 1, 64], strides = [1, 1, 1]} : vector<2x64x64xf32> to vector<2x1x64xf32>
    %145 = vector.shape_cast %144 : vector<2x1x64xf32> to vector<2x64xf32>
    %146 = tpu.concatenate %143, %145 in 1 : vector<2x64xf32>, vector<2x64xf32> -> vector<2x128xf32>
    %c0_58 = arith.constant 0 : index
    %c1920 = arith.constant 1920 : index
    %147 = vector.load %arg11[%c0_58, %c1920] : memref<2x4096xf32, #tpu.memory_space<vmem>>, vector<2x128xf32>
    tpu.vector_store %arg11[%c0_58, %c1920], %146 {strides = array<i32>} : memref<2x4096xf32, #tpu.memory_space<vmem>>, vector<2x128xf32>,
    %148 = vector.extract_strided_slice %51 {offsets = [0, 32, 0], sizes = [2, 1, 64], strides = [1, 1, 1]} : vector<2x64x64xf32> to vector<2x1x64xf32>
    %149 = vector.shape_cast %148 : vector<2x1x64xf32> to vector<2x64xf32>
    %150 = vector.extract_strided_slice %51 {offsets = [0, 33, 0], sizes = [2, 1, 64], strides = [1, 1, 1]} : vector<2x64x64xf32> to vector<2x1x64xf32>
    %151 = vector.shape_cast %150 : vector<2x1x64xf32> to vector<2x64xf32>
    %152 = tpu.concatenate %149, %151 in 1 : vector<2x64xf32>, vector<2x64xf32> -> vector<2x128xf32>
    %c0_59 = arith.constant 0 : index
    %c2048 = arith.constant 2048 : index
    %153 = vector.load %arg11[%c0_59, %c2048] : memref<2x4096xf32, #tpu.memory_space<vmem>>, vector<2x128xf32>
    tpu.vector_store %arg11[%c0_59, %c2048], %152 {strides = array<i32>} : memref<2x4096xf32, #tpu.memory_space<vmem>>, vector<2x128xf32>,
    %154 = vector.extract_strided_slice %51 {offsets = [0, 34, 0], sizes = [2, 1, 64], strides = [1, 1, 1]} : vector<2x64x64xf32> to vector<2x1x64xf32>
    %155 = vector.shape_cast %154 : vector<2x1x64xf32> to vector<2x64xf32>
    %156 = vector.extract_strided_slice %51 {offsets = [0, 35, 0], sizes = [2, 1, 64], strides = [1, 1, 1]} : vector<2x64x64xf32> to vector<2x1x64xf32>
    %157 = vector.shape_cast %156 : vector<2x1x64xf32> to vector<2x64xf32>
    %158 = tpu.concatenate %155, %157 in 1 : vector<2x64xf32>, vector<2x64xf32> -> vector<2x128xf32>
    %c0_60 = arith.constant 0 : index
    %c2176 = arith.constant 2176 : index
    %159 = vector.load %arg11[%c0_60, %c2176] : memref<2x4096xf32, #tpu.memory_space<vmem>>, vector<2x128xf32>
    tpu.vector_store %arg11[%c0_60, %c2176], %158 {strides = array<i32>} : memref<2x4096xf32, #tpu.memory_space<vmem>>, vector<2x128xf32>,
    %160 = vector.extract_strided_slice %51 {offsets = [0, 36, 0], sizes = [2, 1, 64], strides = [1, 1, 1]} : vector<2x64x64xf32> to vector<2x1x64xf32>
    %161 = vector.shape_cast %160 : vector<2x1x64xf32> to vector<2x64xf32>
    %162 = vector.extract_strided_slice %51 {offsets = [0, 37, 0], sizes = [2, 1, 64], strides = [1, 1, 1]} : vector<2x64x64xf32> to vector<2x1x64xf32>
    %163 = vector.shape_cast %162 : vector<2x1x64xf32> to vector<2x64xf32>
    %164 = tpu.concatenate %161, %163 in 1 : vector<2x64xf32>, vector<2x64xf32> -> vector<2x128xf32>
    %c0_61 = arith.constant 0 : index
    %c2304 = arith.constant 2304 : index
    %165 = vector.load %arg11[%c0_61, %c2304] : memref<2x4096xf32, #tpu.memory_space<vmem>>, vector<2x128xf32>
    tpu.vector_store %arg11[%c0_61, %c2304], %164 {strides = array<i32>} : memref<2x4096xf32, #tpu.memory_space<vmem>>, vector<2x128xf32>,
    %166 = vector.extract_strided_slice %51 {offsets = [0, 38, 0], sizes = [2, 1, 64], strides = [1, 1, 1]} : vector<2x64x64xf32> to vector<2x1x64xf32>
    %167 = vector.shape_cast %166 : vector<2x1x64xf32> to vector<2x64xf32>
    %168 = vector.extract_strided_slice %51 {offsets = [0, 39, 0], sizes = [2, 1, 64], strides = [1, 1, 1]} : vector<2x64x64xf32> to vector<2x1x64xf32>
    %169 = vector.shape_cast %168 : vector<2x1x64xf32> to vector<2x64xf32>
    %170 = tpu.concatenate %167, %169 in 1 : vector<2x64xf32>, vector<2x64xf32> -> vector<2x128xf32>
    %c0_62 = arith.constant 0 : index
    %c2432 = arith.constant 2432 : index
    %171 = vector.load %arg11[%c0_62, %c2432] : memref<2x4096xf32, #tpu.memory_space<vmem>>, vector<2x128xf32>
    tpu.vector_store %arg11[%c0_62, %c2432], %170 {strides = array<i32>} : memref<2x4096xf32, #tpu.memory_space<vmem>>, vector<2x128xf32>,
    %172 = vector.extract_strided_slice %51 {offsets = [0, 40, 0], sizes = [2, 1, 64], strides = [1, 1, 1]} : vector<2x64x64xf32> to vector<2x1x64xf32>
    %173 = vector.shape_cast %172 : vector<2x1x64xf32> to vector<2x64xf32>
    %174 = vector.extract_strided_slice %51 {offsets = [0, 41, 0], sizes = [2, 1, 64], strides = [1, 1, 1]} : vector<2x64x64xf32> to vector<2x1x64xf32>
    %175 = vector.shape_cast %174 : vector<2x1x64xf32> to vector<2x64xf32>
    %176 = tpu.concatenate %173, %175 in 1 : vector<2x64xf32>, vector<2x64xf32> -> vector<2x128xf32>
    %c0_63 = arith.constant 0 : index
    %c2560 = arith.constant 2560 : index
    %177 = vector.load %arg11[%c0_63, %c2560] : memref<2x4096xf32, #tpu.memory_space<vmem>>, vector<2x128xf32>
    tpu.vector_store %arg11[%c0_63, %c2560], %176 {strides = array<i32>} : memref<2x4096xf32, #tpu.memory_space<vmem>>, vector<2x128xf32>,
    %178 = vector.extract_strided_slice %51 {offsets = [0, 42, 0], sizes = [2, 1, 64], strides = [1, 1, 1]} : vector<2x64x64xf32> to vector<2x1x64xf32>
    %179 = vector.shape_cast %178 : vector<2x1x64xf32> to vector<2x64xf32>
    %180 = vector.extract_strided_slice %51 {offsets = [0, 43, 0], sizes = [2, 1, 64], strides = [1, 1, 1]} : vector<2x64x64xf32> to vector<2x1x64xf32>
    %181 = vector.shape_cast %180 : vector<2x1x64xf32> to vector<2x64xf32>
    %182 = tpu.concatenate %179, %181 in 1 : vector<2x64xf32>, vector<2x64xf32> -> vector<2x128xf32>
    %c0_64 = arith.constant 0 : index
    %c2688 = arith.constant 2688 : index
    %183 = vector.load %arg11[%c0_64, %c2688] : memref<2x4096xf32, #tpu.memory_space<vmem>>, vector<2x128xf32>
    tpu.vector_store %arg11[%c0_64, %c2688], %182 {strides = array<i32>} : memref<2x4096xf32, #tpu.memory_space<vmem>>, vector<2x128xf32>,
    %184 = vector.extract_strided_slice %51 {offsets = [0, 44, 0], sizes = [2, 1, 64], strides = [1, 1, 1]} : vector<2x64x64xf32> to vector<2x1x64xf32>
    %185 = vector.shape_cast %184 : vector<2x1x64xf32> to vector<2x64xf32>
    %186 = vector.extract_strided_slice %51 {offsets = [0, 45, 0], sizes = [2, 1, 64], strides = [1, 1, 1]} : vector<2x64x64xf32> to vector<2x1x64xf32>
    %187 = vector.shape_cast %186 : vector<2x1x64xf32> to vector<2x64xf32>
    %188 = tpu.concatenate %185, %187 in 1 : vector<2x64xf32>, vector<2x64xf32> -> vector<2x128xf32>
    %c0_65 = arith.constant 0 : index
    %c2816 = arith.constant 2816 : index
    %189 = vector.load %arg11[%c0_65, %c2816] : memref<2x4096xf32, #tpu.memory_space<vmem>>, vector<2x128xf32>
    tpu.vector_store %arg11[%c0_65, %c2816], %188 {strides = array<i32>} : memref<2x4096xf32, #tpu.memory_space<vmem>>, vector<2x128xf32>,
    %190 = vector.extract_strided_slice %51 {offsets = [0, 46, 0], sizes = [2, 1, 64], strides = [1, 1, 1]} : vector<2x64x64xf32> to vector<2x1x64xf32>
    %191 = vector.shape_cast %190 : vector<2x1x64xf32> to vector<2x64xf32>
    %192 = vector.extract_strided_slice %51 {offsets = [0, 47, 0], sizes = [2, 1, 64], strides = [1, 1, 1]} : vector<2x64x64xf32> to vector<2x1x64xf32>
    %193 = vector.shape_cast %192 : vector<2x1x64xf32> to vector<2x64xf32>
    %194 = tpu.concatenate %191, %193 in 1 : vector<2x64xf32>, vector<2x64xf32> -> vector<2x128xf32>
    %c0_66 = arith.constant 0 : index
    %c2944 = arith.constant 2944 : index
    %195 = vector.load %arg11[%c0_66, %c2944] : memref<2x4096xf32, #tpu.memory_space<vmem>>, vector<2x128xf32>
    tpu.vector_store %arg11[%c0_66, %c2944], %194 {strides = array<i32>} : memref<2x4096xf32, #tpu.memory_space<vmem>>, vector<2x128xf32>,
    %196 = vector.extract_strided_slice %51 {offsets = [0, 48, 0], sizes = [2, 1, 64], strides = [1, 1, 1]} : vector<2x64x64xf32> to vector<2x1x64xf32>
    %197 = vector.shape_cast %196 : vector<2x1x64xf32> to vector<2x64xf32>
    %198 = vector.extract_strided_slice %51 {offsets = [0, 49, 0], sizes = [2, 1, 64], strides = [1, 1, 1]} : vector<2x64x64xf32> to vector<2x1x64xf32>
    %199 = vector.shape_cast %198 : vector<2x1x64xf32> to vector<2x64xf32>
    %200 = tpu.concatenate %197, %199 in 1 : vector<2x64xf32>, vector<2x64xf32> -> vector<2x128xf32>
    %c0_67 = arith.constant 0 : index
    %c3072 = arith.constant 3072 : index
    %201 = vector.load %arg11[%c0_67, %c3072] : memref<2x4096xf32, #tpu.memory_space<vmem>>, vector<2x128xf32>
    tpu.vector_store %arg11[%c0_67, %c3072], %200 {strides = array<i32>} : memref<2x4096xf32, #tpu.memory_space<vmem>>, vector<2x128xf32>,
    %202 = vector.extract_strided_slice %51 {offsets = [0, 50, 0], sizes = [2, 1, 64], strides = [1, 1, 1]} : vector<2x64x64xf32> to vector<2x1x64xf32>
    %203 = vector.shape_cast %202 : vector<2x1x64xf32> to vector<2x64xf32>
    %204 = vector.extract_strided_slice %51 {offsets = [0, 51, 0], sizes = [2, 1, 64], strides = [1, 1, 1]} : vector<2x64x64xf32> to vector<2x1x64xf32>
    %205 = vector.shape_cast %204 : vector<2x1x64xf32> to vector<2x64xf32>
    %206 = tpu.concatenate %203, %205 in 1 : vector<2x64xf32>, vector<2x64xf32> -> vector<2x128xf32>
    %c0_68 = arith.constant 0 : index
    %c3200 = arith.constant 3200 : index
    %207 = vector.load %arg11[%c0_68, %c3200] : memref<2x4096xf32, #tpu.memory_space<vmem>>, vector<2x128xf32>
    tpu.vector_store %arg11[%c0_68, %c3200], %206 {strides = array<i32>} : memref<2x4096xf32, #tpu.memory_space<vmem>>, vector<2x128xf32>,
    %208 = vector.extract_strided_slice %51 {offsets = [0, 52, 0], sizes = [2, 1, 64], strides = [1, 1, 1]} : vector<2x64x64xf32> to vector<2x1x64xf32>
    %209 = vector.shape_cast %208 : vector<2x1x64xf32> to vector<2x64xf32>
    %210 = vector.extract_strided_slice %51 {offsets = [0, 53, 0], sizes = [2, 1, 64], strides = [1, 1, 1]} : vector<2x64x64xf32> to vector<2x1x64xf32>
    %211 = vector.shape_cast %210 : vector<2x1x64xf32> to vector<2x64xf32>
    %212 = tpu.concatenate %209, %211 in 1 : vector<2x64xf32>, vector<2x64xf32> -> vector<2x128xf32>
    %c0_69 = arith.constant 0 : index
    %c3328 = arith.constant 3328 : index
    %213 = vector.load %arg11[%c0_69, %c3328] : memref<2x4096xf32, #tpu.memory_space<vmem>>, vector<2x128xf32>
    tpu.vector_store %arg11[%c0_69, %c3328], %212 {strides = array<i32>} : memref<2x4096xf32, #tpu.memory_space<vmem>>, vector<2x128xf32>,
    %214 = vector.extract_strided_slice %51 {offsets = [0, 54, 0], sizes = [2, 1, 64], strides = [1, 1, 1]} : vector<2x64x64xf32> to vector<2x1x64xf32>
    %215 = vector.shape_cast %214 : vector<2x1x64xf32> to vector<2x64xf32>
    %216 = vector.extract_strided_slice %51 {offsets = [0, 55, 0], sizes = [2, 1, 64], strides = [1, 1, 1]} : vector<2x64x64xf32> to vector<2x1x64xf32>
    %217 = vector.shape_cast %216 : vector<2x1x64xf32> to vector<2x64xf32>
    %218 = tpu.concatenate %215, %217 in 1 : vector<2x64xf32>, vector<2x64xf32> -> vector<2x128xf32>
    %c0_70 = arith.constant 0 : index
    %c3456 = arith.constant 3456 : index
    %219 = vector.load %arg11[%c0_70, %c3456] : memref<2x4096xf32, #tpu.memory_space<vmem>>, vector<2x128xf32>
    tpu.vector_store %arg11[%c0_70, %c3456], %218 {strides = array<i32>} : memref<2x4096xf32, #tpu.memory_space<vmem>>, vector<2x128xf32>,
    %220 = vector.extract_strided_slice %51 {offsets = [0, 56, 0], sizes = [2, 1, 64], strides = [1, 1, 1]} : vector<2x64x64xf32> to vector<2x1x64xf32>
    %221 = vector.shape_cast %220 : vector<2x1x64xf32> to vector<2x64xf32>
    %222 = vector.extract_strided_slice %51 {offsets = [0, 57, 0], sizes = [2, 1, 64], strides = [1, 1, 1]} : vector<2x64x64xf32> to vector<2x1x64xf32>
    %223 = vector.shape_cast %222 : vector<2x1x64xf32> to vector<2x64xf32>
    %224 = tpu.concatenate %221, %223 in 1 : vector<2x64xf32>, vector<2x64xf32> -> vector<2x128xf32>
    %c0_71 = arith.constant 0 : index
    %c3584 = arith.constant 3584 : index
    %225 = vector.load %arg11[%c0_71, %c3584] : memref<2x4096xf32, #tpu.memory_space<vmem>>, vector<2x128xf32>
    tpu.vector_store %arg11[%c0_71, %c3584], %224 {strides = array<i32>} : memref<2x4096xf32, #tpu.memory_space<vmem>>, vector<2x128xf32>,
    %226 = vector.extract_strided_slice %51 {offsets = [0, 58, 0], sizes = [2, 1, 64], strides = [1, 1, 1]} : vector<2x64x64xf32> to vector<2x1x64xf32>
    %227 = vector.shape_cast %226 : vector<2x1x64xf32> to vector<2x64xf32>
    %228 = vector.extract_strided_slice %51 {offsets = [0, 59, 0], sizes = [2, 1, 64], strides = [1, 1, 1]} : vector<2x64x64xf32> to vector<2x1x64xf32>
    %229 = vector.shape_cast %228 : vector<2x1x64xf32> to vector<2x64xf32>
    %230 = tpu.concatenate %227, %229 in 1 : vector<2x64xf32>, vector<2x64xf32> -> vector<2x128xf32>
    %c0_72 = arith.constant 0 : index
    %c3712 = arith.constant 3712 : index
    %231 = vector.load %arg11[%c0_72, %c3712] : memref<2x4096xf32, #tpu.memory_space<vmem>>, vector<2x128xf32>
    tpu.vector_store %arg11[%c0_72, %c3712], %230 {strides = array<i32>} : memref<2x4096xf32, #tpu.memory_space<vmem>>, vector<2x128xf32>,
    %232 = vector.extract_strided_slice %51 {offsets = [0, 60, 0], sizes = [2, 1, 64], strides = [1, 1, 1]} : vector<2x64x64xf32> to vector<2x1x64xf32>
    %233 = vector.shape_cast %232 : vector<2x1x64xf32> to vector<2x64xf32>
    %234 = vector.extract_strided_slice %51 {offsets = [0, 61, 0], sizes = [2, 1, 64], strides = [1, 1, 1]} : vector<2x64x64xf32> to vector<2x1x64xf32>
    %235 = vector.shape_cast %234 : vector<2x1x64xf32> to vector<2x64xf32>
    %236 = tpu.concatenate %233, %235 in 1 : vector<2x64xf32>, vector<2x64xf32> -> vector<2x128xf32>
    %c0_73 = arith.constant 0 : index
    %c3840 = arith.constant 3840 : index
    %237 = vector.load %arg11[%c0_73, %c3840] : memref<2x4096xf32, #tpu.memory_space<vmem>>, vector<2x128xf32>
    tpu.vector_store %arg11[%c0_73, %c3840], %236 {strides = array<i32>} : memref<2x4096xf32, #tpu.memory_space<vmem>>, vector<2x128xf32>,
    %238 = vector.extract_strided_slice %51 {offsets = [0, 62, 0], sizes = [2, 1, 64], strides = [1, 1, 1]} : vector<2x64x64xf32> to vector<2x1x64xf32>
    %239 = vector.shape_cast %238 : vector<2x1x64xf32> to vector<2x64xf32>
    %240 = vector.extract_strided_slice %51 {offsets = [0, 63, 0], sizes = [2, 1, 64], strides = [1, 1, 1]} : vector<2x64x64xf32> to vector<2x1x64xf32>
    %241 = vector.shape_cast %240 : vector<2x1x64xf32> to vector<2x64xf32>
    %242 = tpu.concatenate %239, %241 in 1 : vector<2x64xf32>, vector<2x64xf32> -> vector<2x128xf32>
    %c0_74 = arith.constant 0 : index
    %c3968 = arith.constant 3968 : index
    %243 = vector.load %arg11[%c0_74, %c3968] : memref<2x4096xf32, #tpu.memory_space<vmem>>, vector<2x128xf32>
    tpu.vector_store %arg11[%c0_74, %c3968], %242 {strides = array<i32>} : memref<2x4096xf32, #tpu.memory_space<vmem>>, vector<2x128xf32>,
    %c0_75 = arith.constant 0 : index
    %c0_76 = arith.constant 0 : index
    %244 = vector.load %arg11[%c0_75, %c0_76] : memref<2x4096xf32, #tpu.memory_space<vmem>>, vector<2x4096xf32>
    %245 = arith.truncf %244 : vector<2x4096xf32> to vector<2x4096xbf16>
    tpu.wait_dma2 semaphore(%arg8 : memref<!tpu.dma_semaphore, #tpu.memory_space<semaphore_mem>>) src(%arg3 : memref<4096x128xbf16, #tpu.memory_space<any>>) dst(%arg7 : memref<4096x128xbf16, #tpu.memory_space<vmem>>)
    %c0_77 = arith.constant 0 : index
    %c0_78 = arith.constant 0 : index
    %246 = vector.load %arg7[%c0_77, %c0_78] : memref<4096x128xbf16, #tpu.memory_space<vmem>>, vector<4096x128xbf16>
    %cst_79 = arith.constant dense<0.000000e+00> : vector<2x128xf32>
    %247 = tpu.matmul %245, %246, %cst_79 {dimension_numbers = #tpu.dot_dimension_numbers<[1], [0], [0], [1], [0, 0, 1, 1], [], []>} : vector<2x4096xbf16>, vector<4096x128xbf16>, vector<2x128xf32> -> vector<2x128xf32>
    %248 = vector.broadcast %2 : vector<1x128xf32> to vector<2x128xf32>
    %249 = arith.addf %247, %248 : vector<2x128xf32>
    %cst_80 = arith.constant 0.000000e+00 : f32
    %250 = vector.broadcast %cst_80 : f32 to vector<2x128xf32>
    %251 = arith.maximumf %249, %250 : vector<2x128xf32>
    %252 = arith.truncf %251 : vector<2x128xf32> to vector<2x128xbf16>
    %c0_81 = arith.constant 0 : index
    %c0_82 = arith.constant 0 : index
    %253 = vector.load %arg4[%c0_81, %c0_82] : memref<128x128xbf16, #tpu.memory_space<vmem>>, vector<128x128xbf16>
    %cst_83 = arith.constant dense<0.000000e+00> : vector<2x128xf32>
    %254 = tpu.matmul %252, %253, %cst_83 {dimension_numbers = #tpu.dot_dimension_numbers<[1], [0], [0], [1], [0, 0, 1, 1], [], []>} : vector<2x128xbf16>, vector<128x128xbf16>, vector<2x128xf32> -> vector<2x128xf32>
    %255 = vector.broadcast %3 : vector<1x128xf32> to vector<2x128xf32>
    %256 = arith.addf %254, %255 : vector<2x128xf32>
    %c0_84 = arith.constant 0 : index
    %c0_85 = arith.constant 0 : index
    %257 = vector.load %arg6[%c0_84, %c0_85] : memref<2x128xf32, #tpu.memory_space<vmem>>, vector<2x128xf32>
    tpu.vector_store %arg6[%c0_84, %c0_85], %256 {strides = array<i32>} : memref<2x128xf32, #tpu.memory_space<vmem>>, vector<2x128xf32>,
    return
  }
}

</mosaic_0001>

<bundles_post_ra>
// kernel: qnetwork_forward.1
= control target key start
LH: loop header
LB: loop body
LE: loop exit
PB: predicated region body
PF: predicated region fallthrough
CT: control target
= control target key end

     0   :  { %11 = vsyncpa [#allocation8], 0  ;;  %s7485_s0 = inlined_call_operand.vmem [shape: bf16[128,36], index: 0, kind: input, shape index: {}]   ;;  %s7486_s1 = inlined_call_operand.vmem [shape: bf16[36,32], index: 1, kind: input, shape index: {}]   ;;  %s7487_s2 = inlined_call_operand.vmem [shape: bf16[288,64], index: 2, kind: input, shape index: {}]   ;;  %s7488_s3 = inlined_call_operand.vmem [shape: bf16[4096,128], index: 3, kind: input, shape index: {}]   ;;  %s7489_s4 = inlined_call_operand.vmem [shape: bf16[128,128], index: 4, kind: input, shape index: {}]   ;;  %s7490_s5 = inlined_call_operand.vmem [shape: f32[1,512], index: 5, kind: input, shape index: {}]   ;;  %s7491_s6 = inlined_call_operand.hbm [shape: f32[2,128], index: 6, kind: output, shape index: {}]  }
   0x1   :  { %v4491_v0 = vld [vmem:[%s7488_s3] sm:$0xff]  ;;  %v4496_v1 = vld [vmem:[%s7488_s3 + $0x8] sm:$0xff]  ;;  %v4501_v2 = vld [vmem:[%s7488_s3 + $0x10] sm:$0xff] }
   0x2   :  { %7494 = vst [vmem:[#allocation12_spill] sm:$0xff] %v4501_v2  ;;  %v4506_v3 = vld [vmem:[%s7488_s3 + $0x18] sm:$0xff]  ;;  %v4511_v4 = vld [vmem:[%s7488_s3 + $0x20] sm:$0xff]  ;;  %v4516_v5 = vld [vmem:[%s7488_s3 + $0x28] sm:$0xff] }
   0x3   :  { %7495 = vst [vmem:[#allocation13_spill] sm:$0xff] %v4506_v3  ;;  %7496 = vst [vmem:[#allocation14_spill] sm:$0xff] %v4511_v4  ;;  %v4521_v6 = vld [vmem:[%s7488_s3 + $0x30] sm:$0xff]  ;;  %v4526_v7 = vld [vmem:[%s7488_s3 + $0x38] sm:$0xff] }
   0x4   :  { %7497 = vst [vmem:[#allocation15_spill] sm:$0xff] %v4516_v5  ;;  %7498 = vst [vmem:[#allocation16_spill] sm:$0xff] %v4521_v6  ;;  %v4531_v8 = vld [vmem:[%s7488_s3 + $0x40] sm:$0xff]  ;;  %v4536_v9 = vld [vmem:[%s7488_s3 + $0x48] sm:$0xff] }
   0x5   :  { %7499 = vst [vmem:[#allocation17_spill] sm:$0xff] %v4526_v7  ;;  %v4541_v10 = vld [vmem:[%s7488_s3 + $0x50] sm:$0xff]  ;;  %v4546_v11 = vld [vmem:[%s7488_s3 + $0x58] sm:$0xff]  ;;  %v4551_v12 = vld [vmem:[%s7488_s3 + $0x60] sm:$0xff] }
   0x6   :  { %7500 = vst [vmem:[#allocation18_spill] sm:$0xff] %v4546_v11  ;;  %7501 = vst [vmem:[#allocation19_spill] sm:$0xff] %v4551_v12  ;;  %v4556_v13 = vld [vmem:[%s7488_s3 + $0x68] sm:$0xff]  ;;  %v4561_v14 = vld [vmem:[%s7488_s3 + $0x70] sm:$0xff] }
   0x7   :  { %7502 = vst [vmem:[#allocation20_spill] sm:$0xff] %v4556_v13  ;;  %7503 = vst [vmem:[#allocation21_spill] sm:$0xff] %v4561_v14  ;;  %v4566_v15 = vld [vmem:[%s7488_s3 + $0x78] sm:$0xff]  ;;  %v4571_v16 = vld [vmem:[%s7488_s3 + $0x80] sm:$0xff] }
   0x8   :  { %7504 = vst [vmem:[#allocation22_spill] sm:$0xff] %v4566_v15  ;;  %v4576_v17 = vld [vmem:[%s7488_s3 + $0x88] sm:$0xff]  ;;  %v4581_v18 = vld [vmem:[%s7488_s3 + $0x90] sm:$0xff]  ;;  %v4586_v19 = vld [vmem:[%s7488_s3 + $0x98] sm:$0xff] }
   0x9   :  { %7505 = vst [vmem:[#allocation23_spill] sm:$0xff] %v4581_v18  ;;  %7506 = vst [vmem:[#allocation24_spill] sm:$0xff] %v4586_v19  ;;  %v4591_v20 = vld [vmem:[%s7488_s3 + $0xa0] sm:$0xff]  ;;  %v4596_v21 = vld [vmem:[%s7488_s3 + $0xa8] sm:$0xff] }
   0xa   :  { %7507 = vst [vmem:[#allocation25_spill] sm:$0xff] %v4591_v20  ;;  %7508 = vst [vmem:[#allocation26_spill] sm:$0xff] %v4596_v21  ;;  %v4601_v22 = vld [vmem:[%s7488_s3 + $0xb0] sm:$0xff]  ;;  %v4606_v23 = vld [vmem:[%s7488_s3 + $0xb8] sm:$0xff] }
   0xb   :  { %7509 = vst [vmem:[#allocation27_spill] sm:$0xff] %v4601_v22  ;;  %7510 = vst [vmem:[#allocation28_spill] sm:$0xff] %v4606_v23  ;;  %v4611_v24 = vld [vmem:[%s7488_s3 + $0xc0] sm:$0xff]  ;;  %v4616_v25 = vld [vmem:[%s7488_s3 + $0xc8] sm:$0xff] }
   0xc   :  { %v4621_v26 = vld [vmem:[%s7488_s3 + $0xd0] sm:$0xff]  ;;  %v4626_v27 = vld [vmem:[%s7488_s3 + $0xd8] sm:$0xff]  ;;  %v4631_v28 = vld [vmem:[%s7488_s3 + $0xe0] sm:$0xff] }
   0xd   :  { %7511 = vst [vmem:[#allocation29_spill] sm:$0xff] %v4626_v27  ;;  %7512 = vst [vmem:[#allocation30_spill] sm:$0xff] %v4631_v28  ;;  %v4636_v29 = vld [vmem:[%s7488_s3 + $0xe8] sm:$0xff]  ;;  %v4641_v30 = vld [vmem:[%s7488_s3 + $0xf0] sm:$0xff] }
   0xe   :  { %7513 = vst [vmem:[#allocation31_spill] sm:$0xff] %v4636_v29  ;;  %7514 = vst [vmem:[#allocation32_spill] sm:$0xff] %v4641_v30  ;;  %v4646_v31 = vld [vmem:[%s7488_s3 + $0xf8] sm:$0xff]  ;;  %v4651_v32 = vld [vmem:[%s7488_s3 + $0x100] sm:$0xff] }
   0xf   :  { %7515 = vst [vmem:[#allocation33_spill] sm:$0xff] %v4646_v31  ;;  %7516 = vst [vmem:[#allocation34_spill] sm:$0xff] %v4651_v32  ;;  %v4656_v33 = vld [vmem:[%s7488_s3 + $0x108] sm:$0xff]  ;;  %v4661_v34 = vld [vmem:[%s7488_s3 + $0x110] sm:$0xff] }
  0x10   :  { %7517 = vst [vmem:[#allocation35_spill] sm:$0xff] %v4656_v33  ;;  %7518 = vst [vmem:[#allocation36_spill] sm:$0xff] %v4661_v34  ;;  %v4666_v35 = vld [vmem:[%s7488_s3 + $0x118] sm:$0xff]  ;;  %v4671_v36 = vld [vmem:[%s7488_s3 + $0x120] sm:$0xff] }
  0x11   :  { %7519 = vst [vmem:[#allocation37_spill] sm:$0xff] %v4666_v35  ;;  %7520 = vst [vmem:[#allocation38_spill] sm:$0xff] %v4671_v36  ;;  %v4676_v37 = vld [vmem:[%s7488_s3 + $0x128] sm:$0xff]  ;;  %v4681_v38 = vld [vmem:[%s7488_s3 + $0x130] sm:$0xff] }
  0x12   :  { %7521 = vst [vmem:[#allocation39_spill] sm:$0xff] %v4676_v37  ;;  %7522 = vst [vmem:[#allocation40_spill] sm:$0xff] %v4681_v38  ;;  %v4686_v39 = vld [vmem:[%s7488_s3 + $0x138] sm:$0xff]  ;;  %v4691_v40 = vld [vmem:[%s7488_s3 + $0x140] sm:$0xff] }
  0x13   :  { %7523 = vst [vmem:[#allocation41_spill] sm:$0xff] %v4686_v39  ;;  %7524 = vst [vmem:[#allocation42_spill] sm:$0xff] %v4691_v40  ;;  %v4696_v41 = vld [vmem:[%s7488_s3 + $0x148] sm:$0xff]  ;;  %v4701_v42 = vld [vmem:[%s7488_s3 + $0x150] sm:$0xff] }
  0x14   :  { %7525 = vst [vmem:[#allocation43_spill] sm:$0xff] %v4696_v41  ;;  %7526 = vst [vmem:[#allocation44_spill] sm:$0xff] %v4701_v42  ;;  %v4706_v43 = vld [vmem:[%s7488_s3 + $0x158] sm:$0xff]  ;;  %v4711_v44 = vld [vmem:[%s7488_s3 + $0x160] sm:$0xff] }
  0x15   :  { %7527 = vst [vmem:[#allocation45_spill] sm:$0xff] %v4706_v43  ;;  %7528 = vst [vmem:[#allocation46_spill] sm:$0xff] %v4711_v44  ;;  %v4716_v45 = vld [vmem:[%s7488_s3 + $0x168] sm:$0xff]  ;;  %v4721_v46 = vld [vmem:[%s7488_s3 + $0x170] sm:$0xff] }
  0x16   :  { %7529 = vst [vmem:[#allocation47_spill] sm:$0xff] %v4716_v45  ;;  %7530 = vst [vmem:[#allocation48_spill] sm:$0xff] %v4721_v46  ;;  %v4726_v47 = vld [vmem:[%s7488_s3 + $0x178] sm:$0xff]  ;;  %v4731_v48 = vld [vmem:[%s7488_s3 + $0x180] sm:$0xff] }
  0x17   :  { %7531 = vst [vmem:[#allocation49_spill] sm:$0xff] %v4726_v47  ;;  %7532 = vst [vmem:[#allocation50_spill] sm:$0xff] %v4731_v48  ;;  %v4736_v49 = vld [vmem:[%s7488_s3 + $0x188] sm:$0xff]  ;;  %v4741_v50 = vld [vmem:[%s7488_s3 + $0x190] sm:$0xff] }
  0x18   :  { %7533 = vst [vmem:[#allocation51_spill] sm:$0xff] %v4736_v49  ;;  %7534 = vst [vmem:[#allocation52_spill] sm:$0xff] %v4741_v50  ;;  %v4746_v51 = vld [vmem:[%s7488_s3 + $0x198] sm:$0xff]  ;;  %v4751_v52 = vld [vmem:[%s7488_s3 + $0x1a0] sm:$0xff] }
  0x19   :  { %7535 = vst [vmem:[#allocation53_spill] sm:$0xff] %v4746_v51  ;;  %7536 = vst [vmem:[#allocation54_spill] sm:$0xff] %v4751_v52  ;;  %v4756_v53 = vld [vmem:[%s7488_s3 + $0x1a8] sm:$0xff]  ;;  %v4761_v54 = vld [vmem:[%s7488_s3 + $0x1b0] sm:$0xff] }
  0x1a   :  { %7537 = vst [vmem:[#allocation55_spill] sm:$0xff] %v4756_v53  ;;  %7538 = vst [vmem:[#allocation56_spill] sm:$0xff] %v4761_v54  ;;  %v4766_v55 = vld [vmem:[%s7488_s3 + $0x1b8] sm:$0xff]  ;;  %v4771_v56 = vld [vmem:[%s7488_s3 + $0x1c0] sm:$0xff] }
  0x1b   :  { %7539 = vst [vmem:[#allocation57_spill] sm:$0xff] %v4766_v55  ;;  %7540 = vst [vmem:[#allocation58_spill] sm:$0xff] %v4771_v56  ;;  %v4776_v57 = vld [vmem:[%s7488_s3 + $0x1c8] sm:$0xff]  ;;  %v4781_v58 = vld [vmem:[%s7488_s3 + $0x1d0] sm:$0xff] }
  0x1c   :  { %7541 = vst [vmem:[#allocation59_spill] sm:$0xff] %v4776_v57  ;;  %7542 = vst [vmem:[#allocation60_spill] sm:$0xff] %v4781_v58  ;;  %v4786_v59 = vld [vmem:[%s7488_s3 + $0x1d8] sm:$0xff]  ;;  %v4791_v60 = vld [vmem:[%s7488_s3 + $0x1e0] sm:$0xff] }
  0x1d   :  { %7543 = vst [vmem:[#allocation61_spill] sm:$0xff] %v4786_v59  ;;  %7544 = vst [vmem:[#allocation62_spill] sm:$0xff] %v4791_v60  ;;  %v4796_v61 = vld [vmem:[%s7488_s3 + $0x1e8] sm:$0xff]  ;;  %v4801_v62 = vld [vmem:[%s7488_s3 + $0x1f0] sm:$0xff] }
  0x1e   :  { %7545 = vst [vmem:[#allocation63_spill] sm:$0xff] %v4796_v61  ;;  %7546 = vst [vmem:[#allocation64_spill] sm:$0xff] %v4801_v62  ;;  %v4806_v63 = vld [vmem:[%s7488_s3 + $0x1f8] sm:$0xff]  ;;  %v4811_v55 = vld [vmem:[%s7488_s3 + $0x200] sm:$0xff] }
  0x1f   :  { %7547 = vst [vmem:[#allocation65_spill] sm:$0xff] %v4806_v63  ;;  %7548 = vst [vmem:[#allocation66_spill] sm:$0xff] %v4811_v55  ;;  %v4816_v39 = vld [vmem:[%s7488_s3 + $0x208] sm:$0xff]  ;;  %v4821_v47 = vld [vmem:[%s7488_s3 + $0x210] sm:$0xff] }
  0x20   :  { %7549 = vst [vmem:[#allocation67_spill] sm:$0xff] %v4816_v39  ;;  %7550 = vst [vmem:[#allocation68_spill] sm:$0xff] %v4821_v47  ;;  %v4826_v54 = vld [vmem:[%s7488_s3 + $0x218] sm:$0xff]  ;;  %v4831_v63 = vld [vmem:[%s7488_s3 + $0x220] sm:$0xff] }
  0x21   :  { %7551 = vst [vmem:[#allocation69_spill] sm:$0xff] %v4826_v54  ;;  %7552 = vst [vmem:[#allocation70_spill] sm:$0xff] %v4831_v63  ;;  %v4836_v55 = vld [vmem:[%s7488_s3 + $0x228] sm:$0xff]  ;;  %v4841_v39 = vld [vmem:[%s7488_s3 + $0x230] sm:$0xff] }
  0x22   :  { %7553 = vst [vmem:[#allocation71_spill] sm:$0xff] %v4836_v55  ;;  %7554 = vst [vmem:[#allocation72_spill] sm:$0xff] %v4841_v39  ;;  %v4846_v47 = vld [vmem:[%s7488_s3 + $0x238] sm:$0xff]  ;;  %v4851_v54 = vld [vmem:[%s7488_s3 + $0x240] sm:$0xff] }
  0x23   :  { %7555 = vst [vmem:[#allocation73_spill] sm:$0xff] %v4846_v47  ;;  %7556 = vst [vmem:[#allocation74_spill] sm:$0xff] %v4851_v54  ;;  %v4856_v63 = vld [vmem:[%s7488_s3 + $0x248] sm:$0xff]  ;;  %v4861_v55 = vld [vmem:[%s7488_s3 + $0x250] sm:$0xff] }
  0x24   :  { %7557 = vst [vmem:[#allocation75_spill] sm:$0xff] %v4856_v63  ;;  %7558 = vst [vmem:[#allocation76_spill] sm:$0xff] %v4861_v55  ;;  %v4866_v39 = vld [vmem:[%s7488_s3 + $0x258] sm:$0xff]  ;;  %v4871_v47 = vld [vmem:[%s7488_s3 + $0x260] sm:$0xff] }
  0x25   :  { %7559 = vst [vmem:[#allocation77_spill] sm:$0xff] %v4866_v39  ;;  %7560 = vst [vmem:[#allocation78_spill] sm:$0xff] %v4871_v47  ;;  %v4876_v54 = vld [vmem:[%s7488_s3 + $0x268] sm:$0xff]  ;;  %v4881_v63 = vld [vmem:[%s7488_s3 + $0x270] sm:$0xff] }
  0x26   :  { %7561 = vst [vmem:[#allocation79_spill] sm:$0xff] %v4876_v54  ;;  %7562 = vst [vmem:[#allocation80_spill] sm:$0xff] %v4881_v63  ;;  %v4886_v55 = vld [vmem:[%s7488_s3 + $0x278] sm:$0xff]  ;;  %v4891_v39 = vld [vmem:[%s7488_s3 + $0x280] sm:$0xff] }
  0x27   :  { %7563 = vst [vmem:[#allocation81_spill] sm:$0xff] %v4886_v55  ;;  %7564 = vst [vmem:[#allocation82_spill] sm:$0xff] %v4891_v39  ;;  %v4896_v47 = vld [vmem:[%s7488_s3 + $0x288] sm:$0xff]  ;;  %v4901_v54 = vld [vmem:[%s7488_s3 + $0x290] sm:$0xff] }
  0x28   :  { %7565 = vst [vmem:[#allocation83_spill] sm:$0xff] %v4896_v47  ;;  %7566 = vst [vmem:[#allocation84_spill] sm:$0xff] %v4901_v54  ;;  %v4906_v63 = vld [vmem:[%s7488_s3 + $0x298] sm:$0xff]  ;;  %v4911_v55 = vld [vmem:[%s7488_s3 + $0x2a0] sm:$0xff] }
  0x29   :  { %7567 = vst [vmem:[#allocation85_spill] sm:$0xff] %v4906_v63  ;;  %7568 = vst [vmem:[#allocation86_spill] sm:$0xff] %v4911_v55  ;;  %v4916_v39 = vld [vmem:[%s7488_s3 + $0x2a8] sm:$0xff]  ;;  %v4921_v47 = vld [vmem:[%s7488_s3 + $0x2b0] sm:$0xff] }
  0x2a   :  { %7569 = vst [vmem:[#allocation87_spill] sm:$0xff] %v4916_v39  ;;  %7570 = vst [vmem:[#allocation88_spill] sm:$0xff] %v4921_v47  ;;  %v4926_v54 = vld [vmem:[%s7488_s3 + $0x2b8] sm:$0xff]  ;;  %v4931_v63 = vld [vmem:[%s7488_s3 + $0x2c0] sm:$0xff] }
  0x2b   :  { %7571 = vst [vmem:[#allocation89_spill] sm:$0xff] %v4926_v54  ;;  %7572 = vst [vmem:[#allocation90_spill] sm:$0xff] %v4931_v63  ;;  %v4936_v55 = vld [vmem:[%s7488_s3 + $0x2c8] sm:$0xff]  ;;  %v4941_v39 = vld [vmem:[%s7488_s3 + $0x2d0] sm:$0xff] }
  0x2c   :  { %7573 = vst [vmem:[#allocation91_spill] sm:$0xff] %v4936_v55  ;;  %7574 = vst [vmem:[#allocation92_spill] sm:$0xff] %v4941_v39  ;;  %v4946_v47 = vld [vmem:[%s7488_s3 + $0x2d8] sm:$0xff]  ;;  %v4951_v54 = vld [vmem:[%s7488_s3 + $0x2e0] sm:$0xff] }
  0x2d   :  { %7575 = vst [vmem:[#allocation93_spill] sm:$0xff] %v4946_v47  ;;  %7576 = vst [vmem:[#allocation94_spill] sm:$0xff] %v4951_v54  ;;  %v4956_v63 = vld [vmem:[%s7488_s3 + $0x2e8] sm:$0xff]  ;;  %v4961_v55 = vld [vmem:[%s7488_s3 + $0x2f0] sm:$0xff] }
  0x2e   :  { %7577 = vst [vmem:[#allocation95_spill] sm:$0xff] %v4956_v63  ;;  %7578 = vst [vmem:[#allocation96_spill] sm:$0xff] %v4961_v55  ;;  %v4966_v39 = vld [vmem:[%s7488_s3 + $0x2f8] sm:$0xff]  ;;  %v4971_v47 = vld [vmem:[%s7488_s3 + $0x300] sm:$0xff] }
  0x2f   :  { %7579 = vst [vmem:[#allocation97_spill] sm:$0xff] %v4966_v39  ;;  %7580 = vst [vmem:[#allocation98_spill] sm:$0xff] %v4971_v47  ;;  %v4976_v54 = vld [vmem:[%s7488_s3 + $0x308] sm:$0xff]  ;;  %v4981_v63 = vld [vmem:[%s7488_s3 + $0x310] sm:$0xff] }
  0x30   :  { %7581 = vst [vmem:[#allocation99_spill] sm:$0xff] %v4976_v54  ;;  %7582 = vst [vmem:[#allocation100_spill] sm:$0xff] %v4981_v63  ;;  %v4986_v55 = vld [vmem:[%s7488_s3 + $0x318] sm:$0xff]  ;;  %v4991_v39 = vld [vmem:[%s7488_s3 + $0x320] sm:$0xff] }
  0x31   :  { %7583 = vst [vmem:[#allocation101_spill] sm:$0xff] %v4986_v55  ;;  %7584 = vst [vmem:[#allocation102_spill] sm:$0xff] %v4991_v39  ;;  %v4996_v47 = vld [vmem:[%s7488_s3 + $0x328] sm:$0xff]  ;;  %v5001_v54 = vld [vmem:[%s7488_s3 + $0x330] sm:$0xff] }
  0x32   :  { %7585 = vst [vmem:[#allocation103_spill] sm:$0xff] %v4996_v47  ;;  %7586 = vst [vmem:[#allocation104_spill] sm:$0xff] %v5001_v54  ;;  %v5006_v63 = vld [vmem:[%s7488_s3 + $0x338] sm:$0xff]  ;;  %v5011_v55 = vld [vmem:[%s7488_s3 + $0x340] sm:$0xff] }
  0x33   :  { %7587 = vst [vmem:[#allocation105_spill] sm:$0xff] %v5006_v63  ;;  %7588 = vst [vmem:[#allocation106_spill] sm:$0xff] %v5011_v55  ;;  %v5016_v39 = vld [vmem:[%s7488_s3 + $0x348] sm:$0xff]  ;;  %v5021_v47 = vld [vmem:[%s7488_s3 + $0x350] sm:$0xff] }
  0x34   :  { %7589 = vst [vmem:[#allocation107_spill] sm:$0xff] %v5016_v39  ;;  %7590 = vst [vmem:[#allocation108_spill] sm:$0xff] %v5021_v47  ;;  %v5026_v54 = vld [vmem:[%s7488_s3 + $0x358] sm:$0xff]  ;;  %v5031_v63 = vld [vmem:[%s7488_s3 + $0x360] sm:$0xff] }
  0x35   :  { %7591 = vst [vmem:[#allocation109_spill] sm:$0xff] %v5026_v54  ;;  %7592 = vst [vmem:[#allocation110_spill] sm:$0xff] %v5031_v63  ;;  %v5036_v55 = vld [vmem:[%s7488_s3 + $0x368] sm:$0xff]  ;;  %v5041_v39 = vld [vmem:[%s7488_s3 + $0x370] sm:$0xff] }
  0x36   :  { %7593 = vst [vmem:[#allocation111_spill] sm:$0xff] %v5036_v55  ;;  %7594 = vst [vmem:[#allocation112_spill] sm:$0xff] %v5041_v39  ;;  %v5046_v47 = vld [vmem:[%s7488_s3 + $0x378] sm:$0xff]  ;;  %v5051_v54 = vld [vmem:[%s7488_s3 + $0x380] sm:$0xff] }
  0x37   :  { %7595 = vst [vmem:[#allocation113_spill] sm:$0xff] %v5046_v47  ;;  %7596 = vst [vmem:[#allocation114_spill] sm:$0xff] %v5051_v54  ;;  %v5056_v63 = vld [vmem:[%s7488_s3 + $0x388] sm:$0xff]  ;;  %v5061_v55 = vld [vmem:[%s7488_s3 + $0x390] sm:$0xff] }
  0x38   :  { %7597 = vst [vmem:[#allocation115_spill] sm:$0xff] %v5056_v63  ;;  %7598 = vst [vmem:[#allocation116_spill] sm:$0xff] %v5061_v55  ;;  %v5066_v39 = vld [vmem:[%s7488_s3 + $0x398] sm:$0xff]  ;;  %v5071_v47 = vld [vmem:[%s7488_s3 + $0x3a0] sm:$0xff] }
  0x39   :  { %7599 = vst [vmem:[#allocation117_spill] sm:$0xff] %v5066_v39  ;;  %7600 = vst [vmem:[#allocation118_spill] sm:$0xff] %v5071_v47  ;;  %v5076_v54 = vld [vmem:[%s7488_s3 + $0x3a8] sm:$0xff]  ;;  %v5081_v63 = vld [vmem:[%s7488_s3 + $0x3b0] sm:$0xff] }
  0x3a   :  { %7601 = vst [vmem:[#allocation119_spill] sm:$0xff] %v5076_v54  ;;  %7602 = vst [vmem:[#allocation120_spill] sm:$0xff] %v5081_v63  ;;  %v5086_v55 = vld [vmem:[%s7488_s3 + $0x3b8] sm:$0xff]  ;;  %v5091_v39 = vld [vmem:[%s7488_s3 + $0x3c0] sm:$0xff] }
  0x3b   :  { %7603 = vst [vmem:[#allocation121_spill] sm:$0xff] %v5086_v55  ;;  %7604 = vst [vmem:[#allocation122_spill] sm:$0xff] %v5091_v39  ;;  %v5096_v47 = vld [vmem:[%s7488_s3 + $0x3c8] sm:$0xff]  ;;  %v5101_v54 = vld [vmem:[%s7488_s3 + $0x3d0] sm:$0xff] }
  0x3c   :  { %7605 = vst [vmem:[#allocation123_spill] sm:$0xff] %v5096_v47  ;;  %7606 = vst [vmem:[#allocation124_spill] sm:$0xff] %v5101_v54  ;;  %v5106_v63 = vld [vmem:[%s7488_s3 + $0x3d8] sm:$0xff]  ;;  %v5111_v55 = vld [vmem:[%s7488_s3 + $0x3e0] sm:$0xff] }
  0x3d   :  { %7607 = vst [vmem:[#allocation125_spill] sm:$0xff] %v5106_v63  ;;  %7608 = vst [vmem:[#allocation126_spill] sm:$0xff] %v5111_v55  ;;  %v5116_v39 = vld [vmem:[%s7488_s3 + $0x3e8] sm:$0xff]  ;;  %v5121_v47 = vld [vmem:[%s7488_s3 + $0x3f0] sm:$0xff] }
  0x3e   :  { %7609 = vst [vmem:[#allocation127_spill] sm:$0xff] %v5116_v39  ;;  %7610 = vst [vmem:[#allocation128_spill] sm:$0xff] %v5121_v47  ;;  %v5126_v54 = vld [vmem:[%s7488_s3 + $0x3f8] sm:$0xff]  ;;  %v5131_v63 = vld [vmem:[%s7488_s3 + $0x400] sm:$0xff] }
  0x3f   :  { %7611 = vst [vmem:[#allocation129_spill] sm:$0xff] %v5126_v54  ;;  %7612 = vst [vmem:[#allocation130_spill] sm:$0xff] %v5131_v63  ;;  %v5136_v55 = vld [vmem:[%s7488_s3 + $0x408] sm:$0xff]  ;;  %v5141_v39 = vld [vmem:[%s7488_s3 + $0x410] sm:$0xff] }
  0x40   :  { %7613 = vst [vmem:[#allocation131_spill] sm:$0xff] %v5136_v55  ;;  %7614 = vst [vmem:[#allocation132_spill] sm:$0xff] %v5141_v39  ;;  %v5146_v47 = vld [vmem:[%s7488_s3 + $0x418] sm:$0xff]  ;;  %v5151_v54 = vld [vmem:[%s7488_s3 + $0x420] sm:$0xff] }
  0x41   :  { %7615 = vst [vmem:[#allocation133_spill] sm:$0xff] %v5146_v47  ;;  %7616 = vst [vmem:[#allocation134_spill] sm:$0xff] %v5151_v54  ;;  %v5156_v63 = vld [vmem:[%s7488_s3 + $0x428] sm:$0xff]  ;;  %v5161_v55 = vld [vmem:[%s7488_s3 + $0x430] sm:$0xff] }
  0x42   :  { %7617 = vst [vmem:[#allocation135_spill] sm:$0xff] %v5156_v63  ;;  %7618 = vst [vmem:[#allocation136_spill] sm:$0xff] %v5161_v55  ;;  %v5166_v39 = vld [vmem:[%s7488_s3 + $0x438] sm:$0xff]  ;;  %v5171_v47 = vld [vmem:[%s7488_s3 + $0x440] sm:$0xff] }
  0x43   :  { %7619 = vst [vmem:[#allocation137_spill] sm:$0xff] %v5166_v39  ;;  %7620 = vst [vmem:[#allocation138_spill] sm:$0xff] %v5171_v47  ;;  %v5176_v54 = vld [vmem:[%s7488_s3 + $0x448] sm:$0xff]  ;;  %v5181_v63 = vld [vmem:[%s7488_s3 + $0x450] sm:$0xff] }
  0x44   :  { %7621 = vst [vmem:[#allocation139_spill] sm:$0xff] %v5176_v54  ;;  %7622 = vst [vmem:[#allocation140_spill] sm:$0xff] %v5181_v63  ;;  %v5186_v55 = vld [vmem:[%s7488_s3 + $0x458] sm:$0xff]  ;;  %v5191_v39 = vld [vmem:[%s7488_s3 + $0x460] sm:$0xff] }
  0x45   :  { %7623 = vst [vmem:[#allocation141_spill] sm:$0xff] %v5186_v55  ;;  %7624 = vst [vmem:[#allocation142_spill] sm:$0xff] %v5191_v39  ;;  %v5196_v47 = vld [vmem:[%s7488_s3 + $0x468] sm:$0xff]  ;;  %v5201_v54 = vld [vmem:[%s7488_s3 + $0x470] sm:$0xff] }
  0x46   :  { %7625 = vst [vmem:[#allocation143_spill] sm:$0xff] %v5196_v47  ;;  %7626 = vst [vmem:[#allocation144_spill] sm:$0xff] %v5201_v54  ;;  %v5206_v63 = vld [vmem:[%s7488_s3 + $0x478] sm:$0xff]  ;;  %v5211_v55 = vld [vmem:[%s7488_s3 + $0x480] sm:$0xff] }
  0x47   :  { %7627 = vst [vmem:[#allocation145_spill] sm:$0xff] %v5206_v63  ;;  %7628 = vst [vmem:[#allocation146_spill] sm:$0xff] %v5211_v55  ;;  %v5216_v39 = vld [vmem:[%s7488_s3 + $0x488] sm:$0xff]  ;;  %v5221_v47 = vld [vmem:[%s7488_s3 + $0x490] sm:$0xff] }
  0x48   :  { %7629 = vst [vmem:[#allocation147_spill] sm:$0xff] %v5216_v39  ;;  %7630 = vst [vmem:[#allocation148_spill] sm:$0xff] %v5221_v47  ;;  %v5226_v54 = vld [vmem:[%s7488_s3 + $0x498] sm:$0xff]  ;;  %v5231_v63 = vld [vmem:[%s7488_s3 + $0x4a0] sm:$0xff] }
  0x49   :  { %7631 = vst [vmem:[#allocation149_spill] sm:$0xff] %v5226_v54  ;;  %7632 = vst [vmem:[#allocation150_spill] sm:$0xff] %v5231_v63  ;;  %v5236_v55 = vld [vmem:[%s7488_s3 + $0x4a8] sm:$0xff]  ;;  %v5241_v39 = vld [vmem:[%s7488_s3 + $0x4b0] sm:$0xff] }
  0x4a   :  { %7633 = vst [vmem:[#allocation151_spill] sm:$0xff] %v5236_v55  ;;  %7634 = vst [vmem:[#allocation152_spill] sm:$0xff] %v5241_v39  ;;  %v5246_v47 = vld [vmem:[%s7488_s3 + $0x4b8] sm:$0xff]  ;;  %v5251_v54 = vld [vmem:[%s7488_s3 + $0x4c0] sm:$0xff] }
  0x4b   :  { %7635 = vst [vmem:[#allocation153_spill] sm:$0xff] %v5246_v47  ;;  %7636 = vst [vmem:[#allocation154_spill] sm:$0xff] %v5251_v54  ;;  %v5256_v63 = vld [vmem:[%s7488_s3 + $0x4c8] sm:$0xff]  ;;  %v5261_v55 = vld [vmem:[%s7488_s3 + $0x4d0] sm:$0xff] }
  0x4c   :  { %7637 = vst [vmem:[#allocation155_spill] sm:$0xff] %v5256_v63  ;;  %7638 = vst [vmem:[#allocation156_spill] sm:$0xff] %v5261_v55  ;;  %v5266_v39 = vld [vmem:[%s7488_s3 + $0x4d8] sm:$0xff]  ;;  %v5271_v47 = vld [vmem:[%s7488_s3 + $0x4e0] sm:$0xff] }
  0x4d   :  { %7639 = vst [vmem:[#allocation157_spill] sm:$0xff] %v5266_v39  ;;  %7640 = vst [vmem:[#allocation158_spill] sm:$0xff] %v5271_v47  ;;  %v5276_v54 = vld [vmem:[%s7488_s3 + $0x4e8] sm:$0xff]  ;;  %v5281_v63 = vld [vmem:[%s7488_s3 + $0x4f0] sm:$0xff] }
  0x4e   :  { %7641 = vst [vmem:[#allocation159_spill] sm:$0xff] %v5276_v54  ;;  %7642 = vst [vmem:[#allocation160_spill] sm:$0xff] %v5281_v63  ;;  %v5286_v55 = vld [vmem:[%s7488_s3 + $0x4f8] sm:$0xff]  ;;  %v5291_v39 = vld [vmem:[%s7488_s3 + $0x500] sm:$0xff] }
  0x4f   :  { %7643 = vst [vmem:[#allocation161_spill] sm:$0xff] %v5286_v55  ;;  %7644 = vst [vmem:[#allocation162_spill] sm:$0xff] %v5291_v39  ;;  %v5296_v47 = vld [vmem:[%s7488_s3 + $0x508] sm:$0xff]  ;;  %v5301_v54 = vld [vmem:[%s7488_s3 + $0x510] sm:$0xff] }
  0x50   :  { %7645 = vst [vmem:[#allocation163_spill] sm:$0xff] %v5296_v47  ;;  %7646 = vst [vmem:[#allocation164_spill] sm:$0xff] %v5301_v54  ;;  %v5306_v63 = vld [vmem:[%s7488_s3 + $0x518] sm:$0xff]  ;;  %v5311_v55 = vld [vmem:[%s7488_s3 + $0x520] sm:$0xff] }
  0x51   :  { %7647 = vst [vmem:[#allocation165_spill] sm:$0xff] %v5306_v63  ;;  %7648 = vst [vmem:[#allocation166_spill] sm:$0xff] %v5311_v55  ;;  %v5316_v39 = vld [vmem:[%s7488_s3 + $0x528] sm:$0xff]  ;;  %v5321_v47 = vld [vmem:[%s7488_s3 + $0x530] sm:$0xff] }
  0x52   :  { %7649 = vst [vmem:[#allocation167_spill] sm:$0xff] %v5316_v39  ;;  %7650 = vst [vmem:[#allocation168_spill] sm:$0xff] %v5321_v47  ;;  %v5326_v54 = vld [vmem:[%s7488_s3 + $0x538] sm:$0xff]  ;;  %v5331_v63 = vld [vmem:[%s7488_s3 + $0x540] sm:$0xff] }
  0x53   :  { %7651 = vst [vmem:[#allocation169_spill] sm:$0xff] %v5326_v54  ;;  %7652 = vst [vmem:[#allocation170_spill] sm:$0xff] %v5331_v63  ;;  %v5336_v55 = vld [vmem:[%s7488_s3 + $0x548] sm:$0xff]  ;;  %v5341_v39 = vld [vmem:[%s7488_s3 + $0x550] sm:$0xff] }
  0x54   :  { %7653 = vst [vmem:[#allocation171_spill] sm:$0xff] %v5336_v55  ;;  %7654 = vst [vmem:[#allocation172_spill] sm:$0xff] %v5341_v39  ;;  %v5346_v47 = vld [vmem:[%s7488_s3 + $0x558] sm:$0xff]  ;;  %v5351_v54 = vld [vmem:[%s7488_s3 + $0x560] sm:$0xff] }
  0x55   :  { %7655 = vst [vmem:[#allocation173_spill] sm:$0xff] %v5346_v47  ;;  %7656 = vst [vmem:[#allocation174_spill] sm:$0xff] %v5351_v54  ;;  %v5356_v63 = vld [vmem:[%s7488_s3 + $0x568] sm:$0xff]  ;;  %v5361_v55 = vld [vmem:[%s7488_s3 + $0x570] sm:$0xff] }
  0x56   :  { %7657 = vst [vmem:[#allocation175_spill] sm:$0xff] %v5356_v63  ;;  %7658 = vst [vmem:[#allocation176_spill] sm:$0xff] %v5361_v55  ;;  %v5366_v39 = vld [vmem:[%s7488_s3 + $0x578] sm:$0xff]  ;;  %v5371_v47 = vld [vmem:[%s7488_s3 + $0x580] sm:$0xff] }
  0x57   :  { %7659 = vst [vmem:[#allocation177_spill] sm:$0xff] %v5366_v39  ;;  %7660 = vst [vmem:[#allocation178_spill] sm:$0xff] %v5371_v47  ;;  %v5376_v54 = vld [vmem:[%s7488_s3 + $0x588] sm:$0xff]  ;;  %v5381_v63 = vld [vmem:[%s7488_s3 + $0x590] sm:$0xff] }
  0x58   :  { %7661 = vst [vmem:[#allocation179_spill] sm:$0xff] %v5376_v54  ;;  %7662 = vst [vmem:[#allocation180_spill] sm:$0xff] %v5381_v63  ;;  %v5386_v55 = vld [vmem:[%s7488_s3 + $0x598] sm:$0xff]  ;;  %v5391_v39 = vld [vmem:[%s7488_s3 + $0x5a0] sm:$0xff] }
  0x59   :  { %7663 = vst [vmem:[#allocation181_spill] sm:$0xff] %v5386_v55  ;;  %7664 = vst [vmem:[#allocation182_spill] sm:$0xff] %v5391_v39  ;;  %v5396_v47 = vld [vmem:[%s7488_s3 + $0x5a8] sm:$0xff]  ;;  %v5401_v54 = vld [vmem:[%s7488_s3 + $0x5b0] sm:$0xff] }
  0x5a   :  { %7665 = vst [vmem:[#allocation183_spill] sm:$0xff] %v5396_v47  ;;  %7666 = vst [vmem:[#allocation184_spill] sm:$0xff] %v5401_v54  ;;  %v5406_v63 = vld [vmem:[%s7488_s3 + $0x5b8] sm:$0xff]  ;;  %v5411_v55 = vld [vmem:[%s7488_s3 + $0x5c0] sm:$0xff] }
  0x5b   :  { %7667 = vst [vmem:[#allocation185_spill] sm:$0xff] %v5406_v63  ;;  %7668 = vst [vmem:[#allocation186_spill] sm:$0xff] %v5411_v55  ;;  %v5416_v39 = vld [vmem:[%s7488_s3 + $0x5c8] sm:$0xff]  ;;  %v5421_v47 = vld [vmem:[%s7488_s3 + $0x5d0] sm:$0xff] }
  0x5c   :  { %7669 = vst [vmem:[#allocation187_spill] sm:$0xff] %v5416_v39  ;;  %7670 = vst [vmem:[#allocation188_spill] sm:$0xff] %v5421_v47  ;;  %v5426_v54 = vld [vmem:[%s7488_s3 + $0x5d8] sm:$0xff]  ;;  %v5431_v63 = vld [vmem:[%s7488_s3 + $0x5e0] sm:$0xff] }
  0x5d   :  { %7671 = vst [vmem:[#allocation189_spill] sm:$0xff] %v5426_v54  ;;  %7672 = vst [vmem:[#allocation190_spill] sm:$0xff] %v5431_v63  ;;  %v5436_v55 = vld [vmem:[%s7488_s3 + $0x5e8] sm:$0xff]  ;;  %v5441_v39 = vld [vmem:[%s7488_s3 + $0x5f0] sm:$0xff] }
  0x5e   :  { %7673 = vst [vmem:[#allocation191_spill] sm:$0xff] %v5436_v55  ;;  %7674 = vst [vmem:[#allocation192_spill] sm:$0xff] %v5441_v39  ;;  %v5446_v47 = vld [vmem:[%s7488_s3 + $0x5f8] sm:$0xff]  ;;  %v5451_v54 = vld [vmem:[%s7488_s3 + $0x600] sm:$0xff] }
  0x5f   :  { %7675 = vst [vmem:[#allocation193_spill] sm:$0xff] %v5446_v47  ;;  %7676 = vst [vmem:[#allocation194_spill] sm:$0xff] %v5451_v54  ;;  %v5456_v63 = vld [vmem:[%s7488_s3 + $0x608] sm:$0xff]  ;;  %v5461_v55 = vld [vmem:[%s7488_s3 + $0x610] sm:$0xff] }
  0x60   :  { %7677 = vst [vmem:[#allocation195_spill] sm:$0xff] %v5456_v63  ;;  %7678 = vst [vmem:[#allocation196_spill] sm:$0xff] %v5461_v55  ;;  %v5466_v39 = vld [vmem:[%s7488_s3 + $0x618] sm:$0xff]  ;;  %v5471_v47 = vld [vmem:[%s7488_s3 + $0x620] sm:$0xff] }
  0x61   :  { %7679 = vst [vmem:[#allocation197_spill] sm:$0xff] %v5466_v39  ;;  %7680 = vst [vmem:[#allocation198_spill] sm:$0xff] %v5471_v47  ;;  %v5476_v54 = vld [vmem:[%s7488_s3 + $0x628] sm:$0xff]  ;;  %v5481_v63 = vld [vmem:[%s7488_s3 + $0x630] sm:$0xff] }
  0x62   :  { %7681 = vst [vmem:[#allocation199_spill] sm:$0xff] %v5476_v54  ;;  %7682 = vst [vmem:[#allocation200_spill] sm:$0xff] %v5481_v63  ;;  %v5486_v55 = vld [vmem:[%s7488_s3 + $0x638] sm:$0xff]  ;;  %v5491_v39 = vld [vmem:[%s7488_s3 + $0x640] sm:$0xff] }
  0x63   :  { %7683 = vst [vmem:[#allocation201_spill] sm:$0xff] %v5486_v55  ;;  %7684 = vst [vmem:[#allocation202_spill] sm:$0xff] %v5491_v39  ;;  %v5496_v47 = vld [vmem:[%s7488_s3 + $0x648] sm:$0xff]  ;;  %v5501_v54 = vld [vmem:[%s7488_s3 + $0x650] sm:$0xff] }
  0x64   :  { %7685 = vst [vmem:[#allocation203_spill] sm:$0xff] %v5496_v47  ;;  %7686 = vst [vmem:[#allocation204_spill] sm:$0xff] %v5501_v54  ;;  %v5506_v63 = vld [vmem:[%s7488_s3 + $0x658] sm:$0xff]  ;;  %v5511_v55 = vld [vmem:[%s7488_s3 + $0x660] sm:$0xff] }
  0x65   :  { %7687 = vst [vmem:[#allocation205_spill] sm:$0xff] %v5506_v63  ;;  %7688 = vst [vmem:[#allocation206_spill] sm:$0xff] %v5511_v55  ;;  %v5516_v39 = vld [vmem:[%s7488_s3 + $0x668] sm:$0xff]  ;;  %v5521_v47 = vld [vmem:[%s7488_s3 + $0x670] sm:$0xff] }
  0x66   :  { %7689 = vst [vmem:[#allocation207_spill] sm:$0xff] %v5516_v39  ;;  %7690 = vst [vmem:[#allocation208_spill] sm:$0xff] %v5521_v47  ;;  %v5526_v54 = vld [vmem:[%s7488_s3 + $0x678] sm:$0xff]  ;;  %v5531_v63 = vld [vmem:[%s7488_s3 + $0x680] sm:$0xff] }
  0x67   :  { %7691 = vst [vmem:[#allocation209_spill] sm:$0xff] %v5526_v54  ;;  %7692 = vst [vmem:[#allocation210_spill] sm:$0xff] %v5531_v63  ;;  %v5536_v55 = vld [vmem:[%s7488_s3 + $0x688] sm:$0xff]  ;;  %v5541_v39 = vld [vmem:[%s7488_s3 + $0x690] sm:$0xff] }
  0x68   :  { %7693 = vst [vmem:[#allocation211_spill] sm:$0xff] %v5536_v55  ;;  %7694 = vst [vmem:[#allocation212_spill] sm:$0xff] %v5541_v39  ;;  %v5546_v47 = vld [vmem:[%s7488_s3 + $0x698] sm:$0xff]  ;;  %v5551_v54 = vld [vmem:[%s7488_s3 + $0x6a0] sm:$0xff] }
  0x69   :  { %7695 = vst [vmem:[#allocation213_spill] sm:$0xff] %v5546_v47  ;;  %7696 = vst [vmem:[#allocation214_spill] sm:$0xff] %v5551_v54  ;;  %v5556_v63 = vld [vmem:[%s7488_s3 + $0x6a8] sm:$0xff]  ;;  %v5561_v55 = vld [vmem:[%s7488_s3 + $0x6b0] sm:$0xff] }
  0x6a   :  { %7697 = vst [vmem:[#allocation215_spill] sm:$0xff] %v5556_v63  ;;  %7698 = vst [vmem:[#allocation216_spill] sm:$0xff] %v5561_v55  ;;  %v5566_v39 = vld [vmem:[%s7488_s3 + $0x6b8] sm:$0xff]  ;;  %v5571_v47 = vld [vmem:[%s7488_s3 + $0x6c0] sm:$0xff] }
  0x6b   :  { %7699 = vst [vmem:[#allocation217_spill] sm:$0xff] %v5566_v39  ;;  %7700 = vst [vmem:[#allocation218_spill] sm:$0xff] %v5571_v47  ;;  %v5576_v54 = vld [vmem:[%s7488_s3 + $0x6c8] sm:$0xff]  ;;  %v5581_v63 = vld [vmem:[%s7488_s3 + $0x6d0] sm:$0xff] }
  0x6c   :  { %7701 = vst [vmem:[#allocation219_spill] sm:$0xff] %v5576_v54  ;;  %7702 = vst [vmem:[#allocation220_spill] sm:$0xff] %v5581_v63  ;;  %v5586_v55 = vld [vmem:[%s7488_s3 + $0x6d8] sm:$0xff]  ;;  %v5591_v39 = vld [vmem:[%s7488_s3 + $0x6e0] sm:$0xff] }
  0x6d   :  { %7703 = vst [vmem:[#allocation221_spill] sm:$0xff] %v5586_v55  ;;  %7704 = vst [vmem:[#allocation222_spill] sm:$0xff] %v5591_v39  ;;  %v5596_v47 = vld [vmem:[%s7488_s3 + $0x6e8] sm:$0xff]  ;;  %v5601_v54 = vld [vmem:[%s7488_s3 + $0x6f0] sm:$0xff] }
  0x6e   :  { %7705 = vst [vmem:[#allocation223_spill] sm:$0xff] %v5596_v47  ;;  %7706 = vst [vmem:[#allocation224_spill] sm:$0xff] %v5601_v54  ;;  %v5606_v63 = vld [vmem:[%s7488_s3 + $0x6f8] sm:$0xff]  ;;  %v5611_v55 = vld [vmem:[%s7488_s3 + $0x700] sm:$0xff] }
  0x6f   :  { %7707 = vst [vmem:[#allocation225_spill] sm:$0xff] %v5606_v63  ;;  %7708 = vst [vmem:[#allocation226_spill] sm:$0xff] %v5611_v55  ;;  %v5616_v39 = vld [vmem:[%s7488_s3 + $0x708] sm:$0xff]  ;;  %v5621_v47 = vld [vmem:[%s7488_s3 + $0x710] sm:$0xff] }
  0x70   :  { %7709 = vst [vmem:[#allocation227_spill] sm:$0xff] %v5616_v39  ;;  %7710 = vst [vmem:[#allocation228_spill] sm:$0xff] %v5621_v47  ;;  %v5626_v54 = vld [vmem:[%s7488_s3 + $0x718] sm:$0xff]  ;;  %v5631_v63 = vld [vmem:[%s7488_s3 + $0x720] sm:$0xff] }
  0x71   :  { %7711 = vst [vmem:[#allocation229_spill] sm:$0xff] %v5626_v54  ;;  %7712 = vst [vmem:[#allocation230_spill] sm:$0xff] %v5631_v63  ;;  %v5636_v55 = vld [vmem:[%s7488_s3 + $0x728] sm:$0xff]  ;;  %v5641_v39 = vld [vmem:[%s7488_s3 + $0x730] sm:$0xff] }
  0x72   :  { %7713 = vst [vmem:[#allocation231_spill] sm:$0xff] %v5636_v55  ;;  %7714 = vst [vmem:[#allocation232_spill] sm:$0xff] %v5641_v39  ;;  %v5646_v47 = vld [vmem:[%s7488_s3 + $0x738] sm:$0xff]  ;;  %v5651_v54 = vld [vmem:[%s7488_s3 + $0x740] sm:$0xff] }
  0x73   :  { %7715 = vst [vmem:[#allocation233_spill] sm:$0xff] %v5646_v47  ;;  %7716 = vst [vmem:[#allocation234_spill] sm:$0xff] %v5651_v54  ;;  %v5656_v63 = vld [vmem:[%s7488_s3 + $0x748] sm:$0xff]  ;;  %v5661_v55 = vld [vmem:[%s7488_s3 + $0x750] sm:$0xff] }
  0x74   :  { %7717 = vst [vmem:[#allocation235_spill] sm:$0xff] %v5656_v63  ;;  %7718 = vst [vmem:[#allocation236_spill] sm:$0xff] %v5661_v55  ;;  %v5666_v39 = vld [vmem:[%s7488_s3 + $0x758] sm:$0xff]  ;;  %v5671_v47 = vld [vmem:[%s7488_s3 + $0x760] sm:$0xff] }
  0x75   :  { %7719 = vst [vmem:[#allocation237_spill] sm:$0xff] %v5666_v39  ;;  %7720 = vst [vmem:[#allocation238_spill] sm:$0xff] %v5671_v47  ;;  %v5676_v54 = vld [vmem:[%s7488_s3 + $0x768] sm:$0xff]  ;;  %v5681_v63 = vld [vmem:[%s7488_s3 + $0x770] sm:$0xff] }
  0x76   :  { %7721 = vst [vmem:[#allocation239_spill] sm:$0xff] %v5676_v54  ;;  %7722 = vst [vmem:[#allocation240_spill] sm:$0xff] %v5681_v63  ;;  %v5686_v55 = vld [vmem:[%s7488_s3 + $0x778] sm:$0xff]  ;;  %v5691_v39 = vld [vmem:[%s7488_s3 + $0x780] sm:$0xff] }
  0x77   :  { %7723 = vst [vmem:[#allocation241_spill] sm:$0xff] %v5686_v55  ;;  %7724 = vst [vmem:[#allocation242_spill] sm:$0xff] %v5691_v39  ;;  %v5696_v47 = vld [vmem:[%s7488_s3 + $0x788] sm:$0xff]  ;;  %v5701_v54 = vld [vmem:[%s7488_s3 + $0x790] sm:$0xff] }
  0x78   :  { %7725 = vst [vmem:[#allocation243_spill] sm:$0xff] %v5696_v47  ;;  %7726 = vst [vmem:[#allocation244_spill] sm:$0xff] %v5701_v54  ;;  %v5706_v63 = vld [vmem:[%s7488_s3 + $0x798] sm:$0xff]  ;;  %v5711_v55 = vld [vmem:[%s7488_s3 + $0x7a0] sm:$0xff] }
  0x79   :  { %7727 = vst [vmem:[#allocation245_spill] sm:$0xff] %v5706_v63  ;;  %7728 = vst [vmem:[#allocation246_spill] sm:$0xff] %v5711_v55  ;;  %v5716_v39 = vld [vmem:[%s7488_s3 + $0x7a8] sm:$0xff]  ;;  %v5721_v47 = vld [vmem:[%s7488_s3 + $0x7b0] sm:$0xff] }
  0x7a   :  { %7729 = vst [vmem:[#allocation247_spill] sm:$0xff] %v5716_v39  ;;  %7730 = vst [vmem:[#allocation248_spill] sm:$0xff] %v5721_v47  ;;  %v5726_v54 = vld [vmem:[%s7488_s3 + $0x7b8] sm:$0xff]  ;;  %v5731_v63 = vld [vmem:[%s7488_s3 + $0x7c0] sm:$0xff] }
  0x7b   :  { %7731 = vst [vmem:[#allocation249_spill] sm:$0xff] %v5726_v54  ;;  %7732 = vst [vmem:[#allocation250_spill] sm:$0xff] %v5731_v63  ;;  %v5736_v55 = vld [vmem:[%s7488_s3 + $0x7c8] sm:$0xff]  ;;  %v5741_v39 = vld [vmem:[%s7488_s3 + $0x7d0] sm:$0xff] }
  0x7c   :  { %7733 = vst [vmem:[#allocation251_spill] sm:$0xff] %v5736_v55  ;;  %7734 = vst [vmem:[#allocation252_spill] sm:$0xff] %v5741_v39  ;;  %v5746_v47 = vld [vmem:[%s7488_s3 + $0x7d8] sm:$0xff]  ;;  %v5751_v54 = vld [vmem:[%s7488_s3 + $0x7e0] sm:$0xff] }
  0x7d   :  { %7735 = vst [vmem:[#allocation253_spill] sm:$0xff] %v5746_v47  ;;  %7736 = vst [vmem:[#allocation254_spill] sm:$0xff] %v5751_v54  ;;  %v5756_v63 = vld [vmem:[%s7488_s3 + $0x7e8] sm:$0xff]  ;;  %v5761_v55 = vld [vmem:[%s7488_s3 + $0x7f0] sm:$0xff] }
  0x7e   :  { %7737 = vst [vmem:[#allocation255_spill] sm:$0xff] %v5756_v63  ;;  %7738 = vst [vmem:[#allocation256_spill] sm:$0xff] %v5761_v55  ;;  %v5766_v39 = vld [vmem:[%s7488_s3 + $0x7f8] sm:$0xff] }
  0x7f   :  { %7739 = vst [vmem:[#allocation257_spill] sm:$0xff] %v5766_v39 }
  0x80   :  { %574 = vsyncadd [#allocation3], 32768  ;;  %v5771_v54 = vld [vmem:[%s7490_s5 + $0x2] ss:$0 sm:$0xff]  ;;  %v5776_v63 = vld [vmem:[%s7490_s5 + $0x3] ss:$0 sm:$0xff] }
  0x81   :  { %7740 = vst [vmem:[#allocation258_spill] sm:$0xff] %v5771_v54  ;;  %7741 = vst [vmem:[#allocation259_spill] sm:$0xff] %v5776_v63  ;;  %v4373_v55 = vld [vmem:[%s7486_s1] sm:$0xff]   ;;  %v4374_v47 = vld [vmem:[%s7486_s1 + $0x8] sm:$0xff]   ;;  %vm661_vm0 = vcmask 293888   ;;  %vm686_vm1 = vcmask 1041408  }
  0x82   :  { %4303 = vmatprep.subr.bf16.mxu0 %v4373_v55  ;;  %v4375_v39 = vld [vmem:[%s7486_s1 + $0x10] ss:$0 sps:$4 sm:$0x33]   ;;  %v4376_v54 = vld [vmem:[%s7485_s0] sm:$0xff]   ;;  %vm803_vm2 = vcmask 261120   ;;  %v7492_v63 = vmov 0.0  }
  0x83   :  { %4304 = vmatpush3.bf16.msra.mxu0 %v4373_v55  ;;  %4309 = vmatprep.mubr.msk.bf16.mxu0 %vm661_vm0, %v4376_v54  ;;  %823 = vst.msk [vmem:[#allocation4 + $0x90] sm:$0xff] %vm803_vm2, %v7492_v63  ;;  %804 = vst.msk [vmem:[#allocation4] sm:$0xff] %vm803_vm2, %v7492_v63  ;;  %vm805_vm3 = vcmask 254976   ;;  %v4378_v54 = vld [vmem:[%s7485_s0 + $0x10] sm:$0xff]   ;;  %s4447_s19 = smov 64   ;;  %vm1064_vm4 = vcmask 1045504  }
  0x84   :  { %4305 = vmatprep.subr.bf16.mxu0 %v4374_v47  ;;  %807 = vst.msk [vmem:[#allocation4 + $0x10] sm:$0xff] %vm803_vm2, %v7492_v63  ;;  %809 = vst.msk [vmem:[#allocation4 + $0x20] sm:$0xff] %vm803_vm2, %v7492_v63  ;;  %vm950_vm5 = vcmask 1046528   ;;  %v4379_v46 = vld [vmem:[%s7485_s0 + $0x18] sm:$0xff]   ;;  %v4380_v37 = vld [vmem:[%s7485_s0 + $0x20] sm:$0xff]   ;;  %s4448_s24 = smov 32  }
  0x85   :  { %811 = vst.msk [vmem:[#allocation4 + $0x30] sm:$0xff] %vm803_vm2, %v7492_v63  ;;  %813 = vst.msk [vmem:[#allocation4 + $0x40] sm:$0xff] %vm803_vm2, %v7492_v63  ;;  %vm1047_vm6 = vcmask 523520   ;;  %vm1161_vm7 = vcmask 785920   ;;  %v4387_v56 = vld [vmem:[%s7487_s2] sm:$0xff]   ;;  %v4396_v28 = vld [vmem:[%s7487_s2 + $0x68] sm:$0xff]  }
  0x86   :  { %815 = vst.msk [vmem:[#allocation4 + $0x50] sm:$0xff] %vm803_vm2, %v7492_v63  ;;  %817 = vst.msk [vmem:[#allocation4 + $0x60] sm:$0xff] %vm803_vm2, %v7492_v63  ;;  %vm1228_vm8 = vcmask 1048320   ;;  %vm2039_vm9 = vcmask 1047559   ;;  %vm2001_vm10 = vcmask 1043459   ;;  %vm2020_vm11 = vcmask 1045509  }
  0x87   :  { %4306 = vmatpush3.bf16.msra.mxu0 %v4374_v47  ;;  %819 = vst.msk [vmem:[#allocation4 + $0x70] sm:$0xff] %vm803_vm2, %v7492_v63  ;;  %821 = vst.msk [vmem:[#allocation4 + $0x80] sm:$0xff] %vm803_vm2, %v7492_v63  ;;  %v688_v47 = vsel %vm686_vm1, %v4375_v39, 0  ;;  %vm1990_vm12 = vcmask 1041409   ;;  %vm1998_vm13 = vcmask 523264  }
  0x88   :  { %825 = vst.msk [vmem:[#allocation4 + $0xa0] sm:$0xff] %vm803_vm2, %v7492_v63  ;;  %827 = vst.msk [vmem:[#allocation4 + $0xb0] sm:$0xff] %vm803_vm2, %v7492_v63  ;;  %4365 = vmatprep.subr.msk.bf16.mxu0 %vm686_vm1, %v4375_v39  ;;  %v4377_v39 = vld [vmem:[%s7485_s0 + $0x8] sm:$0xff]  }
  0x89   :  { %829 = vst.msk [vmem:[#allocation4 + $0xc0] sm:$0xff] %vm803_vm2, %v7492_v63  ;;  %831 = vst.msk [vmem:[#allocation4 + $0xd0] sm:$0xff] %vm803_vm2, %v7492_v63 }
  0x8a   :  { %833 = vst.msk [vmem:[#allocation4 + $0xe0] sm:$0xff] %vm803_vm2, %v7492_v63  ;;  %835 = vst.msk [vmem:[#allocation4 + $0xf0] sm:$0xff] %vm803_vm2, %v7492_v63  ;;  %v880_v55 = vld [vmem:[#allocation4 + $0x90] sm:$0xff]  ;;  %v862_v62 = vld [vmem:[#allocation4] sm:$0xff] }
  0x8b   :  { %837 = vst.msk [vmem:[#allocation4 + $0x100] sm:$0xff] %vm803_vm2, %v7492_v63  ;;  %839 = vst.msk [vmem:[#allocation4 + $0x110] sm:$0xff] %vm803_vm2, %v7492_v63  ;;  %4308 = vmatpush3.bf16.msra.mxu0 %v688_v47  ;;  %1371 = vrot.lane.b32.xlu1 %v880_v55, %s4447_s19 }
  0x8c   :  { %841 = vst.msk [vmem:[#allocation4 + $0x120] sm:$0xff] %vm803_vm2, %v7492_v63  ;;  %843 = vst.msk [vmem:[#allocation4 + $0x130] sm:$0xff] %vm803_vm2, %v7492_v63 }
  0x8d   :  { %844 = vst.msk [vmem:[#allocation4 + $0x138] sm:$0x3] %vm805_vm3, %v7492_v63  ;;  %806 = vst.msk [vmem:[#allocation4 + $0x8] sm:$0x3] %vm805_vm3, %v7492_v63 }
  0x8e   :  { %808 = vst.msk [vmem:[#allocation4 + $0x18] sm:$0x3] %vm805_vm3, %v7492_v63  ;;  %810 = vst.msk [vmem:[#allocation4 + $0x28] sm:$0x3] %vm805_vm3, %v7492_v63  ;;  %4310 = vmatmul.mubr.msk.bf16.vlgmr.msra.gmra.mrb[0].mxu0 %vm661_vm0, %v4377_v39  ;;  %v951_v39 = vrot.slane %v862_v62, 1 }
  0x8f   :  { %812 = vst.msk [vmem:[#allocation4 + $0x38] sm:$0x3] %vm805_vm3, %v7492_v63  ;;  %814 = vst.msk [vmem:[#allocation4 + $0x48] sm:$0x3] %vm805_vm3, %v7492_v63  ;;  %4313 = vmatprep.mubr.msk.bf16.mxu0 %vm661_vm0, %v4378_v54 }
  0x90   :  { %816 = vst.msk [vmem:[#allocation4 + $0x58] sm:$0x3] %vm805_vm3, %v7492_v63  ;;  %818 = vst.msk [vmem:[#allocation4 + $0x68] sm:$0x3] %vm805_vm3, %v7492_v63 }
  0x91   :  { %820 = vst.msk [vmem:[#allocation4 + $0x78] sm:$0x3] %vm805_vm3, %v7492_v63  ;;  %822 = vst.msk [vmem:[#allocation4 + $0x88] sm:$0x3] %vm805_vm3, %v7492_v63 }
  0x92   :  { %824 = vst.msk [vmem:[#allocation4 + $0x98] sm:$0x3] %vm805_vm3, %v7492_v63  ;;  %826 = vst.msk [vmem:[#allocation4 + $0xa8] sm:$0x3] %vm805_vm3, %v7492_v63 }
  0x93   :  { %828 = vst.msk [vmem:[#allocation4 + $0xb8] sm:$0x3] %vm805_vm3, %v7492_v63  ;;  %830 = vst.msk [vmem:[#allocation4 + $0xc8] sm:$0x3] %vm805_vm3, %v7492_v63  ;;  %v900_v38 = vld [vmem:[#allocation4 + $0x130] sm:$0xff] }
  0x94   :  { %832 = vst.msk [vmem:[#allocation4 + $0xd8] sm:$0x3] %vm805_vm3, %v7492_v63  ;;  %834 = vst.msk [vmem:[#allocation4 + $0xe8] sm:$0x3] %vm805_vm3, %v7492_v63  ;;  %v901_v47 = vld [vmem:[#allocation4 + $0x138] sm:$0x3]  ;;  %1387 = vrot.lane.b32.xlu1 %v900_v38, %s4447_s19 }
  0x95   :  { %836 = vst.msk [vmem:[#allocation4 + $0xf8] sm:$0x3] %vm805_vm3, %v7492_v63  ;;  %838 = vst.msk [vmem:[#allocation4 + $0x108] sm:$0x3] %vm805_vm3, %v7492_v63  ;;  %v863_v53 = vld [vmem:[#allocation4 + $0x8] sm:$0x3] }
  0x96   :  { %840 = vst.msk [vmem:[#allocation4 + $0x118] sm:$0x3] %vm805_vm3, %v7492_v63  ;;  %842 = vst.msk [vmem:[#allocation4 + $0x128] sm:$0x3] %vm805_vm3, %v7492_v63  ;;  %v1496_v63 = vrot.slane %v900_v38, 2  ;;  %v1497_v54 = vrot.slane %v901_v47, 2  ;;  %4314 = vmatmul.mubr.msk.bf16.gmra.mrb[4].mxu0 %vm661_vm0, %v4379_v46 }
  0x97   :  { %902 = vst.msk [vmem:[#allocation5] sm:$0xff] %vm803_vm2, %v862_v62  ;;  %v952_v61 = vrot.slane %v863_v53, 1  ;;  %4317 = vmatprep.mubr.msk.bf16.mxu0 %vm661_vm0, %v4380_v37  ;;  %v4381_v47 = vld [vmem:[%s7485_s0 + $0x28] sm:$0xff]   ;;  %v4383_v38 = vld [vmem:[%s7485_s0 + $0x38] sm:$0xff]   ;;  %v1065_v37 = vrot.slane %v862_v62, 2 }
  0x98   :  { %v1498_v45 = vsel %vm1064_vm4, %v1496_v63, %v1497_v54  ;;  %v4382_v63 = vld [vmem:[%s7485_s0 + $0x30] sm:$0xff]   ;;  %s4449_s0 = smov 96  }
  0x99   :  { %1530 = vst.msk [vmem:[#allocation5 + $0x178] sm:$0xff] %vm803_vm2, %v1498_v45  ;;  %v953_v52 = vsel %vm950_vm5, %v951_v39, %v952_v61  ;;  %v1066_v45 = vrot.slane %v863_v53, 2  ;;  %v883_v61 = vld [vmem:[#allocation4 + $0xa8] sm:$0x3]  ;;  %v881_v36 = vld [vmem:[#allocation4 + $0x98] sm:$0x3] }
  0x9a   :  { %999 = vrot.lane.b32.xlu1 %v953_v52, %s4448_s24  ;;  %v882_v52 = vld [vmem:[#allocation4 + $0xa0] sm:$0xff]  ;;  %v976_v54 = vrot.slane %v883_v61, 1  ;;  %v1424_v62 = vrot.slane %v881_v36, 1 }
  0x9b   :  { %v1067_v46 = vsel %vm1064_vm4, %v1065_v37, %v1066_v45  ;;  %v975_v39 = vrot.slane %v882_v52, 1  ;;  %910 = vst.msk [vmem:[#allocation5 + $0xc0] sm:$0xff] %vm803_vm2, %v882_v52  ;;  %v1089_v60 = vrot.slane %v882_v52, 2  ;;  %v1493_v45 = vrot.slane %v880_v55, 2  ;;  %v4384_v52 = vld [vmem:[%s7487_s2 + $0x80] sm:$0xff]  }
  0x9c   :  { %1113 = vrot.lane.b32.xlu0 %v1067_v46, %s4447_s19  ;;  %v1494_v46 = vrot.slane %v881_v36, 2  ;;  %4325 = vmatprep.subr.bf16.mxu0 %v4384_v52 }
  0x9d   :  { %4326 = vmatpush3.bf16.msra.mxu0 %v4384_v52 }
  0x9e   :  { %4318 = vmatmul.mubr.msk.bf16.gmra.mrb[8].mxu0 %vm661_vm0, %v4381_v47  ;;  %v1423_v47 = vrot.slane %v880_v55, 1  ;;  %v1495_v44 = vsel %vm1064_vm4, %v1493_v45, %v1494_v46 }
  0x9f   :  { %4321 = vmatprep.mubr.msk.bf16.mxu0 %vm661_vm0, %v4382_v63  ;;  %v977_v63 = vsel %vm950_vm5, %v975_v39, %v976_v54  ;;  %1522 = vst.msk [vmem:[#allocation5 + $0xb8] sm:$0xff] %vm803_vm2, %v1495_v44 }
  0xa0   :  { %1015 = vrot.lane.b32.xlu0 %v977_v63, %s4448_s24  ;;  %v1425_v37 = vsel %vm950_vm5, %v1423_v47, %v1424_v62  ;;  %v5936_v47 = vld [vmem:[%s7490_s5] ss:$0 sm:$0xff] }
  0xa1   :  { %1443 = vrot.lane.b32.xlu1 %v1425_v37, %s4449_s0 }
  0xa6   :  { %4322 = vmatmul.mubr.msk.bf16.gmra.mrb[12].mxu0 %vm661_vm0, %v4383_v38  ;;  %v1090_v38 = vrot.slane %v883_v61, 2 }
  0xa8   :  { %v1091_v53 = vsel %vm1064_vm4, %v1089_v60, %v1090_v38  ;;  %v4385_v60 = vld [vmem:[%s7487_s2 + $0x88] sm:$0xff]  }
  0xa9   :  { %1129 = vrot.lane.b32.xlu0 %v1091_v53, %s4447_s19  ;;  %4327 = vmatprep.subr.bf16.mxu0 %v4385_v60 }
  0xaa   :  { %4328 = vmatpush3.bf16.msra.mxu0 %v4385_v60 }
  0xab   :  { %3942 = vmatprep.subr.bf16.mxu0 %v4531_v8 }
  0xfd   :  { %v5925_v61 = vpop.permute.xlu1 %1371 }
 0x106   :  { %v5927_v55 = vpop.permute.xlu1 %1387 }
 0x10c   :  { %v1000_v36 = vpop.permute.xlu1 %999 }
 0x10d   :  { %1048 = vst.msk [vmem:[#allocation5] sm:$0xff] %vm1047_vm6, %v1000_v36 }
 0x10e   :  { %v1114_v44 = vpop.permute.xlu0 %1113 }
 0x10f   :  { %1162 = vst.msk [vmem:[#allocation5] sm:$0xff] %vm1161_vm7, %v1114_v44 }
 0x112   :  { %v1016_v39 = vpop.permute.xlu0 %1015 }
 0x113   :  { %1056 = vst.msk [vmem:[#allocation5 + $0xc0] sm:$0xff] %vm1047_vm6, %v1016_v39 }
 0x11b   :  { %v1130_v54 = vpop.permute.xlu0 %1129 }
 0x11c   :  { %1170 = vst.msk [vmem:[#allocation5 + $0xc0] sm:$0xff] %vm1161_vm7, %v1130_v54 }
 0x161   :  { %v4311_v63 = vpop.f32.mrb[0].mxu0 }
 0x162   :  { %v733_v38 = vadd.f32 %v4311_v63, %v5936_v47  ;;  %v724_v62 = vpop.f32.mrb[1].mxu0 }
 0x163   :  { %v725_v53 = vadd.f32 %v5936_v47, %v724_v62  ;;  %v4312_v37 = vpop.f32.mrb[2].mxu0 }
 0x164   :  { %v789_v45 = vmax.f32 %v733_v38, 0.0  ;;  %v736_v46 = vadd.f32 %v4312_v37, %v5936_v47  ;;  %v727_v52 = vpop.f32.mrb[3].mxu0 }
 0x165   :  { %v787_v60 = vmax.f32 %v725_v53, 0.0  ;;  %v728_v36 = vadd.f32 %v5936_v47, %v727_v52 }
 0x166   :  { %848 = vst.msk [vmem:[#allocation4 + $0x31] sm:$0xff] %vm803_vm2, %v789_v45  ;;  %v790_v44 = vmax.f32 %v736_v46, 0.0 }
 0x167   :  { %846 = vst.msk [vmem:[#allocation4 + $0x11] sm:$0xff] %vm803_vm2, %v787_v60  ;;  %v788_v39 = vmax.f32 %v728_v36, 0.0 }
 0x168   :  { %849 = vst.msk [vmem:[#allocation4 + $0x41] sm:$0xff] %vm803_vm2, %v790_v44 }
 0x169   :  { %847 = vst.msk [vmem:[#allocation4 + $0x21] sm:$0xff] %vm803_vm2, %v788_v39  ;;  %v4315_v54 = vpop.f32.mrb[4].mxu0 }
 0x16a   :  { %v749_v63 = vadd.f32 %v4315_v54, %v5936_v47  ;;  %v740_v38 = vpop.f32.mrb[5].mxu0 }
 0x16b   :  { %v741_v62 = vadd.f32 %v5936_v47, %v740_v38  ;;  %v4316_v37 = vpop.f32.mrb[6].mxu0 }
 0x16c   :  { %v793_v53 = vmax.f32 %v749_v63, 0.0  ;;  %v752_v52 = vadd.f32 %v4316_v37, %v5936_v47  ;;  %v743_v51 = vpop.f32.mrb[7].mxu0 }
 0x16d   :  { %v791_v45 = vmax.f32 %v741_v62, 0.0  ;;  %v868_v46 = vld [vmem:[#allocation4 + $0x30] sm:$0xff]  ;;  %v869_v35 = vld [vmem:[#allocation4 + $0x38] sm:$0x3]  ;;  %v744_v60 = vadd.f32 %v5936_v47, %v743_v51 }
 0x16e   :  { %852 = vst.msk [vmem:[#allocation4 + $0x71] sm:$0xff] %vm803_vm2, %v793_v53  ;;  %1184 = vrot.lane.b32.xlu0 %v868_v46, %s4449_s0  ;;  %v1074_v36 = vrot.slane %v868_v46, 2  ;;  %905 = vst.msk [vmem:[#allocation5 + $0x48] sm:$0xff] %vm803_vm2, %v868_v46  ;;  %1359 = vrot.lane.b32.xlu1 %v868_v46, %s4447_s19  ;;  %v5954_v44 = vld [vmem:[#allocation4 + $0x10] sm:$0xff]  ;;  %v960_v39 = vrot.slane %v868_v46, 1  ;;  %v961_v54 = vrot.slane %v869_v35, 1 }
 0x16f   :  { %v1075_v63 = vrot.slane %v869_v35, 2  ;;  %850 = vst.msk [vmem:[#allocation4 + $0x51] sm:$0xff] %vm803_vm2, %v791_v45  ;;  %v870_v38 = vld [vmem:[#allocation4 + $0x40] sm:$0xff]  ;;  %v871_v62 = vld [vmem:[#allocation4 + $0x48] sm:$0x3]  ;;  %903 = vst.msk [vmem:[#allocation5 + $0x18] sm:$0xff] %vm803_vm2, %v5954_v44 }
 0x170   :  { %v794_v51 = vmax.f32 %v752_v52, 0.0  ;;  %v5959_v37 = vld [vmem:[#allocation4 + $0x18] sm:$0x3]  ;;  %v1078_v53 = vrot.slane %v871_v62, 2  ;;  %v1077_v59 = vrot.slane %v870_v38, 2  ;;  %906 = vst.msk [vmem:[#allocation5 + $0x60] sm:$0xff] %vm803_vm2, %v870_v38  ;;  %v5963_v43 = vsel %vm950_vm5, %v960_v39, %v961_v54 }
 0x171   :  { %v5966_v46 = vsel %vm1064_vm4, %v1074_v36, %v1075_v63  ;;  %v5968_v35 = vld [vmem:[#allocation4 + $0x20] sm:$0xff]  ;;  %v867_v45 = vld [vmem:[#allocation4 + $0x28] sm:$0x3]  ;;  %1271 = vst.msk [vmem:[#allocation5 + $0x38] sm:$0xff] %vm803_vm2, %v5963_v43  ;;  %v4319_v39 = vpop.f32.mrb[8].mxu0  ;;  %v792_v54 = vmax.f32 %v744_v60, 0.0 }
 0x172   :  { %1516 = vst.msk [vmem:[#allocation5 + $0x28] sm:$0xff] %vm803_vm2, %v5966_v46  ;;  %v1072_v52 = vrot.slane %v867_v45, 2  ;;  %v1071_v50 = vrot.slane %v5968_v35, 2  ;;  %904 = vst.msk [vmem:[#allocation5 + $0x30] sm:$0xff] %vm803_vm2, %v5968_v35  ;;  %1186 = vrot.lane.b32.xlu1 %v870_v38, %s4449_s0  ;;  %v5980_v36 = vsel %vm1064_vm4, %v1077_v59, %v1078_v53  ;;  %1180 = vrot.lane.b32.xlu0 %v5954_v44, %s4449_s0  ;;  %v963_v63 = vrot.slane %v870_v38, 1  ;;  %v756_v58 = vpop.f32.mrb[9].mxu0 }
 0x173   :  { %853 = vst.msk [vmem:[#allocation4 + $0x81] sm:$0xff] %vm803_vm2, %v794_v51  ;;  %v964_v34 = vrot.slane %v871_v62, 1  ;;  %1517 = vst.msk [vmem:[#allocation5 + $0x40] sm:$0xff] %vm803_vm2, %v5980_v36  ;;  %v954_v49 = vrot.slane %v5954_v44, 1  ;;  %v955_v59 = vrot.slane %v5959_v37, 1  ;;  %v4320_v53 = vpop.f32.mrb[10].mxu0  ;;  %v765_v51 = vadd.f32 %v4319_v39, %v5936_v47 }
 0x174   :  { %v5987_v42 = vsel %vm1064_vm4, %v1071_v50, %v1072_v52  ;;  %v4386_v60 = vld [vmem:[%s7487_s2 + $0x40] sm:$0xff]   ;;  %851 = vst.msk [vmem:[#allocation4 + $0x61] sm:$0xff] %vm803_vm2, %v792_v54  ;;  %v957_v50 = vrot.slane %v5968_v35, 1  ;;  %v958_v52 = vrot.slane %v867_v45, 1  ;;  %v759_v33 = vpop.f32.mrb[11].mxu0  ;;  %v6011_v54 = vadd.f32 %v5936_v47, %v756_v58 }
 0x175   :  { %1515 = vst.msk [vmem:[#allocation5 + $0x10] sm:$0xff] %vm803_vm2, %v5987_v42  ;;  %v5999_v62 = vsel %vm950_vm5, %v963_v63, %v964_v34  ;;  %v6006_v57 = vsel %vm950_vm5, %v954_v49, %v955_v59  ;;  %v6008_v41 = vld [vmem:[#allocation4 + $0x70] sm:$0xff]  ;;  %v877_v48 = vld [vmem:[#allocation4 + $0x78] sm:$0x3]  ;;  %v6014_v34 = vadd.f32 %v4320_v53, %v5936_v47  ;;  %v6017_v45 = vadd.f32 %v5936_v47, %v759_v33 }
 0x176   :  { %1272 = vst.msk [vmem:[#allocation5 + $0x50] sm:$0xff] %vm803_vm2, %v5999_v62  ;;  %3868 = vmatprep.subr.bf16.mxu1 %v4386_v60  ;;  %v6019_v39 = vld [vmem:[#allocation4 + $0x50] sm:$0xff]  ;;  %v873_v63 = vld [vmem:[#allocation4 + $0x58] sm:$0x3]  ;;  %1431 = vrot.lane.b32.xlu1 %v5963_v43, %s4449_s0  ;;  %1269 = vst.msk [vmem:[#allocation5 + $0x8] sm:$0xff] %vm803_vm2, %v6006_v57  ;;  %v1086_v49 = vrot.slane %v6008_v41, 2  ;;  %v6030_v33 = vsel %vm950_vm5, %v957_v50, %v958_v52 }
 0x177   :  { %1361 = vrot.lane.b32.xlu0 %v870_v38, %s4447_s19  ;;  %v1087_v58 = vrot.slane %v877_v48, 2  ;;  %909 = vst.msk [vmem:[#allocation5 + $0xa8] sm:$0xff] %vm803_vm2, %v6008_v41  ;;  %v972_v59 = vrot.slane %v6008_v41, 1  ;;  %v1080_v53 = vrot.slane %v6019_v39, 2  ;;  %v1081_v60 = vrot.slane %v873_v63, 2  ;;  %907 = vst.msk [vmem:[#allocation5 + $0x78] sm:$0xff] %vm803_vm2, %v6019_v39  ;;  %3869 = vmatpush3.bf16.msra.mxu1 %v4387_v56 }
 0x178   :  { %1270 = vst.msk [vmem:[#allocation5 + $0x20] sm:$0xff] %vm803_vm2, %v6030_v33  ;;  %v973_v38 = vrot.slane %v877_v48, 1  ;;  %v966_v32 = vrot.slane %v6019_v39, 1  ;;  %v967_v7 = vrot.slane %v873_v63, 1  ;;  %v797_v31 = vmax.f32 %v765_v51, 0.0 }
 0x179   :  { %v6044_v52 = vsel %vm1064_vm4, %v1086_v49, %v1087_v58  ;;  %v6049_v15 = vsel %vm1064_vm4, %v1080_v53, %v1081_v60  ;;  %v4323_v50 = vpop.f32.mrb[12].mxu0  ;;  %v4388_v49 = vld [vmem:[%s7487_s2 + $0x48] sm:$0xff]   ;;  %v795_v56 = vmax.f32 %v6011_v54, 0.0  ;;  %v798_v58 = vmax.f32 %v6014_v34, 0.0 }
 0x17a   :  { %v6046_v40 = vld [vmem:[#allocation4 + $0x80] sm:$0xff]  ;;  %v879_v23 = vld [vmem:[#allocation4 + $0x88] sm:$0x3]  ;;  %1520 = vst.msk [vmem:[#allocation5 + $0x88] sm:$0xff] %vm803_vm2, %v6044_v52  ;;  %v6055_v6 = vsel %vm950_vm5, %v972_v59, %v973_v38  ;;  %1518 = vst.msk [vmem:[#allocation5 + $0x58] sm:$0xff] %vm803_vm2, %v6049_v15  ;;  %1182 = vrot.lane.b32.xlu1 %v5968_v35, %s4449_s0  ;;  %v6069_v63 = vsel %vm950_vm5, %v966_v32, %v967_v7  ;;  %v796_v59 = vmax.f32 %v6017_v45, 0.0  ;;  %3870 = vmatprep.subr.bf16.mxu1 %v4388_v49 }
 0x17b   :  { %v1285_v48 = vrot.slane %v6046_v40, 2  ;;  %v1286_v22 = vrot.slane %v879_v23, 2  ;;  %1357 = vrot.lane.b32.xlu0 %v5968_v35, %s4447_s19  ;;  %v1536_v51 = vld [vmem:[#allocation5 + $0x28] sm:$0xff]  ;;  %1275 = vst.msk [vmem:[#allocation5 + $0x98] sm:$0xff] %vm803_vm2, %v6055_v6  ;;  %856 = vst.msk [vmem:[#allocation4 + $0xd1] sm:$0xff] %vm803_vm2, %v797_v31  ;;  %v772_v53 = vpop.f32.mrb[13].mxu0  ;;  %v781_v31 = vadd.f32 %v4323_v50, %v5936_v47 }
 0x17c   :  { %v4389_v35 = vld [vmem:[%s7487_s2 + $0x8] sm:$0xff]   ;;  %v1533_v60 = vld [vmem:[#allocation5 + $0x10] sm:$0xff]  ;;  %v6078_v38 = vld [vmem:[#allocation4 + $0x60] sm:$0xff]  ;;  %1273 = vst.msk [vmem:[#allocation5 + $0x68] sm:$0xff] %vm803_vm2, %v6069_v63  ;;  %v773_v32 = vadd.f32 %v5936_v47, %v772_v53  ;;  %v1247_v54 = vrot.slane %v6046_v40, 1  ;;  %v4324_v34 = vpop.f32.mrb[14].mxu0 }
 0x17d   :  { %v875_v30 = vld [vmem:[#allocation4 + $0x68] sm:$0x3]  ;;  %v6081_v7 = vsel %vm1064_vm4, %v1285_v48, %v1286_v22  ;;  %v1581_v45 = vpack.c.bf16 %v1536_v51, %v1533_v60  ;;  %908 = vst.msk [vmem:[#allocation5 + $0x90] sm:$0xff] %vm803_vm2, %v6078_v38  ;;  %v1083_v22 = vrot.slane %v6078_v38, 2  ;;  %854 = vst.msk [vmem:[#allocation4 + $0xb1] sm:$0xff] %vm803_vm2, %v795_v56  ;;  %v1248_v50 = vrot.slane %v879_v23, 1  ;;  %3871 = vmatpush3.bf16.msra.mxu1 %v4389_v35 }
 0x17e   :  { %v1084_v14 = vrot.slane %v875_v30, 2  ;;  %1521 = vst.msk [vmem:[#allocation5 + $0xa0] sm:$0xff] %vm803_vm2, %v6081_v7  ;;  %857 = vst.msk [vmem:[#allocation4 + $0xe1] sm:$0xff] %vm803_vm2, %v798_v58  ;;  %v775_v48 = vpop.f32.mrb[15].mxu0  ;;  %v4390_v49 = vld [vmem:[%s7487_s2 + $0x50] sm:$0xff]   ;;  %v801_v51 = vmax.f32 %v781_v31, 0.0  ;;  %1005 = vrot.lane.b32.xlu1 %v5963_v43, %s4448_s24  ;;  %v784_v58 = vadd.f32 %v4324_v34, %v5936_v47 }
 0x17f   :  { %855 = vst.msk [vmem:[#allocation4 + $0xc1] sm:$0xff] %vm803_vm2, %v796_v59  ;;  %v799_v53 = vmax.f32 %v773_v32, 0.0  ;;  %v969_v60 = vrot.slane %v6078_v38, 1  ;;  %v970_v21 = vrot.slane %v875_v30, 1  ;;  %4329 = vmatprep.mubr.msk.bf16.mxu0 %vm803_vm2, %v1581_v45  ;;  %v6107_v23 = vsel %vm950_vm5, %v1247_v54, %v1248_v50  ;;  %v4391_v59 = vld [vmem:[%s7487_s2 + $0x10] sm:$0xff]   ;;  %1295 = vrot.lane.b32.xlu0 %v5966_v46, %s4448_s24  ;;  %v4392_v43 = vld [vmem:[%s7487_s2 + $0x58] sm:$0xff]  }
 0x180   :  { %v6104_v56 = vsel %vm1064_vm4, %v1083_v22, %v1084_v14  ;;  %860 = vst.msk [vmem:[#allocation4 + $0x111] sm:$0xff] %vm803_vm2, %v801_v51  ;;  %1276 = vst.msk [vmem:[#allocation5 + $0xb0] sm:$0xff] %vm803_vm2, %v6107_v23  ;;  %v776_v30 = vadd.f32 %v5936_v47, %v775_v48  ;;  %3872 = vmatprep.subr.bf16.mxu1 %v4390_v49  ;;  %v1539_v35 = vld [vmem:[#allocation5 + $0x40] sm:$0xff]  ;;  %v802_v31 = vmax.f32 %v784_v58, 0.0  ;;  %v7742_v32 = vrot.slane %v5959_v37, 2  ;;  %v4393_v51 = vld [vmem:[%s7487_s2 + $0x18] sm:$0xff]  }
 0x181   :  { %1519 = vst.msk [vmem:[#allocation5 + $0x70] sm:$0xff] %vm803_vm2, %v6104_v56  ;;  %858 = vst.msk [vmem:[#allocation4 + $0xf1] sm:$0xff] %vm803_vm2, %v799_v53  ;;  %v6122_v14 = vsel %vm950_vm5, %v969_v60, %v970_v21  ;;  %v7743_v54 = vrot.slane %v5954_v44, 2  ;;  %v1542_v21 = vld [vmem:[#allocation5 + $0x58] sm:$0xff]  ;;  %3873 = vmatpush3.bf16.msra.mxu1 %v4391_v59  ;;  %v1548_v48 = vld [vmem:[#allocation5 + $0x88] sm:$0xff] }
 0x182   :  { %1274 = vst.msk [vmem:[#allocation5 + $0x80] sm:$0xff] %vm803_vm2, %v6122_v14  ;;  %v6137_v45 = vld [vmem:[#allocation4 + $0xd0] sm:$0xff]  ;;  %v889_v47 = vld [vmem:[#allocation4 + $0xd8] sm:$0x3]  ;;  %v800_v22 = vmax.f32 %v776_v30, 0.0  ;;  %1119 = vrot.lane.b32.xlu1 %v5966_v46, %s4447_s19  ;;  %v1584_v50 = vpack.c.bf16 %v1542_v21, %v1539_v35  ;;  %861 = vst.msk [vmem:[#allocation4 + $0x121] sm:$0xff] %vm803_vm2, %v802_v31  ;;  %3874 = vmatprep.subr.bf16.mxu1 %v4392_v43 }
 0x183   :  { %v6135_v34 = vsel %vm1064_vm4, %v7743_v54, %v7742_v32  ;;  %v1098_v49 = vrot.slane %v6137_v45, 2  ;;  %913 = vst.msk [vmem:[#allocation5 + $0x108] sm:$0xff] %vm803_vm2, %v6137_v45  ;;  %v984_v44 = vrot.slane %v6137_v45, 1  ;;  %v985_v37 = vrot.slane %v889_v47, 1  ;;  %v6153_v53 = vld [vmem:[#allocation5 + $0xb8] sm:$0xff] }
 0x184   :  { %1291 = vrot.lane.b32.xlu0 %v6135_v34, %s4448_s24  ;;  %v1099_v59 = vrot.slane %v889_v47, 2  ;;  %859 = vst.msk [vmem:[#allocation4 + $0x101] sm:$0xff] %vm803_vm2, %v800_v22  ;;  %4330 = vmatmul.mubr.msk.bf16.vlgmr.msra.gmra.mrb[16].mxu0 %vm803_vm2, %v1584_v50  ;;  %v6170_v54 = vld [vmem:[#allocation4 + $0xb0] sm:$0xff]  ;;  %v6182_v50 = vld [vmem:[#allocation4 + $0xb8] sm:$0x3] }
 0x185   :  { %v6151_v46 = vld [vmem:[#allocation5 + $0xa0] sm:$0xff]  ;;  %v891_v35 = vld [vmem:[#allocation4 + $0xe8] sm:$0x3]  ;;  %v6167_v31 = vsel %vm950_vm5, %v984_v44, %v985_v37  ;;  %911 = vst.msk [vmem:[#allocation5 + $0xd8] sm:$0xff] %vm803_vm2, %v6170_v54  ;;  %v978_v44 = vrot.slane %v6170_v54, 1  ;;  %3875 = vmatpush3.bf16.msra.mxu1 %v4393_v51  ;;  %v979_v51 = vrot.slane %v6182_v50, 1 }
 0x186   :  { %v6155_v60 = vld [vmem:[#allocation4 + $0xc0] sm:$0xff]  ;;  %v6157_v58 = vld [vmem:[#allocation4 + $0xc8] sm:$0x3]  ;;  %v1102_v47 = vrot.slane %v891_v35, 2  ;;  %v6176_v22 = vsel %vm1064_vm4, %v1098_v49, %v1099_v59  ;;  %1279 = vst.msk [vmem:[#allocation5 + $0xf8] sm:$0xff] %vm803_vm2, %v6167_v31  ;;  %1001 = vrot.lane.b32.xlu1 %v6006_v57, %s4448_s24  ;;  %v988_v4 = vrot.slane %v891_v35, 1 }
 0x187   :  { %v1096_v30 = vrot.slane %v6157_v58, 2  ;;  %912 = vst.msk [vmem:[#allocation5 + $0xf0] sm:$0xff] %vm803_vm2, %v6155_v60  ;;  %v6164_v43 = vld [vmem:[#allocation4 + $0xe0] sm:$0xff]  ;;  %v1095_v32 = vrot.slane %v6155_v60, 2  ;;  %1524 = vst.msk [vmem:[#allocation5 + $0xe8] sm:$0xff] %vm803_vm2, %v6176_v22  ;;  %v982_v12 = vrot.slane %v6157_v58, 1 }
 0x188   :  { %v1101_v21 = vrot.slane %v6164_v43, 2  ;;  %914 = vst.msk [vmem:[#allocation5 + $0x120] sm:$0xff] %vm803_vm2, %v6164_v43  ;;  %v4394_v37 = vld [vmem:[%s7487_s2 + $0x60] sm:$0xff]   ;;  %v1545_v49 = vld [vmem:[#allocation5 + $0x70] sm:$0xff]  ;;  %v6192_v5 = vld [vmem:[#allocation4 + $0xf8] sm:$0x3]  ;;  %1433 = vrot.lane.b32.xlu0 %v5999_v62, %s4449_s0 }
 0x189   :  { %v6190_v59 = vld [vmem:[#allocation4 + $0xf0] sm:$0xff]  ;;  %v6197_v29 = vsel %vm1064_vm4, %v1095_v32, %v1096_v30  ;;  %v1587_v13 = vpack.c.bf16 %v1548_v48, %v1545_v49  ;;  %v1105_v20 = vrot.slane %v6192_v5, 2  ;;  %3876 = vmatprep.subr.bf16.mxu1 %v4394_v37  ;;  %v4395_v48 = vld [vmem:[%s7487_s2 + $0x20] sm:$0xff]   ;;  %v1590_v49 = vpack.c.bf16 %v6153_v53, %v6151_v46  ;;  %v897_v37 = vld [vmem:[#allocation4 + $0x118] sm:$0x3] }
 0x18a   :  { %915 = vst.msk [vmem:[#allocation5 + $0x138] sm:$0xff] %vm803_vm2, %v6190_v59  ;;  %v6206_v57 = vsel %vm1064_vm4, %v1101_v21, %v1102_v47  ;;  %1523 = vst.msk [vmem:[#allocation5 + $0xd0] sm:$0xff] %vm803_vm2, %v6197_v29  ;;  %v1104_v30 = vrot.slane %v6190_v59, 2  ;;  %v6211_v32 = vld [vmem:[#allocation4 + $0x110] sm:$0xff]  ;;  %v6221_v21 = vsel %vm950_vm5, %v978_v44, %v979_v51  ;;  %v987_v47 = vrot.slane %v6164_v43, 1  ;;  %v6233_v53 = vld [vmem:[#allocation4 + $0x120] sm:$0xff]  ;;  %3877 = vmatpush3.bf16.msra.mxu1 %v4395_v48 }
 0x18b   :  { %1525 = vst.msk [vmem:[#allocation5 + $0x100] sm:$0xff] %vm803_vm2, %v6206_v57  ;;  %917 = vst.msk [vmem:[#allocation5 + $0x168] sm:$0xff] %vm803_vm2, %v6211_v32  ;;  %4333 = vmatprep.mubr.msk.bf16.mxu0 %vm803_vm2, %v1587_v13  ;;  %v899_v44 = vld [vmem:[#allocation4 + $0x128] sm:$0x3]  ;;  %v1110_v35 = vrot.slane %v6211_v32, 2  ;;  %v981_v51 = vrot.slane %v6155_v60, 1  ;;  %1115 = vrot.lane.b32.xlu1 %v6135_v34, %s4447_s19 }
 0x18c   :  { %v6231_v46 = vsel %vm1064_vm4, %v1104_v30, %v1105_v20  ;;  %1277 = vst.msk [vmem:[#allocation5 + $0xc8] sm:$0xff] %vm803_vm2, %v6221_v21  ;;  %v1288_v13 = vrot.slane %v6233_v53, 2  ;;  %v1289_v20 = vrot.slane %v899_v44, 2  ;;  %v6245_v30 = vld [vmem:[#allocation4 + $0x100] sm:$0xff]  ;;  %v895_v19 = vld [vmem:[#allocation4 + $0x108] sm:$0x3]  ;;  %v6248_v3 = vsel %vm950_vm5, %v987_v47, %v988_v4  ;;  %3878 = vmatprep.subr.bf16.mxu1 %v4396_v28  ;;  %1007 = vrot.lane.b32.xlu0 %v5999_v62, %s4448_s24 }
 0x18d   :  { %1526 = vst.msk [vmem:[#allocation5 + $0x118] sm:$0xff] %vm803_vm2, %v6231_v46  ;;  %v4397_v58 = vld [vmem:[%s7487_s2 + $0x28] sm:$0xff]   ;;  %v1108_v34 = vrot.slane %v895_v19, 2  ;;  %916 = vst.msk [vmem:[#allocation5 + $0x150] sm:$0xff] %vm803_vm2, %v6245_v30  ;;  %v6260_v48 = vsel %vm950_vm5, %v981_v51, %v982_v12  ;;  %v996_v4 = vrot.slane %v6211_v32, 1  ;;  %v997_v28 = vrot.slane %v897_v37, 1  ;;  %4334 = vmatmul.mubr.msk.bf16.gmra.mrb[20].mxu0 %vm803_vm2, %v1590_v49 }
 0x18e   :  { %1280 = vst.msk [vmem:[#allocation5 + $0x110] sm:$0xff] %vm803_vm2, %v6248_v3  ;;  %v4398_v47 = vld [vmem:[%s7487_s2 + $0x70] sm:$0xff]   ;;  %1278 = vst.msk [vmem:[#allocation5 + $0xe0] sm:$0xff] %vm803_vm2, %v6260_v48  ;;  %v1111_v62 = vrot.slane %v897_v37, 2  ;;  %v1107_v27 = vrot.slane %v6245_v30, 2  ;;  %v6271_v11 = vsel %vm1064_vm4, %v1288_v13, %v1289_v20  ;;  %v990_v12 = vrot.slane %v6190_v59, 1  ;;  %3879 = vmatpush3.bf16.msra.mxu1 %v4397_v58 }
 0x18f   :  { %v1560_v51 = vld [vmem:[#allocation5 + $0xe8] sm:$0xff]  ;;  %v6275_v18 = vsel %vm950_vm5, %v996_v4, %v997_v28  ;;  %1529 = vst.msk [vmem:[#allocation5 + $0x160] sm:$0xff] %vm803_vm2, %v6271_v11  ;;  %v991_v49 = vrot.slane %v6192_v5, 1  ;;  %v1250_v2 = vrot.slane %v6233_v53, 1  ;;  %v1251_v37 = vrot.slane %v899_v44, 1  ;;  %1297 = vrot.lane.b32.xlu1 %v5980_v36, %s4448_s24  ;;  %3880 = vmatprep.subr.bf16.mxu1 %v4398_v47  ;;  %v4399_v5 = vld [vmem:[%s7487_s2 + $0x30] sm:$0xff]  }
 0x190   :  { %v6284_v20 = vsel %vm1064_vm4, %v1110_v35, %v1111_v62  ;;  %1283 = vst.msk [vmem:[#allocation5 + $0x158] sm:$0xff] %vm803_vm2, %v6275_v18  ;;  %v6289_v4 = vsel %vm1064_vm4, %v1107_v27, %v1108_v34  ;;  %v993_v44 = vrot.slane %v6245_v30, 1  ;;  %v994_v58 = vrot.slane %v895_v19, 1  ;;  %1121 = vrot.lane.b32.xlu0 %v5980_v36, %s4447_s19  ;;  %v4400_v19 = vld [vmem:[%s7487_s2 + $0x78] sm:$0xff]  }
 0x191   :  { %v1557_v13 = vld [vmem:[#allocation5 + $0xd0] sm:$0xff]  ;;  %1528 = vst.msk [vmem:[#allocation5 + $0x148] sm:$0xff] %vm803_vm2, %v6284_v20  ;;  %1527 = vst.msk [vmem:[#allocation5 + $0x130] sm:$0xff] %vm803_vm2, %v6289_v4  ;;  %v6302_v27 = vsel %vm950_vm5, %v990_v12, %v991_v49  ;;  %v6305_v34 = vsel %vm950_vm5, %v1250_v2, %v1251_v37  ;;  %v4401_v62 = vld [vmem:[%s7487_s2 + $0x38] sm:$0xff]  }
 0x192   :  { %v1593_v28 = vpack.c.bf16 %v1560_v51, %v1557_v13  ;;  %v1563_v35 = vld [vmem:[#allocation5 + $0x100] sm:$0xff]  ;;  %1281 = vst.msk [vmem:[#allocation5 + $0x128] sm:$0xff] %vm803_vm2, %v6302_v27  ;;  %1284 = vst.msk [vmem:[#allocation5 + $0x170] sm:$0xff] %vm803_vm2, %v6305_v34  ;;  %v6315_v36 = vsel %vm950_vm5, %v993_v44, %v994_v58  ;;  %3881 = vmatpush3.bf16.msra.mxu1 %v4399_v5  ;;  %v1578_v51 = vld [vmem:[#allocation5 + $0x178] sm:$0xff] }
 0x193   :  { %1282 = vst.msk [vmem:[#allocation5 + $0x140] sm:$0xff] %vm803_vm2, %v6315_v36  ;;  %1367 = vrot.lane.b32.xlu1 %v6008_v41, %s4447_s19  ;;  %3882 = vmatprep.subr.bf16.mxu1 %v4400_v19  ;;  %v4411_v58 = vld [vmem:[#allocation4 + $0x138] sm:$0x3] }
 0x194   :  { %4337 = vmatprep.mubr.msk.bf16.mxu0 %vm803_vm2, %v1593_v28  ;;  %v1566_v47 = vld [vmem:[#allocation5 + $0x118] sm:$0xff]  ;;  %1293 = vrot.lane.b32.xlu0 %v5987_v42, %s4448_s24  ;;  %v1427_v28 = vrot.slane %v4411_v58, 1 }
 0x195   :  { %v1596_v2 = vpack.c.bf16 %v1566_v47, %v1563_v35 }
 0x196   :  { %v1575_v12 = vld [vmem:[#allocation5 + $0x160] sm:$0xff]  ;;  %3883 = vmatpush3.bf16.msra.mxu1 %v4401_v62 }
 0x197   :  { %4338 = vmatmul.mubr.msk.bf16.gmra.mrb[24].mxu0 %vm803_vm2, %v1596_v2  ;;  %1363 = vrot.lane.b32.xlu1 %v6019_v39, %s4447_s19  ;;  %v1602_v5 = vpack.c.bf16 %v1578_v51, %v1575_v12 }
 0x198   :  { %v1569_v49 = vld [vmem:[#allocation5 + $0x130] sm:$0xff]  ;;  %v1572_v37 = vld [vmem:[#allocation5 + $0x148] sm:$0xff]  ;;  %1429 = vrot.lane.b32.xlu0 %v6030_v33, %s4449_s0  ;;  %3964 = vmatprep.subr.bf16.mxu1 %v4611_v24 }
 0x199   :  { %v1599_v13 = vpack.c.bf16 %v1572_v37, %v1569_v49 }
 0x19b   :  { %4341 = vmatprep.mubr.msk.bf16.mxu0 %vm803_vm2, %v1599_v13  ;;  %1194 = vrot.lane.b32.xlu1 %v6046_v40, %s4449_s0 }
 0x19c   :  { %1003 = vrot.lane.b32.xlu0 %v6030_v33, %s4448_s24 }
 0x19f   :  { %4342 = vmatmul.mubr.msk.bf16.gmra.mrb[28].mxu0 %vm803_vm2, %v1602_v5  ;;  %1439 = vrot.lane.b32.xlu1 %v6055_v6, %s4449_s0 }
 0x1a0   :  { %1117 = vrot.lane.b32.xlu0 %v5987_v42, %s4447_s19 }
 0x1a3   :  { %1190 = vrot.lane.b32.xlu1 %v6078_v38, %s4449_s0 }
 0x1a4   :  { %1192 = vrot.lane.b32.xlu0 %v6008_v41, %s4449_s0 }
 0x1a7   :  { %1013 = vrot.lane.b32.xlu1 %v6055_v6, %s4448_s24  ;;  %v1092_v6 = vrot.slane %v6170_v54, 2 }
 0x1a8   :  { %1188 = vrot.lane.b32.xlu0 %v6019_v39, %s4449_s0 }
 0x1ab   :  { %1127 = vrot.lane.b32.xlu1 %v6044_v52, %s4447_s19 }
 0x1ac   :  { %1369 = vrot.lane.b32.xlu0 %v6046_v40, %s4447_s19  ;;  %v6402_v40 = vpop.permute.xlu1 %1443 }
 0x1af   :  { %1435 = vrot.lane.b32.xlu1 %v6069_v63, %s4449_s0 }
 0x1b0   :  { %1365 = vrot.lane.b32.xlu0 %v6078_v38, %s4447_s19 }
 0x1b3   :  { %1009 = vrot.lane.b32.xlu1 %v6069_v63, %s4448_s24 }
 0x1b4   :  { %1303 = vrot.lane.b32.xlu0 %v6044_v52, %s4448_s24 }
 0x1b7   :  { %1123 = vrot.lane.b32.xlu1 %v6049_v15, %s4447_s19 }
 0x1b8   :  { %1299 = vrot.lane.b32.xlu0 %v6049_v15, %s4448_s24  ;;  %v1093_v15 = vrot.slane %v6182_v50, 2 }
 0x1ba   :  { %v1094_v41 = vsel %vm1064_vm4, %v1092_v6, %v1093_v15 }
 0x1bb   :  { %1305 = vrot.lane.b32.xlu1 %v6081_v7, %s4448_s24 }
 0x1bc   :  { %1441 = vrot.lane.b32.xlu0 %v6107_v23, %s4449_s0 }
 0x1bf   :  { %1301 = vrot.lane.b32.xlu1 %v6104_v56, %s4448_s24 }
 0x1c0   :  { %1437 = vrot.lane.b32.xlu0 %v6122_v14, %s4449_s0 }
 0x1c3   :  { %1375 = vrot.lane.b32.xlu1 %v6137_v45, %s4447_s19 }
 0x1c4   :  { %1011 = vrot.lane.b32.xlu0 %v6122_v14, %s4448_s24 }
 0x1c7   :  { %1202 = vrot.lane.b32.xlu1 %v6164_v43, %s4449_s0 }
 0x1c8   :  { %1125 = vrot.lane.b32.xlu0 %v6104_v56, %s4447_s19 }
 0x1cb   :  { %1447 = vrot.lane.b32.xlu1 %v6167_v31, %s4449_s0 }
 0x1cc   :  { %1200 = vrot.lane.b32.xlu0 %v6137_v45, %s4449_s0 }
 0x1cf   :  { %1198 = vrot.lane.b32.xlu1 %v6155_v60, %s4449_s0 }
 0x1d0   :  { %1196 = vrot.lane.b32.xlu0 %v6170_v54, %s4449_s0 }
 0x1d3   :  { %1021 = vrot.lane.b32.xlu1 %v6167_v31, %s4448_s24 }
 0x1d4   :  { %1377 = vrot.lane.b32.xlu0 %v6164_v43, %s4447_s19 }
 0x1d7   :  { %1135 = vrot.lane.b32.xlu1 %v6176_v22, %s4447_s19 }
 0x1d8   :  { %1373 = vrot.lane.b32.xlu0 %v6155_v60, %s4447_s19 }
 0x1db   :  { %1017 = vrot.lane.b32.xlu1 %v6221_v21, %s4448_s24 }
 0x1dc   :  { %1311 = vrot.lane.b32.xlu0 %v6176_v22, %s4448_s24 }
 0x1df   :  { %1131 = vrot.lane.b32.xlu1 %v1094_v41, %s4447_s19 }
 0x1e0   :  { %1307 = vrot.lane.b32.xlu0 %v1094_v41, %s4448_s24  ;;  %v6409_v42 = vpop.permute.xlu0 %1184  ;;  %v1360_v39 = vpop.permute.xlu1 %1359 }
 0x1e3   :  { %1313 = vrot.lane.b32.xlu1 %v6206_v57, %s4448_s24 }
 0x1e4   :  { %1449 = vrot.lane.b32.xlu0 %v6248_v3, %s4449_s0  ;;  %v1187_v33 = vpop.permute.xlu1 %1186  ;;  %v1181_v52 = vpop.permute.xlu0 %1180 }
 0x1e5   :  { %1229 = vst.msk [vmem:[#allocation5] sm:$0xff] %vm1228_vm8, %v1181_v52 }
 0x1e7   :  { %1309 = vrot.lane.b32.xlu1 %v6197_v29, %s4448_s24 }
 0x1e8   :  { %1023 = vrot.lane.b32.xlu0 %v6248_v3, %s4448_s24  ;;  %v1432_v63 = vpop.permute.xlu1 %1431 }
 0x1e9   :  { %v1362_v38 = vpop.permute.xlu0 %1361 }
 0x1eb   :  { %1383 = vrot.lane.b32.xlu1 %v6211_v32, %s4447_s19 }
 0x1ec   :  { %1137 = vrot.lane.b32.xlu0 %v6206_v57, %s4447_s19  ;;  %v1183_v7 = vpop.permute.xlu1 %1182  ;;  %v1531_v2 = vld [vmem:[#allocation5] sm:$0xff] }
 0x1ed   :  { %v1358_v56 = vpop.permute.xlu0 %1357 }
 0x1ef   :  { %1379 = vrot.lane.b32.xlu1 %v6190_v59, %s4447_s19 }
 0x1f0   :  { %1445 = vrot.lane.b32.xlu0 %v6260_v48, %s4449_s0  ;;  %v1006_v23 = vpop.permute.xlu1 %1005 }
 0x1f1   :  { %1051 = vst.msk [vmem:[#allocation5 + $0x48] sm:$0xff] %vm1047_vm6, %v1006_v23  ;;  %v1296_v3 = vpop.permute.xlu0 %1295 }
 0x1f2   :  { %1341 = vst.msk [vmem:[#allocation5 + $0x38] sm:$0xff] %vm1047_vm6, %v1296_v3 }
 0x1f3   :  { %1455 = vrot.lane.b32.xlu1 %v6275_v18, %s4449_s0  ;;  %1407 = vst.msk [vmem:[#allocation5 + $0x38] sm:$0xff] %vm1161_vm7, %v1362_v38 }
 0x1f4   :  { %1019 = vrot.lane.b32.xlu0 %v6260_v48, %s4448_s24  ;;  %v1120_v14 = vpop.permute.xlu1 %1119  ;;  %v4410_v48 = vld [vmem:[#allocation4 + $0x130] sm:$0xff] }
 0x1f5   :  { %1165 = vst.msk [vmem:[#allocation5 + $0x48] sm:$0xff] %vm1161_vm7, %v1120_v14  ;;  %v1426_v44 = vrot.slane %v4410_v48, 1 }
 0x1f6   :  { %v1292_v45 = vpop.permute.xlu0 %1291  ;;  %1232 = vst.msk [vmem:[#allocation5 + $0x48] sm:$0xff] %vm1228_vm8, %v1187_v33 }
 0x1f7   :  { %1339 = vst.msk [vmem:[#allocation5 + $0x8] sm:$0xff] %vm1047_vm6, %v1292_v45  ;;  %1206 = vrot.lane.b32.xlu1 %v6245_v30, %s4449_s0  ;;  %v1428_v62 = vsel %vm950_vm5, %v1426_v44, %v1427_v28 }
 0x1f8   :  { %1405 = vst.msk [vmem:[#allocation5 + $0x8] sm:$0xff] %vm1161_vm7, %v1358_v56  ;;  %1133 = vrot.lane.b32.xlu0 %v6197_v29, %s4447_s19  ;;  %v1002_v60 = vpop.permute.xlu1 %1001 }
 0x1f9   :  { %1049 = vst.msk [vmem:[#allocation5 + $0x18] sm:$0xff] %vm1047_vm6, %v1002_v60 }
 0x1fa   :  { %v1434_v43 = vpop.permute.xlu0 %1433 }
 0x1fb   :  { %1479 = vst.msk [vmem:[#allocation5 + $0x38] sm:$0xff] %vm1228_vm8, %v1434_v43  ;;  %1029 = vrot.lane.b32.xlu1 %v6275_v18, %s4448_s24 }
 0x1fc   :  { %1204 = vrot.lane.b32.xlu0 %v6190_v59, %s4449_s0 }
 0x1fd   :  { %v1116_v31 = vpop.permute.xlu1 %1115  ;;  %v1540_v33 = vld [vmem:[#allocation5 + $0x48] sm:$0xff] }
 0x1fe   :  { %v1008_v54 = vpop.permute.xlu0 %1007  ;;  %1163 = vst.msk [vmem:[#allocation5 + $0x18] sm:$0xff] %vm1161_vm7, %v1116_v31 }
 0x1ff   :  { %1052 = vst.msk [vmem:[#allocation5 + $0x60] sm:$0xff] %vm1047_vm6, %v1008_v54  ;;  %1451 = vrot.lane.b32.xlu1 %v6302_v27, %s4449_s0 }
 0x200   :  { %1230 = vst.msk [vmem:[#allocation5 + $0x18] sm:$0xff] %vm1228_vm8, %v1183_v7  ;;  %1385 = vrot.lane.b32.xlu0 %v6233_v53, %s4447_s19 }
 0x201   :  { %v1298_v29 = vpop.permute.xlu1 %1297 }
 0x202   :  { %v1122_v22 = vpop.permute.xlu0 %1121  ;;  %1342 = vst.msk [vmem:[#allocation5 + $0x50] sm:$0xff] %vm1047_vm6, %v1298_v29  ;;  %v1538_v41 = vld [vmem:[#allocation5 + $0x38] sm:$0xff] }
 0x203   :  { %1166 = vst.msk [vmem:[#allocation5 + $0x60] sm:$0xff] %vm1161_vm7, %v1122_v22  ;;  %1025 = vrot.lane.b32.xlu1 %v6302_v27, %s4448_s24 }
 0x204   :  { %1381 = vrot.lane.b32.xlu0 %v6245_v30, %s4447_s19 }
 0x205   :  { %v6462_v18 = vpop.permute.xlu1 %1367 }
 0x206   :  { %v1294_v50 = vpop.permute.xlu0 %1293 }
 0x207   :  { %1340 = vst.msk [vmem:[#allocation5 + $0x20] sm:$0xff] %vm1047_vm6, %v1294_v50  ;;  %1139 = vrot.lane.b32.xlu1 %v6231_v46, %s4447_s19 }
 0x208   :  { %1406 = vst.msk [vmem:[#allocation5 + $0x20] sm:$0xff] %vm1161_vm7, %v1360_v39  ;;  %1319 = vrot.lane.b32.xlu0 %v6284_v20, %s4448_s24 }
 0x209   :  { %1478 = vst.msk [vmem:[#allocation5 + $0x20] sm:$0xff] %vm1228_vm8, %v1432_v63  ;;  %v1364_v59 = vpop.permute.xlu1 %1363 }
 0x20a   :  { %v1430_v57 = vpop.permute.xlu0 %1429  ;;  %1408 = vst.msk [vmem:[#allocation5 + $0x50] sm:$0xff] %vm1161_vm7, %v1364_v59 }
 0x20b   :  { %1477 = vst.msk [vmem:[#allocation5 + $0x8] sm:$0xff] %vm1228_vm8, %v1430_v57  ;;  %1321 = vrot.lane.b32.xlu1 %v6271_v11, %s4448_s24  ;;  %v1534_v11 = vld [vmem:[#allocation5 + $0x18] sm:$0xff] }
 0x20c   :  { %1315 = vrot.lane.b32.xlu0 %v6231_v46, %s4448_s24 }
 0x20d   :  { %v1195_v21 = vpop.permute.xlu1 %1194 }
 0x20e   :  { %v1004_v30 = vpop.permute.xlu0 %1003 }
 0x20f   :  { %1050 = vst.msk [vmem:[#allocation5 + $0x30] sm:$0xff] %vm1047_vm6, %v1004_v30  ;;  %1317 = vrot.lane.b32.xlu1 %v6289_v4, %s4448_s24 }
 0x210   :  { %1457 = vrot.lane.b32.xlu0 %v6305_v34, %s4449_s0  ;;  %v1535_v46 = vld [vmem:[#allocation5 + $0x20] sm:$0xff]  ;;  %v1579_v34 = vpack.c.bf16 %v1534_v11, %v1531_v2 }
 0x211   :  { %v6482_v35 = vpop.permute.xlu1 %1439 }
 0x212   :  { %v1118_v27 = vpop.permute.xlu0 %1117  ;;  %v1532_v19 = vld [vmem:[#allocation5 + $0x8] sm:$0xff] }
 0x213   :  { %1164 = vst.msk [vmem:[#allocation5 + $0x30] sm:$0xff] %vm1161_vm7, %v1118_v27  ;;  %1143 = vrot.lane.b32.xlu1 %v6284_v20, %s4447_s19  ;;  %v1580_v47 = vpack.c.bf16 %v1535_v46, %v1532_v19 }
 0x214   :  { %1231 = vst.msk [vmem:[#allocation5 + $0x30] sm:$0xff] %vm1228_vm8, %v6409_v42  ;;  %1453 = vrot.lane.b32.xlu0 %v6315_v36, %s4449_s0 }
 0x215   :  { %1809 = vmatprep.mubr.bf16.mxu1 %v1580_v47  ;;  %v1191_v12 = vpop.permute.xlu1 %1190 }
 0x216   :  { %v1193_v51 = vpop.permute.xlu0 %1192  ;;  %1810 = vmatmul.mubr.bf16.vlgmr.msra.gmra.mrb[0].mxu1 %v1579_v34 }
 0x217   :  { %1459 = vrot.lane.b32.xlu1 %v1428_v62, %s4449_s0 }
 0x218   :  { %1027 = vrot.lane.b32.xlu0 %v6315_v36, %s4448_s24 }
 0x219   :  { %v1014_v20 = vpop.permute.xlu1 %1013 }
 0x21a   :  { %v1189_v49 = vpop.permute.xlu0 %1188  ;;  %1055 = vst.msk [vmem:[#allocation5 + $0xa8] sm:$0xff] %vm1047_vm6, %v1014_v20 }
 0x21b   :  { %1233 = vst.msk [vmem:[#allocation5 + $0x60] sm:$0xff] %vm1228_vm8, %v1189_v49  ;;  %1210 = vrot.lane.b32.xlu1 %v6233_v53, %s4449_s0  ;;  %v1537_v53 = vld [vmem:[#allocation5 + $0x30] sm:$0xff] }
 0x21c   :  { %1141 = vrot.lane.b32.xlu0 %v6289_v4, %s4447_s19  ;;  %v1582_v52 = vpack.c.bf16 %v1540_v33, %v1537_v53 }
 0x21d   :  { %v1128_v37 = vpop.permute.xlu1 %1127 }
 0x21e   :  { %v1370_v13 = vpop.permute.xlu0 %1369  ;;  %1169 = vst.msk [vmem:[#allocation5 + $0xa8] sm:$0xff] %vm1161_vm7, %v1128_v37 }
 0x21f   :  { %1236 = vst.msk [vmem:[#allocation5 + $0xa8] sm:$0xff] %vm1228_vm8, %v1195_v21 }
 0x220   :  { %1208 = vrot.lane.b32.xlu0 %v6211_v32, %s4449_s0 }
 0x221   :  { %v1436_v36 = vpop.permute.xlu1 %1435 }
 0x222   :  { %v1366_v5 = vpop.permute.xlu0 %1365  ;;  %1480 = vst.msk [vmem:[#allocation5 + $0x50] sm:$0xff] %vm1228_vm8, %v1436_v36  ;;  %v1543_v54 = vld [vmem:[#allocation5 + $0x60] sm:$0xff] }
 0x225   :  { %v1010_v6 = vpop.permute.xlu1 %1009 }
 0x226   :  { %v1304_v15 = vpop.permute.xlu0 %1303  ;;  %1053 = vst.msk [vmem:[#allocation5 + $0x78] sm:$0xff] %vm1047_vm6, %v1010_v6  ;;  %v1552_v48 = vld [vmem:[#allocation5 + $0xa8] sm:$0xff] }
 0x227   :  { %1345 = vst.msk [vmem:[#allocation5 + $0x98] sm:$0xff] %vm1047_vm6, %v1304_v15 }
 0x228   :  { %1411 = vst.msk [vmem:[#allocation5 + $0x98] sm:$0xff] %vm1161_vm7, %v1370_v13 }
 0x229   :  { %v1124_v4 = vpop.permute.xlu1 %1123  ;;  %v1541_v42 = vld [vmem:[#allocation5 + $0x50] sm:$0xff] }
 0x22a   :  { %v1300_v39 = vpop.permute.xlu0 %1299  ;;  %1167 = vst.msk [vmem:[#allocation5 + $0x78] sm:$0xff] %vm1161_vm7, %v1124_v4  ;;  %v1583_v32 = vpack.c.bf16 %v1541_v42, %v1538_v41 }
 0x22b   :  { %1343 = vst.msk [vmem:[#allocation5 + $0x68] sm:$0xff] %vm1047_vm6, %v1300_v39 }
 0x22c   :  { %1234 = vst.msk [vmem:[#allocation5 + $0x78] sm:$0xff] %vm1228_vm8, %v1191_v12  ;;  %1817 = vmatprep.mubr.bf16.mxu1 %v1583_v32 }
 0x22d   :  { %1409 = vst.msk [vmem:[#allocation5 + $0x68] sm:$0xff] %vm1161_vm7, %v1366_v5  ;;  %v1306_v63 = vpop.permute.xlu1 %1305  ;;  %1818 = vmatmul.mubr.bf16.gmra.mrb[4].mxu1 %v1582_v52 }
 0x22e   :  { %v1442_v38 = vpop.permute.xlu0 %1441  ;;  %1346 = vst.msk [vmem:[#allocation5 + $0xb0] sm:$0xff] %vm1047_vm6, %v1306_v63 }
 0x22f   :  { %1483 = vst.msk [vmem:[#allocation5 + $0x98] sm:$0xff] %vm1228_vm8, %v1442_v38 }
 0x230   :  { %1412 = vst.msk [vmem:[#allocation5 + $0xb0] sm:$0xff] %vm1161_vm7, %v5925_v61 }
 0x231   :  { %1484 = vst.msk [vmem:[#allocation5 + $0xb0] sm:$0xff] %vm1228_vm8, %v6402_v40  ;;  %v1302_v7 = vpop.permute.xlu1 %1301 }
 0x232   :  { %v1438_v56 = vpop.permute.xlu0 %1437  ;;  %1344 = vst.msk [vmem:[#allocation5 + $0x80] sm:$0xff] %vm1047_vm6, %v1302_v7 }
 0x233   :  { %1481 = vst.msk [vmem:[#allocation5 + $0x68] sm:$0xff] %vm1228_vm8, %v1438_v56  ;;  %v1546_v45 = vld [vmem:[#allocation5 + $0x78] sm:$0xff] }
 0x234   :  { %1410 = vst.msk [vmem:[#allocation5 + $0x80] sm:$0xff] %vm1161_vm7, %v6462_v18  ;;  %v1585_v22 = vpack.c.bf16 %v1546_v45, %v1543_v54 }
 0x235   :  { %1482 = vst.msk [vmem:[#allocation5 + $0x80] sm:$0xff] %vm1228_vm8, %v6482_v35  ;;  %v1376_v23 = vpop.permute.xlu1 %1375 }
 0x236   :  { %v1012_v3 = vpop.permute.xlu0 %1011  ;;  %v1550_v18 = vld [vmem:[#allocation5 + $0x98] sm:$0xff] }
 0x237   :  { %1054 = vst.msk [vmem:[#allocation5 + $0x90] sm:$0xff] %vm1047_vm6, %v1012_v3 }
 0x238   :  { %v1553_v43 = vld [vmem:[#allocation5 + $0xb0] sm:$0xff] }
 0x239   :  { %v1203_v61 = vpop.permute.xlu1 %1202  ;;  %v1589_v59 = vpack.c.bf16 %v1553_v43, %v1550_v18 }
 0x23a   :  { %v1126_v14 = vpop.permute.xlu0 %1125  ;;  %v1544_v40 = vld [vmem:[#allocation5 + $0x68] sm:$0xff] }
 0x23b   :  { %1168 = vst.msk [vmem:[#allocation5 + $0x90] sm:$0xff] %vm1161_vm7, %v1126_v14 }
 0x23c   :  { %v1547_v60 = vld [vmem:[#allocation5 + $0x80] sm:$0xff]  ;;  %1235 = vst.msk [vmem:[#allocation5 + $0x90] sm:$0xff] %vm1228_vm8, %v1193_v51 }
 0x23d   :  { %v1586_v31 = vpack.c.bf16 %v1547_v60, %v1544_v40  ;;  %v1448_v29 = vpop.permute.xlu1 %1447 }
 0x23e   :  { %v6528_v50 = vpop.permute.xlu0 %1200 }
 0x23f   :  { %1825 = vmatprep.mubr.bf16.mxu1 %v1586_v31 }
 0x240   :  { %1826 = vmatmul.mubr.bf16.gmra.mrb[8].mxu1 %v1585_v22 }
 0x241   :  { %1833 = vmatprep.mubr.bf16.mxu1 %v1589_v59  ;;  %v1199_v57 = vpop.permute.xlu1 %1198 }
 0x242   :  { %v1197_v21 = vpop.permute.xlu0 %1196 }
 0x243   :  { %1237 = vst.msk [vmem:[#allocation5 + $0xc0] sm:$0xff] %vm1228_vm8, %v1197_v21  ;;  %v1549_v30 = vld [vmem:[#allocation5 + $0x90] sm:$0xff] }
 0x244   :  { %v1588_v58 = vpack.c.bf16 %v1552_v48, %v1549_v30 }
 0x245   :  { %v1022_v44 = vpop.permute.xlu1 %1021 }
 0x246   :  { %v1378_v28 = vpop.permute.xlu0 %1377  ;;  %1059 = vst.msk [vmem:[#allocation5 + $0x108] sm:$0xff] %vm1047_vm6, %v1022_v44 }
 0x248   :  { %1834 = vmatmul.mubr.bf16.gmra.mrb[12].mxu1 %v1588_v58 }
 0x249   :  { %v1136_v35 = vpop.permute.xlu1 %1135 }
 0x24a   :  { %v1374_v11 = vpop.permute.xlu0 %1373  ;;  %1173 = vst.msk [vmem:[#allocation5 + $0x108] sm:$0xff] %vm1161_vm7, %v1136_v35 }
 0x24b   :  { %1240 = vst.msk [vmem:[#allocation5 + $0x108] sm:$0xff] %vm1228_vm8, %v1203_v61  ;;  %v1555_v61 = vld [vmem:[#allocation5 + $0xc0] sm:$0xff] }
 0x24d   :  { %v1018_v27 = vpop.permute.xlu1 %1017 }
 0x24e   :  { %v1312_v19 = vpop.permute.xlu0 %1311  ;;  %1057 = vst.msk [vmem:[#allocation5 + $0xd8] sm:$0xff] %vm1047_vm6, %v1018_v27 }
 0x24f   :  { %1349 = vst.msk [vmem:[#allocation5 + $0xf8] sm:$0xff] %vm1047_vm6, %v1312_v19 }
 0x250   :  { %1415 = vst.msk [vmem:[#allocation5 + $0xf8] sm:$0xff] %vm1161_vm7, %v1378_v28 }
 0x251   :  { %v1132_v46 = vpop.permute.xlu1 %1131 }
 0x252   :  { %v1308_v47 = vpop.permute.xlu0 %1307  ;;  %1171 = vst.msk [vmem:[#allocation5 + $0xd8] sm:$0xff] %vm1161_vm7, %v1132_v46  ;;  %v1564_v28 = vld [vmem:[#allocation5 + $0x108] sm:$0xff] }
 0x253   :  { %1347 = vst.msk [vmem:[#allocation5 + $0xc8] sm:$0xff] %vm1047_vm6, %v1308_v47 }
 0x254   :  { %1238 = vst.msk [vmem:[#allocation5 + $0xd8] sm:$0xff] %vm1228_vm8, %v1199_v57 }
 0x255   :  { %1413 = vst.msk [vmem:[#allocation5 + $0xc8] sm:$0xff] %vm1161_vm7, %v1374_v11  ;;  %v1314_v2 = vpop.permute.xlu1 %1313 }
 0x256   :  { %v1450_v34 = vpop.permute.xlu0 %1449  ;;  %1350 = vst.msk [vmem:[#allocation5 + $0x110] sm:$0xff] %vm1047_vm6, %v1314_v2 }
 0x257   :  { %1487 = vst.msk [vmem:[#allocation5 + $0xf8] sm:$0xff] %vm1228_vm8, %v1450_v34  ;;  %v6543_v62 = vpop.f32.mrb[16].mxu0 }
 0x258   :  { %v6545_v12 = vpop.f32.mrb[17].mxu0 }
 0x259   :  { %v1310_v51 = vpop.permute.xlu1 %1309  ;;  %v6548_v49 = vpop.f32.mrb[18].mxu0 }
 0x25a   :  { %v1024_v20 = vpop.permute.xlu0 %1023  ;;  %1348 = vst.msk [vmem:[#allocation5 + $0xe0] sm:$0xff] %vm1047_vm6, %v1310_v51  ;;  %v6552_v37 = vpop.f32.mrb[19].mxu0 }
 0x25b   :  { %1060 = vst.msk [vmem:[#allocation5 + $0x120] sm:$0xff] %vm1047_vm6, %v1024_v20  ;;  %v1558_v52 = vld [vmem:[#allocation5 + $0xd8] sm:$0xff] }
 0x25c   :  { %1414 = vst.msk [vmem:[#allocation5 + $0xe0] sm:$0xff] %vm1161_vm7, %v1376_v23  ;;  %v1591_v45 = vpack.c.bf16 %v1558_v52, %v1555_v61 }
 0x25d   :  { %1486 = vst.msk [vmem:[#allocation5 + $0xe0] sm:$0xff] %vm1228_vm8, %v1448_v29  ;;  %v6555_v13 = vpop.permute.xlu1 %1383 }
 0x25e   :  { %v1138_v36 = vpop.permute.xlu0 %1137  ;;  %v1562_v30 = vld [vmem:[#allocation5 + $0xf8] sm:$0xff] }
 0x25f   :  { %1174 = vst.msk [vmem:[#allocation5 + $0x120] sm:$0xff] %vm1161_vm7, %v1138_v36 }
 0x260   :  { %v6558_v5 = vpop.f32.mrb[20].mxu0 }
 0x261   :  { %v1380_v6 = vpop.permute.xlu1 %1379  ;;  %v6560_v15 = vpop.f32.mrb[21].mxu0 }
 0x262   :  { %v1446_v53 = vpop.permute.xlu0 %1445  ;;  %1416 = vst.msk [vmem:[#allocation5 + $0x110] sm:$0xff] %vm1161_vm7, %v1380_v6  ;;  %v6563_v4 = vpop.f32.mrb[22].mxu0 }
 0x263   :  { %1485 = vst.msk [vmem:[#allocation5 + $0xc8] sm:$0xff] %vm1228_vm8, %v1446_v53  ;;  %v6566_v41 = vpop.f32.mrb[23].mxu0 }
 0x264   :  { %v1559_v56 = vld [vmem:[#allocation5 + $0xe0] sm:$0xff] }
 0x265   :  { %v1456_v42 = vpop.permute.xlu1 %1455 }
 0x266   :  { %v1020_v39 = vpop.permute.xlu0 %1019 }
 0x267   :  { %1058 = vst.msk [vmem:[#allocation5 + $0xf0] sm:$0xff] %vm1047_vm6, %v1020_v39 }
 0x269   :  { %v1207_v33 = vpop.permute.xlu1 %1206 }
 0x26a   :  { %v6569_v32 = vpop.f32.mrb[24].mxu0  ;;  %v1134_v38 = vpop.permute.xlu0 %1133  ;;  %v1556_v7 = vld [vmem:[#allocation5 + $0xc8] sm:$0xff] }
 0x26b   :  { %v6571_v63 = vpop.f32.mrb[25].mxu0  ;;  %1172 = vst.msk [vmem:[#allocation5 + $0xf0] sm:$0xff] %vm1161_vm7, %v1134_v38  ;;  %v1592_v3 = vpack.c.bf16 %v1559_v56, %v1556_v7 }
 0x26c   :  { %v6573_v23 = vpop.f32.mrb[26].mxu0  ;;  %1239 = vst.msk [vmem:[#allocation5 + $0xf0] sm:$0xff] %vm1228_vm8, %v6528_v50 }
 0x26d   :  { %v6576_v14 = vpop.f32.mrb[27].mxu0  ;;  %1841 = vmatprep.mubr.bf16.mxu1 %v1592_v3  ;;  %v1030_v40 = vpop.permute.xlu1 %1029 }
 0x26e   :  { %v1205_v60 = vpop.permute.xlu0 %1204  ;;  %1063 = vst.msk [vmem:[#allocation5 + $0x168] sm:$0xff] %vm1047_vm6, %v1030_v40  ;;  %1842 = vmatmul.mubr.bf16.gmra.mrb[16].mxu1 %v1591_v45  ;;  %v6616_v40 = vld [vmem:[%s7490_s5 + $0x1] ss:$0 sm:$0xff] }
 0x26f   :  { %1241 = vst.msk [vmem:[#allocation5 + $0x120] sm:$0xff] %vm1228_vm8, %v1205_v60 }
 0x271   :  { %v1452_v31 = vpop.permute.xlu1 %1451 }
 0x272   :  { %v6582_v43 = vpop.f32.mrb[28].mxu0  ;;  %v1386_v29 = vpop.permute.xlu0 %1385  ;;  %1488 = vst.msk [vmem:[#allocation5 + $0x110] sm:$0xff] %vm1228_vm8, %v1452_v31 }
 0x273   :  { %v6584_v54 = vpop.f32.mrb[29].mxu0  ;;  %v1561_v57 = vld [vmem:[#allocation5 + $0xf0] sm:$0xff] }
 0x274   :  { %v6587_v22 = vpop.f32.mrb[30].mxu0  ;;  %v1594_v35 = vpack.c.bf16 %v1564_v28, %v1561_v57 }
 0x275   :  { %v6589_v18 = vpop.f32.mrb[31].mxu0  ;;  %v1026_v50 = vpop.permute.xlu1 %1025 }
 0x276   :  { %v1382_v59 = vpop.permute.xlu0 %1381  ;;  %1061 = vst.msk [vmem:[#allocation5 + $0x138] sm:$0xff] %vm1047_vm6, %v1026_v50 }
 0x279   :  { %v1140_v21 = vpop.permute.xlu1 %1139  ;;  %v1565_v48 = vld [vmem:[#allocation5 + $0x110] sm:$0xff] }
 0x27a   :  { %v1320_v44 = vpop.permute.xlu0 %1319  ;;  %1175 = vst.msk [vmem:[#allocation5 + $0x138] sm:$0xff] %vm1161_vm7, %v1140_v21  ;;  %v1595_v58 = vpack.c.bf16 %v1565_v48, %v1562_v30 }
 0x27b   :  { %1353 = vst.msk [vmem:[#allocation5 + $0x158] sm:$0xff] %vm1047_vm6, %v1320_v44 }
 0x27c   :  { %1242 = vst.msk [vmem:[#allocation5 + $0x138] sm:$0xff] %vm1228_vm8, %v1207_v33  ;;  %1849 = vmatprep.mubr.bf16.mxu1 %v1595_v58 }
 0x27d   :  { %1419 = vst.msk [vmem:[#allocation5 + $0x158] sm:$0xff] %vm1161_vm7, %v1386_v29  ;;  %v1322_v11 = vpop.permute.xlu1 %1321  ;;  %1850 = vmatmul.mubr.bf16.gmra.mrb[20].mxu1 %v1594_v35 }
 0x27e   :  { %v1316_v27 = vpop.permute.xlu0 %1315  ;;  %1354 = vst.msk [vmem:[#allocation5 + $0x170] sm:$0xff] %vm1047_vm6, %v1322_v11 }
 0x27f   :  { %1351 = vst.msk [vmem:[#allocation5 + $0x128] sm:$0xff] %vm1047_vm6, %v1316_v27 }
 0x280   :  { %1420 = vst.msk [vmem:[#allocation5 + $0x170] sm:$0xff] %vm1161_vm7, %v5927_v55  ;;  %1417 = vst.msk [vmem:[#allocation5 + $0x128] sm:$0xff] %vm1161_vm7, %v1382_v59 }
 0x281   :  { %v1318_v19 = vpop.permute.xlu1 %1317 }
 0x282   :  { %v1458_v46 = vpop.permute.xlu0 %1457  ;;  %1352 = vst.msk [vmem:[#allocation5 + $0x140] sm:$0xff] %vm1047_vm6, %v1318_v19 }
 0x283   :  { %1491 = vst.msk [vmem:[#allocation5 + $0x158] sm:$0xff] %vm1228_vm8, %v1458_v46  ;;  %v1570_v20 = vld [vmem:[#allocation5 + $0x138] sm:$0xff] }
 0x284   :  { %1418 = vst.msk [vmem:[#allocation5 + $0x140] sm:$0xff] %vm1161_vm7, %v6555_v13 }
 0x285   :  { %1490 = vst.msk [vmem:[#allocation5 + $0x140] sm:$0xff] %vm1228_vm8, %v1456_v42  ;;  %v1144_v47 = vpop.permute.xlu1 %1143  ;;  %v1567_v42 = vld [vmem:[#allocation5 + $0x120] sm:$0xff] }
 0x286   :  { %v1454_v2 = vpop.permute.xlu0 %1453  ;;  %1177 = vst.msk [vmem:[#allocation5 + $0x168] sm:$0xff] %vm1161_vm7, %v1144_v47  ;;  %v1597_v39 = vpack.c.bf16 %v1570_v20, %v1567_v42 }
 0x287   :  { %1489 = vst.msk [vmem:[#allocation5 + $0x128] sm:$0xff] %vm1228_vm8, %v1454_v2 }
 0x289   :  { %v1460_v55 = vpop.permute.xlu1 %1459 }
 0x28a   :  { %v1028_v34 = vpop.permute.xlu0 %1027  ;;  %1492 = vst.msk [vmem:[#allocation5 + $0x170] sm:$0xff] %vm1228_vm8, %v1460_v55  ;;  %v1574_v33 = vld [vmem:[#allocation5 + $0x158] sm:$0xff] }
 0x28b   :  { %1062 = vst.msk [vmem:[#allocation5 + $0x150] sm:$0xff] %vm1047_vm6, %v1028_v34 }
 0x28c   :  { %v1571_v6 = vld [vmem:[#allocation5 + $0x140] sm:$0xff] }
 0x28d   :  { %v1211_v51 = vpop.permute.xlu1 %1210 }
 0x28e   :  { %v1142_v36 = vpop.permute.xlu0 %1141  ;;  %1244 = vst.msk [vmem:[#allocation5 + $0x168] sm:$0xff] %vm1228_vm8, %v1211_v51  ;;  %v1568_v13 = vld [vmem:[#allocation5 + $0x128] sm:$0xff] }
 0x28f   :  { %1176 = vst.msk [vmem:[#allocation5 + $0x150] sm:$0xff] %vm1161_vm7, %v1142_v36  ;;  %v1598_v53 = vpack.c.bf16 %v1571_v6, %v1568_v13 }
 0x291   :  { %1857 = vmatprep.mubr.bf16.mxu1 %v1598_v53  ;;  %v1577_v52 = vld [vmem:[#allocation5 + $0x170] sm:$0xff] }
 0x292   :  { %v1209_v38 = vpop.permute.xlu0 %1208  ;;  %1858 = vmatmul.mubr.bf16.gmra.mrb[24].mxu1 %v1597_v39  ;;  %v1601_v7 = vpack.c.bf16 %v1577_v52, %v1574_v33 }
 0x293   :  { %1243 = vst.msk [vmem:[#allocation5 + $0x150] sm:$0xff] %vm1228_vm8, %v1209_v38 }
 0x294   :  { %1865 = vmatprep.mubr.bf16.mxu1 %v1601_v7 }
 0x295   :  { %v1576_v3 = vld [vmem:[#allocation5 + $0x168] sm:$0xff] }
 0x29a   :  { %v1573_v56 = vld [vmem:[#allocation5 + $0x150] sm:$0xff] }
 0x29b   :  { %v1600_v61 = vpack.c.bf16 %v1576_v3, %v1573_v56 }
 0x29d   :  { %1866 = vmatmul.mubr.bf16.gmra.mrb[28].mxu1 %v1600_v61 }
 0x2e9   :  { %v3884_v45 = vpop.f32.mrb[0].mxu1 }
 0x2ea   :  { %v3885_v60 = vpop.f32.mrb[1].mxu1 }
 0x2eb   :  { %v3886_v31 = vadd.f32 %v3885_v60, %v3884_v45  ;;  %v3887_v29 = vpop.f32.mrb[2].mxu1 }
 0x2ec   :  { %v3888_v50 = vpop.f32.mrb[3].mxu1 }
 0x2ed   :  { %v1812_v59 = vadd.f32 %v3886_v31, %v6616_v40  ;;  %v3889_v57 = vadd.f32 %v3888_v50, %v3887_v29 }
 0x2ef   :  { %v1909_v21 = vadd.f32 %v6545_v12, %v1812_v59  ;;  %v1815_v30 = vadd.f32 %v3889_v57, %v6616_v40 }
 0x2f1   :  { %v1912_v48 = vadd.f32 %v6552_v37, %v1815_v30  ;;  %v1971_v31 = vmax.f32 %v1909_v21, 0.0 }
 0x2f3   :  { %v1972_v59 = vmax.f32 %v1912_v48, 0.0 }
 0x300   :  { %v3890_v44 = vpop.f32.mrb[4].mxu1 }
 0x301   :  { %v3891_v58 = vpop.f32.mrb[5].mxu1 }
 0x302   :  { %v3892_v28 = vadd.f32 %v3891_v58, %v3890_v44  ;;  %v3893_v35 = vpop.f32.mrb[6].mxu1 }
 0x303   :  { %v3894_v11 = vpop.f32.mrb[7].mxu1 }
 0x304   :  { %v1820_v27 = vadd.f32 %v3892_v28, %v6616_v40  ;;  %v3895_v19 = vadd.f32 %v3894_v11, %v3893_v35  ;;  %v2064_v35 = vrot.slane %v1972_v59, 1 }
 0x306   :  { %v6624_v46 = vadd.f32 %v6543_v62, %v1820_v27  ;;  %v1823_v47 = vadd.f32 %v3895_v19, %v6616_v40 }
 0x308   :  { %v6628_v2 = vadd.f32 %v6548_v49, %v1823_v47 }
 0x313   :  { %v3896_v12 = vpop.f32.mrb[8].mxu1 }
 0x314   :  { %v3897_v55 = vpop.f32.mrb[9].mxu1 }
 0x315   :  { %v3898_v34 = vadd.f32 %v3897_v55, %v3896_v12  ;;  %v3899_v37 = vpop.f32.mrb[10].mxu1 }
 0x316   :  { %v3900_v51 = vpop.f32.mrb[11].mxu1 }
 0x317   :  { %v1828_v20 = vadd.f32 %v3898_v34, %v6616_v40  ;;  %v3901_v36 = vadd.f32 %v3900_v51, %v3899_v37 }
 0x319   :  { %v6632_v13 = vadd.f32 %v6560_v15, %v1828_v20  ;;  %v1831_v6 = vadd.f32 %v3901_v36, %v6616_v40 }
 0x31b   :  { %v6636_v62 = vadd.f32 %v6566_v41, %v1831_v6  ;;  %v3902_v53 = vpop.f32.mrb[12].mxu1 }
 0x31c   :  { %v3903_v42 = vpop.f32.mrb[13].mxu1 }
 0x31d   :  { %v3904_v49 = vadd.f32 %v3903_v42, %v3902_v53  ;;  %v3905_v39 = vpop.f32.mrb[14].mxu1 }
 0x31e   :  { %v3906_v33 = vpop.f32.mrb[15].mxu1 }
 0x31f   :  { %v1836_v52 = vadd.f32 %v3904_v49, %v6616_v40  ;;  %v3907_v38 = vadd.f32 %v3906_v33, %v3905_v39  ;;  %v1973_v39 = vmax.f32 %v6624_v46, 0.0 }
 0x321   :  { %v6640_v7 = vadd.f32 %v6558_v5, %v1836_v52  ;;  %v1839_v56 = vadd.f32 %v3907_v38, %v6616_v40 }
 0x323   :  { %v6644_v15 = vadd.f32 %v6563_v4, %v1839_v56  ;;  %v1993_v4 = vrot.slane %v1971_v31, 1  ;;  %v1974_v56 = vmax.f32 %v6628_v2, 0.0 }
 0x341   :  { %v3908_v3 = vpop.f32.mrb[16].mxu1 }
 0x342   :  { %v3909_v61 = vpop.f32.mrb[17].mxu1 }
 0x343   :  { %v3910_v41 = vadd.f32 %v3909_v61, %v3908_v3  ;;  %v3911_v45 = vpop.f32.mrb[18].mxu1 }
 0x344   :  { %v3912_v60 = vpop.f32.mrb[19].mxu1 }
 0x345   :  { %v1844_v29 = vadd.f32 %v3910_v41, %v6616_v40  ;;  %v3913_v50 = vadd.f32 %v3912_v60, %v3911_v45  ;;  %v2131_v60 = vrot.slane %v1973_v39, 1 }
 0x347   :  { %v1941_v57 = vadd.f32 %v6571_v63, %v1844_v29  ;;  %v1847_v5 = vadd.f32 %v3913_v50, %v6616_v40 }
 0x349   :  { %v1979_v30 = vmax.f32 %v1941_v57, 0.0  ;;  %v1944_v44 = vadd.f32 %v6576_v14, %v1847_v5 }
 0x34b   :  { %v1980_v58 = vmax.f32 %v1944_v44, 0.0  ;;  %v2042_v28 = vsel %vm2039_vm9, %v1979_v30, %v1993_v4  ;;  %v1989_v21 = vrot.slane %v1979_v30, 7  ;;  %v2004_v19 = vsel %vm2001_vm10, %v1979_v30, %v1993_v4 }
 0x34c   :  { %2043 = vrot.lane.b32.xlu0 %v2042_v28, %s4447_s19  ;;  %v2023_v49 = vsel %vm2020_vm11, %v1979_v30, %v1993_v4  ;;  %v1994_v41 = vsel %vm1990_vm12, %v1979_v30, %v1993_v4 }
 0x34d   :  { %v2109_v11 = vsel %vm2039_vm9, %v1980_v58, %v2064_v35  ;;  %v6655_v63 = vsel %vm2039_vm9, %v1989_v21, %v1971_v31  ;;  %v2061_v48 = vrot.slane %v1980_v58, 7  ;;  %v6658_v14 = vsel %vm2001_vm10, %v1989_v21, %v1971_v31 }
 0x34e   :  { %2110 = vrot.lane.b32.xlu1 %v2109_v11, %s4447_s19  ;;  %v6661_v27 = vsel %vm2020_vm11, %v1989_v21, %v1971_v31  ;;  %v6665_v47 = vsel %vm1990_vm12, %v1989_v21, %v1971_v31  ;;  %v2073_v36 = vsel %vm2001_vm10, %v1980_v58, %v2064_v35  ;;  %v2091_v38 = vsel %vm2020_vm11, %v1980_v58, %v2064_v35 }
 0x34f   :  { %v6669_v55 = vsel %vm2039_vm9, %v2061_v48, %v1972_v59  ;;  %v6672_v34 = vsel %vm2001_vm10, %v2061_v48, %v1972_v59  ;;  %v6675_v37 = vsel %vm2020_vm11, %v2061_v48, %v1972_v59  ;;  %v6678_v51 = vsel %vm1990_vm12, %v2061_v48, %v1972_v59 }
 0x350   :  { %2005 = vrot.lane.b32.xlu0 %v2004_v19, %s4447_s19  ;;  %v3914_v12 = vpop.f32.mrb[20].mxu1  ;;  %v2065_v31 = vsel %vm1990_vm12, %v1980_v58, %v2064_v35 }
 0x351   :  { %v3915_v20 = vpop.f32.mrb[21].mxu1 }
 0x352   :  { %v3916_v6 = vadd.f32 %v3915_v20, %v3914_v12  ;;  %2074 = vrot.lane.b32.xlu1 %v2073_v36, %s4447_s19  ;;  %v3917_v53 = vpop.f32.mrb[22].mxu1 }
 0x353   :  { %v3918_v42 = vpop.f32.mrb[23].mxu1 }
 0x354   :  { %v1852_v33 = vadd.f32 %v3916_v6, %v6616_v40  ;;  %v3919_v52 = vadd.f32 %v3918_v42, %v3917_v53  ;;  %2024 = vrot.lane.b32.xlu0 %v2023_v49, %s4447_s19  ;;  %v1975_v49 = vmax.f32 %v6632_v13, 0.0 }
 0x356   :  { %v1949_v3 = vadd.f32 %v6569_v32, %v1852_v33  ;;  %v1855_v61 = vadd.f32 %v3919_v52, %v6616_v40  ;;  %2092 = vrot.lane.b32.xlu1 %v2091_v38, %s4447_s19  ;;  %v2198_v32 = vrot.slane %v1974_v56, 1  ;;  %v1976_v38 = vmax.f32 %v6636_v62, 0.0 }
 0x358   :  { %v1981_v45 = vmax.f32 %v1949_v3, 0.0  ;;  %v1952_v46 = vadd.f32 %v6573_v23, %v1855_v61  ;;  %1995 = vrot.lane.b32.xlu0 %v1994_v41, %s4447_s19 }
 0x35a   :  { %v1982_v29 = vmax.f32 %v1952_v46, 0.0  ;;  %2066 = vrot.lane.b32.xlu1 %v2065_v31, %s4447_s19  ;;  %v2176_v2 = vsel %vm2039_vm9, %v1981_v45, %v2131_v60  ;;  %v2128_v50 = vrot.slane %v1981_v45, 7  ;;  %v2140_v44 = vsel %vm2001_vm10, %v1981_v45, %v2131_v60 }
 0x35b   :  { %v2158_v48 = vsel %vm2020_vm11, %v1981_v45, %v2131_v60  ;;  %v2132_v53 = vsel %vm1990_vm12, %v1981_v45, %v2131_v60  ;;  %v2265_v45 = vrot.slane %v1975_v49, 1  ;;  %v2332_v60 = vrot.slane %v1976_v38, 1 }
 0x35c   :  { %2177 = vrot.lane.b32.xlu0 %v2176_v2, %s4447_s19  ;;  %v2243_v59 = vsel %vm2039_vm9, %v1982_v29, %v2198_v32  ;;  %v6700_v57 = vsel %vm2039_vm9, %v2128_v50, %v1973_v39  ;;  %v2195_v23 = vrot.slane %v1982_v29, 7  ;;  %v6703_v5 = vsel %vm2001_vm10, %v2128_v50, %v1973_v39 }
 0x35d   :  { %v6706_v30 = vsel %vm2020_vm11, %v2128_v50, %v1973_v39  ;;  %v6711_v4 = vsel %vm1990_vm12, %v2128_v50, %v1973_v39  ;;  %v2207_v11 = vsel %vm2001_vm10, %v1982_v29, %v2198_v32  ;;  %v2225_v12 = vsel %vm2020_vm11, %v1982_v29, %v2198_v32 }
 0x35e   :  { %2244 = vrot.lane.b32.xlu1 %v2243_v59, %s4447_s19  ;;  %v6714_v58 = vsel %vm2039_vm9, %v2195_v23, %v1974_v56  ;;  %v6717_v28 = vsel %vm2001_vm10, %v2195_v23, %v1974_v56  ;;  %v6720_v35 = vsel %vm2020_vm11, %v2195_v23, %v1974_v56  ;;  %v6723_v21 = vsel %vm1990_vm12, %v2195_v23, %v1974_v56 }
 0x35f   :  { %v2199_v52 = vsel %vm1990_vm12, %v1982_v29, %v2198_v32 }
 0x360   :  { %2141 = vrot.lane.b32.xlu0 %v2140_v44, %s4447_s19 }
 0x362   :  { %2208 = vrot.lane.b32.xlu1 %v2207_v11, %s4447_s19 }
 0x364   :  { %2159 = vrot.lane.b32.xlu0 %v2158_v48, %s4447_s19 }
 0x365   :  { %v3920_v19 = vpop.f32.mrb[24].mxu1 }
 0x366   :  { %v3921_v20 = vpop.f32.mrb[25].mxu1  ;;  %2226 = vrot.lane.b32.xlu1 %v2225_v12, %s4447_s19 }
 0x367   :  { %v3922_v36 = vadd.f32 %v3921_v20, %v3920_v19  ;;  %v3923_v6 = vpop.f32.mrb[26].mxu1 }
 0x368   :  { %v3924_v42 = vpop.f32.mrb[27].mxu1  ;;  %2133 = vrot.lane.b32.xlu0 %v2132_v53, %s4447_s19 }
 0x369   :  { %v1860_v39 = vadd.f32 %v3922_v36, %v6616_v40  ;;  %v3925_v33 = vadd.f32 %v3924_v42, %v3923_v6 }
 0x36a   :  { %2200 = vrot.lane.b32.xlu1 %v2199_v52, %s4447_s19  ;;  %v1977_v52 = vmax.f32 %v6640_v7, 0.0 }
 0x36b   :  { %v1957_v56 = vadd.f32 %v6584_v54, %v1860_v39  ;;  %v1863_v3 = vadd.f32 %v3925_v33, %v6616_v40 }
 0x36c   :  { %v2399_v7 = vrot.slane %v1977_v52, 1 }
 0x36d   :  { %v1983_v61 = vmax.f32 %v1957_v56, 0.0  ;;  %v1960_v41 = vadd.f32 %v6589_v18, %v1863_v3 }
 0x36f   :  { %v1984_v46 = vmax.f32 %v1960_v41, 0.0  ;;  %v2310_v13 = vsel %vm2039_vm9, %v1983_v61, %v2265_v45  ;;  %v2262_v29 = vrot.slane %v1983_v61, 7  ;;  %v2274_v44 = vsel %vm2001_vm10, %v1983_v61, %v2265_v45 }
 0x370   :  { %v3926_v31 = vpop.f32.mrb[28].mxu1  ;;  %2311 = vrot.lane.b32.xlu0 %v2310_v13, %s4447_s19  ;;  %v2292_v33 = vsel %vm2020_vm11, %v1983_v61, %v2265_v45 }
 0x371   :  { %v3927_v2 = vpop.f32.mrb[29].mxu1  ;;  %v2377_v32 = vsel %vm2039_vm9, %v1984_v46, %v2332_v60  ;;  %v6747_v54 = vsel %vm2039_vm9, %v2262_v29, %v1975_v49  ;;  %v2329_v18 = vrot.slane %v1984_v46, 7  ;;  %v6750_v59 = vsel %vm2001_vm10, %v2262_v29, %v1975_v49 }
 0x372   :  { %v3928_v62 = vadd.f32 %v3927_v2, %v3926_v31  ;;  %v3929_v50 = vpop.f32.mrb[30].mxu1  ;;  %2378 = vrot.lane.b32.xlu1 %v2377_v32, %s4447_s19  ;;  %v6754_v11 = vsel %vm2020_vm11, %v2262_v29, %v1975_v49  ;;  %v6757_v48 = vsel %vm1990_vm12, %v2262_v29, %v1975_v49  ;;  %v2341_v6 = vsel %vm2001_vm10, %v1984_v46, %v2332_v60 }
 0x373   :  { %v3930_v23 = vpop.f32.mrb[31].mxu1  ;;  %v6762_v20 = vsel %vm2039_vm9, %v2329_v18, %v1976_v38  ;;  %v6765_v36 = vsel %vm2001_vm10, %v2329_v18, %v1976_v38  ;;  %v6769_v53 = vsel %vm2020_vm11, %v2329_v18, %v1976_v38  ;;  %v6772_v42 = vsel %vm1990_vm12, %v2329_v18, %v1976_v38 }
 0x374   :  { %v1868_v19 = vadd.f32 %v3928_v62, %v6616_v40  ;;  %v3931_v12 = vadd.f32 %v3930_v23, %v3929_v50  ;;  %2275 = vrot.lane.b32.xlu0 %v2274_v44, %s4447_s19  ;;  %v2359_v41 = vsel %vm2020_vm11, %v1984_v46, %v2332_v60  ;;  %v1978_v38 = vmax.f32 %v6644_v15, 0.0 }
 0x375   :  { %v2333_v31 = vsel %vm1990_vm12, %v1984_v46, %v2332_v60 }
 0x376   :  { %v1965_v49 = vadd.f32 %v6582_v43, %v1868_v19  ;;  %v1871_v39 = vadd.f32 %v3931_v12, %v6616_v40  ;;  %2342 = vrot.lane.b32.xlu1 %v2341_v6, %s4447_s19  ;;  %v2266_v43 = vsel %vm1990_vm12, %v1983_v61, %v2265_v45  ;;  %v2466_v45 = vrot.slane %v1978_v38, 1 }
 0x378   :  { %v1985_v56 = vmax.f32 %v1965_v49, 0.0  ;;  %v1968_v3 = vadd.f32 %v6587_v22, %v1871_v39  ;;  %2293 = vrot.lane.b32.xlu0 %v2292_v33, %s4447_s19  ;;  %v4450_v39 = vmov 1983009808  }
 0x379   :  { %v2011_v33 = vunpack.c.l.s4 %v4450_v39 }
 0x37a   :  { %v1986_v13 = vmax.f32 %v1968_v3, 0.0  ;;  %2360 = vrot.lane.b32.xlu1 %v2359_v41, %s4447_s19  ;;  %v2396_v40 = vrot.slane %v1985_v56, 7  ;;  %v2444_v61 = vsel %vm2039_vm9, %v1985_v56, %v2399_v7  ;;  %v2408_v23 = vsel %vm2001_vm10, %v1985_v56, %v2399_v7 }
 0x37b   :  { %v2426_v19 = vsel %vm2020_vm11, %v1985_v56, %v2399_v7  ;;  %v2400_v6 = vsel %vm1990_vm12, %v1985_v56, %v2399_v7  ;;  %v2012_v3 = vunpack.c.0.s8 %v2011_v33 }
 0x37c   :  { %2267 = vrot.lane.b32.xlu0 %v2266_v43, %s4447_s19  ;;  %v6788_v29 = vsel %vm2039_vm9, %v2396_v40, %v1977_v52  ;;  %v2463_v22 = vrot.slane %v1986_v13, 7  ;;  %v6791_v2 = vsel %vm2001_vm10, %v2396_v40, %v1977_v52  ;;  %v6794_v15 = vsel %vm2020_vm11, %v2396_v40, %v1977_v52 }
 0x37d   :  { %v6799_v32 = vsel %vm1990_vm12, %v2396_v40, %v1977_v52  ;;  %v2511_v18 = vsel %vm2039_vm9, %v1986_v13, %v2466_v45  ;;  %v2475_v44 = vsel %vm2001_vm10, %v1986_v13, %v2466_v45  ;;  %v2493_v12 = vsel %vm2020_vm11, %v1986_v13, %v2466_v45 }
 0x37e   :  { %2334 = vrot.lane.b32.xlu1 %v2333_v31, %s4447_s19  ;;  %v6802_v46 = vsel %vm2039_vm9, %v2463_v22, %v1978_v38  ;;  %v6805_v60 = vsel %vm2001_vm10, %v2463_v22, %v1978_v38  ;;  %v6808_v62 = vsel %vm2020_vm11, %v2463_v22, %v1978_v38  ;;  %v6811_v50 = vsel %vm1990_vm12, %v2463_v22, %v1978_v38 }
 0x37f   :  { %v2467_v49 = vsel %vm1990_vm12, %v1986_v13, %v2466_v45  ;;  %v2013_v52 = vlaneseq }
 0x380   :  { %2445 = vrot.lane.b32.xlu0 %v2444_v61, %s4447_s19 }
 0x381   :  { %v2014_v41 = vshrl.u32 %v2013_v52, 7 }
 0x382   :  { %2512 = vrot.lane.b32.xlu1 %v2511_v18, %s4447_s19 }
 0x383   :  { %v6828_v38 = vsub.s32 %v2012_v3, %v2014_v41 }
 0x384   :  { %2409 = vrot.lane.b32.xlu0 %v2408_v23, %s4447_s19 }
 0x386   :  { %2476 = vrot.lane.b32.xlu1 %v2475_v44, %s4447_s19 }
 0x388   :  { %2427 = vrot.lane.b32.xlu0 %v2426_v19, %s4447_s19 }
 0x38a   :  { %2494 = vrot.lane.b32.xlu1 %v2493_v12, %s4447_s19 }
 0x38c   :  { %2401 = vrot.lane.b32.xlu0 %v2400_v6, %s4447_s19 }
 0x38e   :  { %2468 = vrot.lane.b32.xlu1 %v2467_v49, %s4447_s19 }
 0x3be   :  { %v2044_v43 = vpop.permute.xlu0 %2043 }
 0x3bf   :  { %v2046_v40 = vsel %vm1998_vm13, %v6655_v63, %v2044_v43 }
 0x3c0   :  { %v2048_v31 = vcombine.high %v2046_v40, %v2046_v40  ;;  %v2111_v56 = vpop.permute.xlu1 %2110 }
 0x3c1   :  { %v2113_v7 = vsel %vm1998_vm13, %v6669_v55, %v2111_v56 }
 0x3c2   :  { %v2055_v13 = vrot.slane %v2048_v31, %v6828_v38  ;;  %v2115_v22 = vcombine.high %v2113_v7, %v2113_v7  ;;  %v2006_v61 = vpop.permute.xlu0 %2005 }
 0x3c3   :  { %v2008_v45 = vsel %vm1998_vm13, %v6658_v14, %v2006_v61 }
 0x3c4   :  { %v2056_v18 = vcombine.high %v2055_v13, %v2055_v13  ;;  %v2122_v23 = vrot.slane %v2115_v22, %v6828_v38  ;;  %v2016_v44 = vrot.slane %v2008_v45, %v6828_v38  ;;  %v2075_v19 = vpop.permute.xlu1 %2074 }
 0x3c5   :  { %v2077_v63 = vsel %vm1998_vm13, %v6672_v34, %v2075_v19 }
 0x3c6   :  { %2058 = vst [vmem:[#allocation6 + $0x6] sm:$0x3] %v2056_v18  ;;  %v2123_v12 = vcombine.high %v2122_v23, %v2122_v23  ;;  %v2017_v6 = vcombine.high %v2016_v44, %v2016_v44  ;;  %v2085_v55 = vrot.slane %v2077_v63, %v6828_v38  ;;  %v2025_v49 = vpop.permute.xlu0 %2024 }
 0x3c7   :  { %v2027_v39 = vsel %vm1998_vm13, %v6661_v27, %v2025_v49 }
 0x3c8   :  { %2125 = vst [vmem:[#allocation6 + $0xe] sm:$0x3] %v2123_v12  ;;  %2019 = vst [vmem:[#allocation6 + $0x2] sm:$0x3] %v2017_v6  ;;  %v2086_v14 = vcombine.high %v2085_v55, %v2085_v55  ;;  %v2029_v33 = vcombine.high %v2027_v39, %v2027_v39  ;;  %v2093_v52 = vpop.permute.xlu1 %2092 }
 0x3c9   :  { %v2095_v3 = vsel %vm1998_vm13, %v6675_v37, %v2093_v52 }
 0x3ca   :  { %2088 = vst [vmem:[#allocation6 + $0xa] sm:$0x3] %v2086_v14  ;;  %3838 = vst.sshfl [vmem:[#allocation6 + $0x4] sm:$0x3 pattern:$0x76325410] %v2029_v33  ;;  %v2097_v34 = vcombine.high %v2095_v3, %v2095_v3  ;;  %v1996_v41 = vpop.permute.xlu0 %1995 }
 0x3cb   :  { %v1999_v43 = vsel %vm1998_vm13, %v6665_v47, %v1996_v41 }
 0x3cc   :  { %3839 = vst.sshfl [vmem:[#allocation6 + $0xc] sm:$0x3 pattern:$0x76325410] %v2097_v34  ;;  %2000 = vst [vmem:[#allocation6] sm:$0x3] %v1999_v43  ;;  %v2067_v40 = vpop.permute.xlu1 %2066 }
 0x3cd   :  { %v2069_v27 = vsel %vm1998_vm13, %v6678_v51, %v2067_v40 }
 0x3ce   :  { %2070 = vst [vmem:[#allocation6 + $0x8] sm:$0x3] %v2069_v27  ;;  %v2178_v31 = vpop.permute.xlu0 %2177 }
 0x3cf   :  { %v2180_v56 = vsel %vm1998_vm13, %v6700_v57, %v2178_v31 }
 0x3d0   :  { %v2182_v7 = vcombine.high %v2180_v56, %v2180_v56  ;;  %v2245_v37 = vpop.permute.xlu1 %2244 }
 0x3d1   :  { %v2247_v13 = vsel %vm1998_vm13, %v6714_v58, %v2245_v37 }
 0x3d2   :  { %v2189_v22 = vrot.slane %v2182_v7, %v6828_v38  ;;  %v2249_v61 = vcombine.high %v2247_v13, %v2247_v13  ;;  %v2142_v47 = vpop.permute.xlu0 %2141 }
 0x3d3   :  { %v2528_v45 = vld [vmem:[#allocation6] sm:$0xff]  ;;  %v2144_v18 = vsel %vm1998_vm13, %v6703_v5, %v2142_v47 }
 0x3d4   :  { %v2544_v23 = vcombine.high %v2528_v45, %v2528_v45  ;;  %v6858_v51 = vrot.slane %v2528_v45, %v6828_v38  ;;  %v2190_v44 = vcombine.high %v2189_v22, %v2189_v22  ;;  %v2256_v57 = vrot.slane %v2249_v61, %v6828_v38  ;;  %v2209_v19 = vpop.permute.xlu1 %2208 }
 0x3d5   :  { %v2529_v63 = vld [vmem:[#allocation6 + $0x8] sm:$0xff]  ;;  %v2152_v12 = vrot.slane %v2144_v18, %v6828_v38  ;;  %v2211_v58 = vsel %vm1998_vm13, %v6717_v28, %v2209_v19 }
 0x3d6   :  { %v6865_v6 = vrot.slane %v2544_v23, %v6828_v38  ;;  %v6869_v5 = vcombine.high %v6858_v51, %v6858_v51  ;;  %v2712_v55 = vpack.c.bf16 %v6858_v51, %v6858_v51  ;;  %v2561_v49 = vcombine.high %v2529_v63, %v2529_v63  ;;  %2192 = vst [vmem:[#allocation6 + $0x16] sm:$0x3] %v2190_v44  ;;  %v2160_v39 = vpop.permute.xlu0 %2159 }
 0x3d7   :  { %v6874_v14 = vrot.slane %v2529_v63, %v6828_v38  ;;  %v2257_v33 = vcombine.high %v2256_v57, %v2256_v57  ;;  %v2153_v52 = vcombine.high %v2152_v12, %v2152_v12  ;;  %v2219_v28 = vrot.slane %v2211_v58, %v6828_v38 }
 0x3d8   :  { %v6879_v3 = vcombine.high %v6865_v6, %v6865_v6  ;;  %v2713_v34 = vpack.c.bf16 %v6869_v5, %v6869_v5  ;;  %v2714_v41 = vpack.c.bf16 %v6865_v6, %v6865_v6  ;;  %v6886_v43 = vrot.slane %v2561_v49, %v6828_v38  ;;  %v2227_v40 = vpop.permute.xlu1 %2226 }
 0x3d9   :  { %v6890_v27 = vcombine.high %v6874_v14, %v6874_v14  ;;  %v2716_v31 = vpack.c.bf16 %v6874_v14, %v6874_v14  ;;  %2259 = vst [vmem:[#allocation6 + $0x1e] sm:$0x3] %v2257_v33  ;;  %2155 = vst [vmem:[#allocation6 + $0x12] sm:$0x3] %v2153_v52  ;;  %v2220_v56 = vcombine.high %v2219_v28, %v2219_v28 }
 0x3da   :  { %v2162_v7 = vsel %vm1998_vm13, %v6706_v30, %v2160_v39  ;;  %v2715_v37 = vpack.c.bf16 %v6879_v3, %v6879_v3  ;;  %v6900_v13 = vcombine.high %v6886_v43, %v6886_v43  ;;  %v2718_v22 = vpack.c.bf16 %v6886_v43, %v6886_v43  ;;  %v2134_v47 = vpop.permute.xlu0 %2133 }
 0x3db   :  { %v2164_v61 = vcombine.high %v2162_v7, %v2162_v7  ;;  %v2717_v45 = vpack.c.bf16 %v6890_v27, %v6890_v27  ;;  %2222 = vst [vmem:[#allocation6 + $0x1a] sm:$0x3] %v2220_v56  ;;  %v2229_v18 = vsel %vm1998_vm13, %v6720_v35, %v2227_v40  ;;  %v2136_v30 = vsel %vm1998_vm13, %v6711_v4, %v2134_v47 }
 0x3dc   :  { %v2719_v23 = vpack.c.bf16 %v6900_v13, %v6900_v13  ;;  %v2231_v44 = vcombine.high %v2229_v18, %v2229_v18  ;;  %2137 = vst [vmem:[#allocation6 + $0x10] sm:$0x3] %v2136_v30  ;;  %v2201_v57 = vpop.permute.xlu1 %2200 }
 0x3dd   :  { %3840 = vst.sshfl [vmem:[#allocation6 + $0x14] sm:$0x3 pattern:$0x76325410] %v2164_v61  ;;  %v2203_v19 = vsel %vm1998_vm13, %v6723_v21, %v2201_v57 }
 0x3de   :  { %3841 = vst.sshfl [vmem:[#allocation6 + $0x1c] sm:$0x3 pattern:$0x76325410] %v2231_v44  ;;  %2204 = vst [vmem:[#allocation6 + $0x18] sm:$0x3] %v2203_v19 }
 0x3e2   :  { %v2312_v63 = vpop.permute.xlu0 %2311 }
 0x3e3   :  { %v2314_v35 = vsel %vm1998_vm13, %v6747_v54, %v2312_v63 }
 0x3e4   :  { %v2530_v12 = vld [vmem:[#allocation6 + $0x10] sm:$0xff]  ;;  %v2316_v49 = vcombine.high %v2314_v35, %v2314_v35  ;;  %v2379_v39 = vpop.permute.xlu1 %2378 }
 0x3e5   :  { %v2578_v58 = vcombine.high %v2530_v12, %v2530_v12  ;;  %v6917_v4 = vrot.slane %v2530_v12, %v6828_v38  ;;  %v2531_v33 = vld [vmem:[#allocation6 + $0x18] sm:$0xff]  ;;  %v2381_v52 = vsel %vm1998_vm13, %v6762_v20, %v2379_v39 }
 0x3e6   :  { %v2595_v40 = vcombine.high %v2531_v33, %v2531_v33  ;;  %v2276_v56 = vpop.permute.xlu0 %2275  ;;  %v6931_v7 = vrot.slane %v2531_v33, %v6828_v38  ;;  %v2323_v61 = vrot.slane %v2316_v49, %v6828_v38  ;;  %v2383_v47 = vcombine.high %v2381_v52, %v2381_v52 }
 0x3e7   :  { %v6922_v28 = vrot.slane %v2578_v58, %v6828_v38  ;;  %v6926_v21 = vcombine.high %v6917_v4, %v6917_v4  ;;  %v2278_v20 = vsel %vm1998_vm13, %v6750_v59, %v2276_v56 }
 0x3e8   :  { %v6945_v57 = vrot.slane %v2595_v40, %v6828_v38  ;;  %v2343_v19 = vpop.permute.xlu1 %2342  ;;  %v6949_v63 = vcombine.high %v6931_v7, %v6931_v7  ;;  %v2324_v12 = vcombine.high %v2323_v61, %v2323_v61  ;;  %v2390_v35 = vrot.slane %v2383_v47, %v6828_v38 }
 0x3e9   :  { %v6938_v18 = vcombine.high %v6922_v28, %v6922_v28  ;;  %v2721_v30 = vpack.c.bf16 %v6926_v21, %v6926_v21  ;;  %v2286_v33 = vrot.slane %v2278_v20, %v6828_v38  ;;  %v2345_v61 = vsel %vm1998_vm13, %v6765_v36, %v2343_v19 }
 0x3ea   :  { %v6958_v49 = vcombine.high %v6945_v57, %v6945_v57  ;;  %v2294_v52 = vpop.permute.xlu0 %2293  ;;  %2326 = vst [vmem:[#allocation6 + $0x26] sm:$0x3] %v2324_v12  ;;  %v2391_v56 = vcombine.high %v2390_v35, %v2390_v35  ;;  %v2353_v39 = vrot.slane %v2345_v61, %v6828_v38 }
 0x3eb   :  { %v2723_v58 = vpack.c.bf16 %v6938_v18, %v6938_v18  ;;  %v2296_v47 = vsel %vm1998_vm13, %v6754_v11, %v2294_v52  ;;  %v2287_v44 = vcombine.high %v2286_v33, %v2286_v33 }
 0x3ec   :  { %v2727_v59 = vpack.c.bf16 %v6958_v49, %v6958_v49  ;;  %v2298_v54 = vcombine.high %v2296_v47, %v2296_v47  ;;  %v2361_v20 = vpop.permute.xlu1 %2360  ;;  %2393 = vst [vmem:[#allocation6 + $0x2e] sm:$0x3] %v2391_v56  ;;  %v2354_v12 = vcombine.high %v2353_v39, %v2353_v39 }
 0x3ed   :  { %v2363_v40 = vsel %vm1998_vm13, %v6769_v53, %v2361_v20  ;;  %2289 = vst [vmem:[#allocation6 + $0x22] sm:$0x3] %v2287_v44 }
 0x3ee   :  { %3842 = vst.sshfl [vmem:[#allocation6 + $0x24] sm:$0x3 pattern:$0x76325410] %v2298_v54  ;;  %v2365_v35 = vcombine.high %v2363_v40, %v2363_v40  ;;  %v2268_v36 = vpop.permute.xlu0 %2267  ;;  %2356 = vst [vmem:[#allocation6 + $0x2a] sm:$0x3] %v2354_v12 }
 0x3ef   :  { %v2270_v11 = vsel %vm1998_vm13, %v6757_v48, %v2268_v36 }
 0x3f0   :  { %3843 = vst.sshfl [vmem:[#allocation6 + $0x2c] sm:$0x3 pattern:$0x76325410] %v2365_v35  ;;  %2271 = vst [vmem:[#allocation6 + $0x20] sm:$0x3] %v2270_v11  ;;  %v2335_v19 = vpop.permute.xlu1 %2334 }
 0x3f1   :  { %v2337_v33 = vsel %vm1998_vm13, %v6772_v42, %v2335_v19 }
 0x3f2   :  { %2338 = vst [vmem:[#allocation6 + $0x28] sm:$0x3] %v2337_v33  ;;  %v2446_v52 = vpop.permute.xlu0 %2445 }
 0x3f3   :  { %v2448_v53 = vsel %vm1998_vm13, %v6788_v29, %v2446_v52 }
 0x3f4   :  { %v2450_v44 = vcombine.high %v2448_v53, %v2448_v53  ;;  %v2513_v39 = vpop.permute.xlu1 %2512 }
 0x3f5   :  { %v2515_v54 = vsel %vm1998_vm13, %v6802_v46, %v2513_v39 }
 0x3f6   :  { %v2457_v40 = vrot.slane %v2450_v44, %v6828_v38  ;;  %v2517_v48 = vcombine.high %v2515_v54, %v2515_v54  ;;  %v2410_v56 = vpop.permute.xlu0 %2409 }
 0x3f7   :  { %v2532_v61 = vld [vmem:[#allocation6 + $0x20] sm:$0xff]  ;;  %v2412_v47 = vsel %vm1998_vm13, %v6791_v2, %v2410_v56 }
 0x3f8   :  { %v2612_v20 = vcombine.high %v2532_v61, %v2532_v61  ;;  %v6986_v42 = vrot.slane %v2532_v61, %v6828_v38  ;;  %v2458_v12 = vcombine.high %v2457_v40, %v2457_v40  ;;  %v2524_v29 = vrot.slane %v2517_v48, %v6828_v38  ;;  %v2477_v35 = vpop.permute.xlu1 %2476 }
 0x3f9   :  { %v2533_v36 = vld [vmem:[#allocation6 + $0x28] sm:$0xff]  ;;  %v2420_v11 = vrot.slane %v2412_v47, %v6828_v38  ;;  %v2479_v46 = vsel %vm1998_vm13, %v6805_v60, %v2477_v35 }
 0x3fa   :  { %v6993_v19 = vrot.slane %v2612_v20, %v6828_v38  ;;  %v6997_v2 = vcombine.high %v6986_v42, %v6986_v42  ;;  %v2728_v33 = vpack.c.bf16 %v6986_v42, %v6986_v42  ;;  %v2629_v52 = vcombine.high %v2533_v36, %v2533_v36  ;;  %2460 = vst [vmem:[#allocation6 + $0x36] sm:$0x3] %v2458_v12  ;;  %v2428_v53 = vpop.permute.xlu0 %2427 }
 0x3fb   :  { %v7002_v44 = vrot.slane %v2533_v36, %v6828_v38  ;;  %v2525_v39 = vcombine.high %v2524_v29, %v2524_v29  ;;  %v2421_v54 = vcombine.high %v2420_v11, %v2420_v11  ;;  %v2487_v60 = vrot.slane %v2479_v46, %v6828_v38 }
 0x3fc   :  { %v7007_v40 = vcombine.high %v6993_v19, %v6993_v19  ;;  %v2729_v48 = vpack.c.bf16 %v6997_v2, %v6997_v2  ;;  %v7014_v61 = vrot.slane %v2629_v52, %v6828_v38  ;;  %v2495_v47 = vpop.permute.xlu1 %2494  ;;  %v2430_v35 = vsel %vm1998_vm13, %v6794_v15, %v2428_v53 }
 0x3fd   :  { %v7018_v20 = vcombine.high %v7002_v44, %v7002_v44  ;;  %2527 = vst [vmem:[#allocation6 + $0x3e] sm:$0x3] %v2525_v39  ;;  %2423 = vst [vmem:[#allocation6 + $0x32] sm:$0x3] %v2421_v54  ;;  %v2488_v29 = vcombine.high %v2487_v60, %v2487_v60  ;;  %v2432_v52 = vcombine.high %v2430_v35, %v2430_v35 }
 0x3fe   :  { %v2731_v36 = vpack.c.bf16 %v7007_v40, %v7007_v40  ;;  %v7028_v11 = vcombine.high %v7014_v61, %v7014_v61  ;;  %v2402_v56 = vpop.permute.xlu0 %2401  ;;  %v2497_v54 = vsel %vm1998_vm13, %v6808_v62, %v2495_v47 }
 0x3ff   :  { %2490 = vst [vmem:[#allocation6 + $0x3a] sm:$0x3] %v2488_v29  ;;  %v2404_v15 = vsel %vm1998_vm13, %v6799_v32, %v2402_v56  ;;  %3844 = vst.sshfl [vmem:[#allocation6 + $0x34] sm:$0x3 pattern:$0x76325410] %v2432_v52  ;;  %v2499_v60 = vcombine.high %v2497_v54, %v2497_v54 }
 0x400   :  { %v2735_v53 = vpack.c.bf16 %v7028_v11, %v7028_v11  ;;  %2405 = vst [vmem:[#allocation6 + $0x30] sm:$0x3] %v2404_v15  ;;  %v2469_v12 = vpop.permute.xlu1 %2468 }
 0x401   :  { %v2471_v35 = vsel %vm1998_vm13, %v6811_v50, %v2469_v12  ;;  %3845 = vst.sshfl [vmem:[#allocation6 + $0x3c] sm:$0x3 pattern:$0x76325410] %v2499_v60 }
 0x402   :  { %2472 = vst [vmem:[#allocation6 + $0x38] sm:$0x3] %v2471_v35 }
 0x407   :  { %v2534_v46 = vld [vmem:[#allocation6 + $0x30] sm:$0xff] }
 0x408   :  { %v2646_v29 = vcombine.high %v2534_v46, %v2534_v46  ;;  %v7043_v39 = vrot.slane %v2534_v46, %v6828_v38 }
 0x409   :  { %v2535_v62 = vld [vmem:[#allocation6 + $0x38] sm:$0xff] }
 0x40a   :  { %v7046_v32 = vrot.slane %v2646_v29, %v6828_v38  ;;  %v7050_v56 = vcombine.high %v7043_v39, %v7043_v39  ;;  %v2736_v47 = vpack.c.bf16 %v7043_v39, %v7043_v39  ;;  %v2663_v52 = vcombine.high %v2535_v62, %v2535_v62 }
 0x40b   :  { %v7055_v50 = vrot.slane %v2535_v62, %v6828_v38 }
 0x40c   :  { %v7059_v12 = vcombine.high %v7046_v32, %v7046_v32  ;;  %v2737_v46 = vpack.c.bf16 %v7050_v56, %v7050_v56  ;;  %v7066_v15 = vrot.slane %v2663_v52, %v6828_v38 }
 0x40d   :  { %v7070_v60 = vcombine.high %v7055_v50, %v7055_v50  ;;  %v2740_v35 = vpack.c.bf16 %v7055_v50, %v7055_v50 }
 0x40e   :  { %v2739_v29 = vpack.c.bf16 %v7059_v12, %v7059_v12  ;;  %v7078_v62 = vcombine.high %v7066_v15, %v7066_v15  ;;  %v2742_v54 = vpack.c.bf16 %v7066_v15, %v7066_v15 }
 0x40f   :  { %v2741_v38 = vpack.c.bf16 %v7070_v60, %v7070_v60 }
 0x410   :  { %v2743_v52 = vpack.c.bf16 %v7078_v62, %v7078_v62 }
 0x411   :  { %4442 = dma.done.wait [#allocation3], 32768 }
 0x412   :  { %4443 = vsyncadd [#allocation3], 4294934528  ;;  %3943 = vmatpush3.bf16.msra.mxu0 %v4491_v0  ;;  %3965 = vmatpush3.bf16.msra.mxu1 %v4571_v16  ;;  %v7744_v0 = vld [vmem:[#allocation12_spill] sm:$0xff]  ;;  %v7745_v8 = vld [vmem:[#allocation23_spill] sm:$0xff]  ;;  %vm4451_vm14 = vmmov 0  }
 0x413   :  { %3944 = vmatprep.subr.bf16.mxu0 %v4536_v9  ;;  %3966 = vmatprep.subr.bf16.mxu1 %v4616_v25  ;;  %v7746_v9 = vld [vmem:[#allocation18_spill] sm:$0xff]  ;;  %v7747_v16 = vld [vmem:[#allocation29_spill] sm:$0xff]  ;;  %v7749_v25 = vld [vmem:[#allocation24_spill] sm:$0xff] }
 0x414   :  { %3042 = vmatprep.mubr.bf16.mxu0 %v2713_v34  ;;  %3082 = vmatprep.mubr.bf16.mxu1 %v2715_v37  ;;  %v7748_v24 = vld [vmem:[#allocation13_spill] sm:$0xff]  ;;  %v7750_v5 = vld [vmem:[#allocation19_spill] sm:$0xff]  ;;  %v7757_v37 = vld [vmem:[#allocation26_spill] sm:$0xff] }
 0x415   :  { %v7755_v3 = vld [vmem:[#allocation31_spill] sm:$0xff]  ;;  %v7779_v27 = vld [vmem:[#allocation61_spill] sm:$0xff] }
 0x416   :  { %3945 = vmatpush3.bf16.msra.mxu0 %v4496_v1  ;;  %3967 = vmatpush3.bf16.msra.mxu1 %v4576_v17  ;;  %v7751_v1 = vld [vmem:[#allocation30_spill] sm:$0xff]  ;;  %v7756_v34 = vld [vmem:[#allocation15_spill] sm:$0xff]  ;;  %v7781_v13 = vld [vmem:[#allocation53_spill] sm:$0xff] }
 0x417   :  { %3946 = vmatprep.subr.bf16.mxu0 %v4541_v10  ;;  %3968 = vmatprep.subr.bf16.mxu1 %v4621_v26  ;;  %v7752_v17 = vld [vmem:[#allocation14_spill] sm:$0xff]  ;;  %v7753_v10 = vld [vmem:[#allocation25_spill] sm:$0xff]  ;;  %v7754_v26 = vld [vmem:[#allocation20_spill] sm:$0xff] }
 0x418   :  { %v7772_v51 = vld [vmem:[#allocation35_spill] sm:$0xff]  ;;  %v7811_v21 = vld [vmem:[#allocation93_spill] sm:$0xff] }
 0x419   :  { %v7773_v6 = vld [vmem:[#allocation51_spill] sm:$0xff]  ;;  %v7813_v18 = vld [vmem:[#allocation85_spill] sm:$0xff] }
 0x41a   :  { %3947 = vmatpush3.bf16.msra.mxu0 %v7744_v0  ;;  %3969 = vmatpush3.bf16.msra.mxu1 %v7745_v8  ;;  %v7758_v0 = vld [vmem:[#allocation21_spill] sm:$0xff]  ;;  %v7759_v8 = vld [vmem:[#allocation32_spill] sm:$0xff]  ;;  %v7804_v14 = vld [vmem:[#allocation67_spill] sm:$0xff] }
 0x41b   :  { %3948 = vmatprep.subr.bf16.mxu0 %v7746_v9  ;;  %3970 = vmatprep.subr.bf16.mxu1 %v7747_v16  ;;  %v7760_v9 = vld [vmem:[#allocation16_spill] sm:$0xff]  ;;  %v7761_v16 = vld [vmem:[#allocation27_spill] sm:$0xff]  ;;  %v7848_v49 = vld [vmem:[#allocation117_spill] sm:$0xff] }
 0x41c   :  { %v7805_v43 = vld [vmem:[#allocation83_spill] sm:$0xff]  ;;  %v7880_v2 = vld [vmem:[#allocation157_spill] sm:$0xff] }
 0x41d   :  { %v7882_v40 = vld [vmem:[#allocation149_spill] sm:$0xff]  ;;  %v7907_v42 = vld [vmem:[#allocation163_spill] sm:$0xff] }
 0x41e   :  { %3949 = vmatpush3.bf16.msra.mxu0 %v7748_v24  ;;  %3971 = vmatpush3.bf16.msra.mxu1 %v7749_v25  ;;  %v7762_v24 = vld [vmem:[#allocation22_spill] sm:$0xff]  ;;  %v7763_v25 = vld [vmem:[#allocation33_spill] sm:$0xff]  ;;  %v7974_v39 = vld [vmem:[#allocation227_spill] sm:$0xff] }
 0x41f   :  { %3950 = vmatprep.subr.bf16.mxu0 %v7750_v5  ;;  %3972 = vmatprep.subr.bf16.mxu1 %v7751_v1  ;;  %v7764_v5 = vld [vmem:[#allocation17_spill] sm:$0xff]  ;;  %v7765_v1 = vld [vmem:[#allocation28_spill] sm:$0xff] }
 0x420   :  { %v7916_v11 = vld [vmem:[#allocation181_spill] sm:$0xff] }
 0x421   :  { %v7948_v56 = vld [vmem:[#allocation221_spill] sm:$0xff] }
 0x422   :  { %3951 = vmatpush3.bf16.msra.mxu0 %v7752_v17  ;;  %3973 = vmatpush3.bf16.msra.mxu1 %v7753_v10  ;;  %v7766_v17 = vld [vmem:[#allocation42_spill] sm:$0xff]  ;;  %v7950_v12 = vld [vmem:[#allocation213_spill] sm:$0xff] }
 0x423   :  { %3952 = vmatprep.subr.bf16.mxu0 %v7754_v26  ;;  %3974 = vmatprep.subr.bf16.mxu1 %v7755_v3  ;;  %v7767_v10 = vld [vmem:[#allocation58_spill] sm:$0xff]  ;;  %v7981_v60 = vld [vmem:[#allocation253_spill] sm:$0xff] }
 0x424   :  { %v7768_v26 = vld [vmem:[#allocation34_spill] sm:$0xff]  ;;  %v7983_v62 = vld [vmem:[#allocation245_spill] sm:$0xff] }
 0x425   :  { %v7769_v3 = vld [vmem:[#allocation50_spill] sm:$0xff] }
 0x426   :  { %3953 = vmatpush3.bf16.msra.mxu0 %v7756_v34  ;;  %3975 = vmatpush3.bf16.msra.mxu1 %v7757_v37  ;;  %v7770_v34 = vld [vmem:[#allocation43_spill] sm:$0xff] }
 0x427   :  { %3954 = vmatprep.subr.bf16.mxu0 %v7758_v0  ;;  %3976 = vmatprep.subr.bf16.mxu1 %v7759_v8  ;;  %v7771_v37 = vld [vmem:[#allocation59_spill] sm:$0xff]  ;;  %v7776_v0 = vld [vmem:[#allocation36_spill] sm:$0xff] }
 0x428   :  { %v7777_v8 = vld [vmem:[#allocation52_spill] sm:$0xff] }
 0x42a   :  { %3955 = vmatpush3.bf16.msra.mxu0 %v7760_v9  ;;  %3977 = vmatpush3.bf16.msra.mxu1 %v7761_v16  ;;  %v7778_v9 = vld [vmem:[#allocation45_spill] sm:$0xff]  ;;  %v7783_v16 = vld [vmem:[#allocation62_spill] sm:$0xff] }
 0x42b   :  { %3956 = vmatprep.subr.bf16.mxu0 %v7762_v24  ;;  %3978 = vmatprep.subr.bf16.mxu1 %v7763_v25  ;;  %v7784_v24 = vld [vmem:[#allocation38_spill] sm:$0xff] }
 0x42c   :  { %v7785_v25 = vld [vmem:[#allocation54_spill] sm:$0xff] }
 0x42e   :  { %3957 = vmatpush3.bf16.msra.mxu0 %v7764_v5  ;;  %3979 = vmatpush3.bf16.msra.mxu1 %v7765_v1  ;;  %v7786_v5 = vld [vmem:[#allocation47_spill] sm:$0xff] }
 0x42f   :  { %3986 = vmatprep.subr.bf16.mxu0 %v7766_v17  ;;  %4008 = vmatprep.subr.bf16.mxu1 %v7767_v10  ;;  %v7787_v1 = vld [vmem:[#allocation63_spill] sm:$0xff] }
 0x430   :  { %v7788_v17 = vld [vmem:[#allocation39_spill] sm:$0xff] }
 0x431   :  { %3043 = vmatmul.mubr.bf16.vlgmr.msra.gmra.mrb[32].mxu0 %v2712_v55  ;;  %3083 = vmatmul.mubr.bf16.vlgmr.msra.gmra.mrb[32].mxu1 %v2714_v41  ;;  %v7774_v55 = vld [vmem:[#allocation44_spill] sm:$0xff]  ;;  %v7789_v10 = vld [vmem:[#allocation55_spill] sm:$0xff] }
 0x432   :  { %3987 = vmatpush3.bf16.msra.mxu0 %v7768_v26  ;;  %4009 = vmatpush3.bf16.msra.mxu1 %v7769_v3  ;;  %v7775_v41 = vld [vmem:[#allocation60_spill] sm:$0xff] }
 0x433   :  { %3988 = vmatprep.subr.bf16.mxu0 %v7770_v34  ;;  %4010 = vmatprep.subr.bf16.mxu1 %v7771_v37  ;;  %v7790_v26 = vld [vmem:[#allocation48_spill] sm:$0xff] }
 0x434   :  { %3122 = vmatprep.mubr.bf16.mxu0 %v2717_v45  ;;  %3162 = vmatprep.mubr.bf16.mxu1 %v2719_v23  ;;  %v7780_v45 = vld [vmem:[#allocation37_spill] sm:$0xff]  ;;  %v7782_v23 = vld [vmem:[#allocation46_spill] sm:$0xff]  ;;  %v7791_v3 = vld [vmem:[#allocation64_spill] sm:$0xff] }
 0x435   :  { %v7792_v34 = vld [vmem:[#allocation40_spill] sm:$0xff] }
 0x436   :  { %3989 = vmatpush3.bf16.msra.mxu0 %v7772_v51  ;;  %4011 = vmatpush3.bf16.msra.mxu1 %v7773_v6  ;;  %v7793_v37 = vld [vmem:[#allocation56_spill] sm:$0xff]  ;;  %v7794_v51 = vld [vmem:[#allocation49_spill] sm:$0xff] }
 0x437   :  { %3990 = vmatprep.subr.bf16.mxu0 %v7774_v55  ;;  %4012 = vmatprep.subr.bf16.mxu1 %v7775_v41  ;;  %v7795_v6 = vld [vmem:[#allocation65_spill] sm:$0xff] }
 0x438   :  { %v7796_v55 = vld [vmem:[#allocation41_spill] sm:$0xff] }
 0x439   :  { %v7797_v41 = vld [vmem:[#allocation57_spill] sm:$0xff] }
 0x43a   :  { %3991 = vmatpush3.bf16.msra.mxu0 %v7776_v0  ;;  %4013 = vmatpush3.bf16.msra.mxu1 %v7777_v8  ;;  %v7798_v0 = vld [vmem:[#allocation74_spill] sm:$0xff] }
 0x43b   :  { %3992 = vmatprep.subr.bf16.mxu0 %v7778_v9  ;;  %4014 = vmatprep.subr.bf16.mxu1 %v7779_v27  ;;  %v7799_v8 = vld [vmem:[#allocation90_spill] sm:$0xff] }
 0x43c   :  { %v7800_v9 = vld [vmem:[#allocation66_spill] sm:$0xff] }
 0x43d   :  { %v7801_v27 = vld [vmem:[#allocation82_spill] sm:$0xff] }
 0x43e   :  { %3993 = vmatpush3.bf16.msra.mxu0 %v7780_v45  ;;  %4015 = vmatpush3.bf16.msra.mxu1 %v7781_v13  ;;  %v7802_v45 = vld [vmem:[#allocation75_spill] sm:$0xff] }
 0x43f   :  { %3994 = vmatprep.subr.bf16.mxu0 %v7782_v23  ;;  %4016 = vmatprep.subr.bf16.mxu1 %v7783_v16  ;;  %v7803_v13 = vld [vmem:[#allocation91_spill] sm:$0xff]  ;;  %v7808_v23 = vld [vmem:[#allocation68_spill] sm:$0xff] }
 0x440   :  { %v7809_v16 = vld [vmem:[#allocation84_spill] sm:$0xff] }
 0x442   :  { %3995 = vmatpush3.bf16.msra.mxu0 %v7784_v24  ;;  %4017 = vmatpush3.bf16.msra.mxu1 %v7785_v25  ;;  %v7810_v24 = vld [vmem:[#allocation77_spill] sm:$0xff]  ;;  %v7815_v25 = vld [vmem:[#allocation94_spill] sm:$0xff] }
 0x443   :  { %3996 = vmatprep.subr.bf16.mxu0 %v7786_v5  ;;  %4018 = vmatprep.subr.bf16.mxu1 %v7787_v1  ;;  %v7816_v5 = vld [vmem:[#allocation70_spill] sm:$0xff] }
 0x444   :  { %v7817_v1 = vld [vmem:[#allocation86_spill] sm:$0xff] }
 0x446   :  { %3997 = vmatpush3.bf16.msra.mxu0 %v7788_v17  ;;  %4019 = vmatpush3.bf16.msra.mxu1 %v7789_v10  ;;  %v7818_v17 = vld [vmem:[#allocation79_spill] sm:$0xff] }
 0x447   :  { %3998 = vmatprep.subr.bf16.mxu0 %v7790_v26  ;;  %4020 = vmatprep.subr.bf16.mxu1 %v7791_v3  ;;  %v7819_v10 = vld [vmem:[#allocation95_spill] sm:$0xff] }
 0x448   :  { %v7820_v26 = vld [vmem:[#allocation71_spill] sm:$0xff] }
 0x449   :  { %v7821_v3 = vld [vmem:[#allocation87_spill] sm:$0xff] }
 0x44a   :  { %3999 = vmatpush3.bf16.msra.mxu0 %v7792_v34  ;;  %4021 = vmatpush3.bf16.msra.mxu1 %v7793_v37  ;;  %v7822_v34 = vld [vmem:[#allocation80_spill] sm:$0xff] }
 0x44b   :  { %4000 = vmatprep.subr.bf16.mxu0 %v7794_v51  ;;  %4022 = vmatprep.subr.bf16.mxu1 %v7795_v6  ;;  %v7823_v37 = vld [vmem:[#allocation96_spill] sm:$0xff] }
 0x44c   :  { %v7824_v51 = vld [vmem:[#allocation72_spill] sm:$0xff] }
 0x44d   :  { %v7825_v6 = vld [vmem:[#allocation88_spill] sm:$0xff] }
 0x44e   :  { %4001 = vmatpush3.bf16.msra.mxu0 %v7796_v55  ;;  %4023 = vmatpush3.bf16.msra.mxu1 %v7797_v41  ;;  %v7826_v55 = vld [vmem:[#allocation81_spill] sm:$0xff] }
 0x44f   :  { %4030 = vmatprep.subr.bf16.mxu0 %v7798_v0  ;;  %4052 = vmatprep.subr.bf16.mxu1 %v7799_v8  ;;  %v7827_v41 = vld [vmem:[#allocation97_spill] sm:$0xff] }
 0x450   :  { %v7828_v0 = vld [vmem:[#allocation73_spill] sm:$0xff] }
 0x451   :  { %3123 = vmatmul.mubr.bf16.vlgmr.msra.gmra.mrb[36].mxu0 %v2716_v31  ;;  %3163 = vmatmul.mubr.bf16.vlgmr.msra.gmra.mrb[36].mxu1 %v2718_v22  ;;  %v7806_v31 = vld [vmem:[#allocation76_spill] sm:$0xff]  ;;  %v7829_v8 = vld [vmem:[#allocation89_spill] sm:$0xff] }
 0x452   :  { %4031 = vmatpush3.bf16.msra.mxu0 %v7800_v9  ;;  %4053 = vmatpush3.bf16.msra.mxu1 %v7801_v27  ;;  %v7807_v22 = vld [vmem:[#allocation92_spill] sm:$0xff]  ;;  %v7830_v9 = vld [vmem:[#allocation106_spill] sm:$0xff] }
 0x453   :  { %4032 = vmatprep.subr.bf16.mxu0 %v7802_v45  ;;  %4054 = vmatprep.subr.bf16.mxu1 %v7803_v13  ;;  %v7831_v27 = vld [vmem:[#allocation122_spill] sm:$0xff]  ;;  %v7832_v45 = vpack.c.bf16 %v6917_v4, %v6917_v4  ;;  %v7833_v13 = vpack.c.bf16 %v6922_v28, %v6922_v28  ;;  %v7839_v4 = vld [vmem:[#allocation99_spill] sm:$0xff] }
 0x454   :  { %3202 = vmatprep.mubr.bf16.mxu0 %v2721_v30  ;;  %3242 = vmatprep.mubr.bf16.mxu1 %v2723_v58  ;;  %v7812_v30 = vld [vmem:[#allocation69_spill] sm:$0xff]  ;;  %v7814_v58 = vld [vmem:[#allocation78_spill] sm:$0xff]  ;;  %v7840_v28 = vld [vmem:[#allocation115_spill] sm:$0xff] }
 0x456   :  { %4033 = vmatpush3.bf16.msra.mxu0 %v7804_v14  ;;  %4055 = vmatpush3.bf16.msra.mxu1 %v7805_v43  ;;  %v7834_v14 = vld [vmem:[#allocation98_spill] sm:$0xff] }
 0x457   :  { %4034 = vmatprep.subr.bf16.mxu0 %v7806_v31  ;;  %4056 = vmatprep.subr.bf16.mxu1 %v7807_v22  ;;  %v7835_v43 = vld [vmem:[#allocation114_spill] sm:$0xff]  ;;  %v7836_v31 = vld [vmem:[#allocation107_spill] sm:$0xff] }
 0x458   :  { %v7837_v22 = vld [vmem:[#allocation123_spill] sm:$0xff] }
 0x45a   :  { %4035 = vmatpush3.bf16.msra.mxu0 %v7808_v23  ;;  %4057 = vmatpush3.bf16.msra.mxu1 %v7809_v16  ;;  %v7838_v23 = vpack.c.bf16 %v6949_v63, %v6949_v63  ;;  %v7841_v16 = vld [vmem:[#allocation108_spill] sm:$0xff]  ;;  %v7846_v63 = vld [vmem:[#allocation125_spill] sm:$0xff] }
 0x45b   :  { %4036 = vmatprep.subr.bf16.mxu0 %v7810_v24  ;;  %4058 = vmatprep.subr.bf16.mxu1 %v7811_v21  ;;  %v7842_v24 = vld [vmem:[#allocation124_spill] sm:$0xff] }
 0x45c   :  { %v7843_v21 = vld [vmem:[#allocation100_spill] sm:$0xff] }
 0x45e   :  { %4037 = vmatpush3.bf16.msra.mxu0 %v7812_v30  ;;  %4059 = vmatpush3.bf16.msra.mxu1 %v7813_v18  ;;  %v7844_v30 = vld [vmem:[#allocation116_spill] sm:$0xff]  ;;  %v7845_v18 = vld [vmem:[#allocation109_spill] sm:$0xff] }
 0x45f   :  { %4038 = vmatprep.subr.bf16.mxu0 %v7814_v58  ;;  %4060 = vmatprep.subr.bf16.mxu1 %v7815_v25  ;;  %v7847_v58 = vld [vmem:[#allocation101_spill] sm:$0xff]  ;;  %v7850_v25 = vld [vmem:[#allocation126_spill] sm:$0xff] }
 0x462   :  { %4039 = vmatpush3.bf16.msra.mxu0 %v7816_v5  ;;  %4061 = vmatpush3.bf16.msra.mxu1 %v7817_v1  ;;  %v7851_v5 = vld [vmem:[#allocation102_spill] sm:$0xff] }
 0x463   :  { %4040 = vmatprep.subr.bf16.mxu0 %v7818_v17  ;;  %4062 = vmatprep.subr.bf16.mxu1 %v7819_v10  ;;  %v7852_v1 = vld [vmem:[#allocation118_spill] sm:$0xff]  ;;  %v7853_v17 = vld [vmem:[#allocation111_spill] sm:$0xff] }
 0x464   :  { %v7854_v10 = vld [vmem:[#allocation127_spill] sm:$0xff] }
 0x466   :  { %4041 = vmatpush3.bf16.msra.mxu0 %v7820_v26  ;;  %4063 = vmatpush3.bf16.msra.mxu1 %v7821_v3  ;;  %v7855_v26 = vld [vmem:[#allocation103_spill] sm:$0xff] }
 0x467   :  { %4042 = vmatprep.subr.bf16.mxu0 %v7822_v34  ;;  %4064 = vmatprep.subr.bf16.mxu1 %v7823_v37  ;;  %v7856_v3 = vld [vmem:[#allocation119_spill] sm:$0xff]  ;;  %v7857_v34 = vld [vmem:[#allocation112_spill] sm:$0xff] }
 0x468   :  { %v7858_v37 = vld [vmem:[#allocation128_spill] sm:$0xff] }
 0x46a   :  { %4043 = vmatpush3.bf16.msra.mxu0 %v7824_v51  ;;  %4065 = vmatpush3.bf16.msra.mxu1 %v7825_v6  ;;  %v7859_v51 = vld [vmem:[#allocation104_spill] sm:$0xff] }
 0x46b   :  { %4044 = vmatprep.subr.bf16.mxu0 %v7826_v55  ;;  %4066 = vmatprep.subr.bf16.mxu1 %v7827_v41  ;;  %v7860_v6 = vld [vmem:[#allocation120_spill] sm:$0xff]  ;;  %v7861_v55 = vld [vmem:[#allocation113_spill] sm:$0xff] }
 0x46c   :  { %v7862_v41 = vld [vmem:[#allocation129_spill] sm:$0xff] }
 0x46e   :  { %4045 = vmatpush3.bf16.msra.mxu0 %v7828_v0  ;;  %4067 = vmatpush3.bf16.msra.mxu1 %v7829_v8  ;;  %v7863_v0 = vld [vmem:[#allocation105_spill] sm:$0xff] }
 0x46f   :  { %4074 = vmatprep.subr.bf16.mxu0 %v7830_v9  ;;  %4096 = vmatprep.subr.bf16.mxu1 %v7831_v27  ;;  %v7864_v8 = vld [vmem:[#allocation121_spill] sm:$0xff]  ;;  %v7865_v9 = vld [vmem:[#allocation138_spill] sm:$0xff] }
 0x470   :  { %v7866_v27 = vld [vmem:[#allocation154_spill] sm:$0xff] }
 0x471   :  { %3203 = vmatmul.mubr.bf16.vlgmr.msra.gmra.mrb[40].mxu0 %v7832_v45  ;;  %3243 = vmatmul.mubr.bf16.vlgmr.msra.gmra.mrb[40].mxu1 %v7833_v13  ;;  %v7867_v45 = vpack.c.bf16 %v6931_v7, %v6931_v7  ;;  %v7868_v13 = vpack.c.bf16 %v6945_v57, %v6945_v57  ;;  %v7873_v7 = vld [vmem:[#allocation131_spill] sm:$0xff] }
 0x472   :  { %4075 = vmatpush3.bf16.msra.mxu0 %v7834_v14  ;;  %4097 = vmatpush3.bf16.msra.mxu1 %v7835_v43  ;;  %v7869_v14 = vld [vmem:[#allocation130_spill] sm:$0xff]  ;;  %v7874_v57 = vld [vmem:[#allocation147_spill] sm:$0xff] }
 0x473   :  { %4076 = vmatprep.subr.bf16.mxu0 %v7836_v31  ;;  %4098 = vmatprep.subr.bf16.mxu1 %v7837_v22  ;;  %v7870_v43 = vld [vmem:[#allocation146_spill] sm:$0xff]  ;;  %v7871_v31 = vld [vmem:[#allocation139_spill] sm:$0xff] }
 0x474   :  { %3282 = vmatprep.mubr.bf16.mxu0 %v7838_v23  ;;  %3322 = vmatprep.mubr.bf16.mxu1 %v2727_v59  ;;  %v7849_v59 = vld [vmem:[#allocation110_spill] sm:$0xff]  ;;  %v7872_v22 = vld [vmem:[#allocation155_spill] sm:$0xff]  ;;  %v7875_v23 = vld [vmem:[#allocation140_spill] sm:$0xff] }
 0x476   :  { %4077 = vmatpush3.bf16.msra.mxu0 %v7839_v4  ;;  %4099 = vmatpush3.bf16.msra.mxu1 %v7840_v28  ;;  %v7876_v4 = vld [vmem:[#allocation156_spill] sm:$0xff] }
 0x477   :  { %4078 = vmatprep.subr.bf16.mxu0 %v7841_v16  ;;  %4100 = vmatprep.subr.bf16.mxu1 %v7842_v24  ;;  %v7877_v28 = vld [vmem:[#allocation132_spill] sm:$0xff]  ;;  %v7879_v24 = vld [vmem:[#allocation141_spill] sm:$0xff] }
 0x478   :  { %v7878_v16 = vld [vmem:[#allocation148_spill] sm:$0xff] }
 0x47a   :  { %4079 = vmatpush3.bf16.msra.mxu0 %v7843_v21  ;;  %4101 = vmatpush3.bf16.msra.mxu1 %v7844_v30  ;;  %v7884_v21 = vld [vmem:[#allocation158_spill] sm:$0xff] }
 0x47b   :  { %4080 = vmatprep.subr.bf16.mxu0 %v7845_v18  ;;  %4102 = vmatprep.subr.bf16.mxu1 %v7846_v63  ;;  %v7885_v30 = vld [vmem:[#allocation134_spill] sm:$0xff]  ;;  %v7887_v63 = vld [vmem:[#allocation143_spill] sm:$0xff] }
 0x47c   :  { %v7886_v18 = vld [vmem:[#allocation150_spill] sm:$0xff] }
 0x47e   :  { %4081 = vmatpush3.bf16.msra.mxu0 %v7847_v58  ;;  %4103 = vmatpush3.bf16.msra.mxu1 %v7848_v49  ;;  %v7888_v58 = vld [vmem:[#allocation159_spill] sm:$0xff] }
 0x47f   :  { %4082 = vmatprep.subr.bf16.mxu0 %v7849_v59  ;;  %4104 = vmatprep.subr.bf16.mxu1 %v7850_v25  ;;  %v7889_v49 = vld [vmem:[#allocation135_spill] sm:$0xff]  ;;  %v7891_v25 = vld [vmem:[#allocation144_spill] sm:$0xff] }
 0x480   :  { %v7890_v59 = vld [vmem:[#allocation151_spill] sm:$0xff] }
 0x482   :  { %4083 = vmatpush3.bf16.msra.mxu0 %v7851_v5  ;;  %4105 = vmatpush3.bf16.msra.mxu1 %v7852_v1  ;;  %v7892_v5 = vld [vmem:[#allocation160_spill] sm:$0xff] }
 0x483   :  { %4084 = vmatprep.subr.bf16.mxu0 %v7853_v17  ;;  %4106 = vmatprep.subr.bf16.mxu1 %v7854_v10  ;;  %v7893_v1 = vld [vmem:[#allocation136_spill] sm:$0xff]  ;;  %v7895_v10 = vld [vmem:[#allocation145_spill] sm:$0xff] }
 0x484   :  { %v7894_v17 = vld [vmem:[#allocation152_spill] sm:$0xff] }
 0x486   :  { %4085 = vmatpush3.bf16.msra.mxu0 %v7855_v26  ;;  %4107 = vmatpush3.bf16.msra.mxu1 %v7856_v3  ;;  %v7896_v26 = vld [vmem:[#allocation161_spill] sm:$0xff] }
 0x487   :  { %4086 = vmatprep.subr.bf16.mxu0 %v7857_v34  ;;  %4108 = vmatprep.subr.bf16.mxu1 %v7858_v37  ;;  %v7897_v3 = vld [vmem:[#allocation137_spill] sm:$0xff]  ;;  %v7899_v37 = vld [vmem:[#allocation170_spill] sm:$0xff] }
 0x488   :  { %v7898_v34 = vld [vmem:[#allocation153_spill] sm:$0xff] }
 0x48a   :  { %4087 = vmatpush3.bf16.msra.mxu0 %v7859_v51  ;;  %4109 = vmatpush3.bf16.msra.mxu1 %v7860_v6  ;;  %v7900_v51 = vld [vmem:[#allocation186_spill] sm:$0xff]  ;;  %v7901_v6 = vpack.c.bf16 %v6993_v19, %v6993_v19  ;;  %v7908_v19 = vld [vmem:[#allocation179_spill] sm:$0xff] }
 0x48b   :  { %4088 = vmatprep.subr.bf16.mxu0 %v7861_v55  ;;  %4110 = vmatprep.subr.bf16.mxu1 %v7862_v41  ;;  %v7902_v55 = vld [vmem:[#allocation162_spill] sm:$0xff] }
 0x48c   :  { %v7903_v41 = vld [vmem:[#allocation178_spill] sm:$0xff] }
 0x48e   :  { %4089 = vmatpush3.bf16.msra.mxu0 %v7863_v0  ;;  %4111 = vmatpush3.bf16.msra.mxu1 %v7864_v8  ;;  %v7904_v0 = vld [vmem:[#allocation171_spill] sm:$0xff] }
 0x48f   :  { %4118 = vmatprep.subr.bf16.mxu0 %v7865_v9  ;;  %4140 = vmatprep.subr.bf16.mxu1 %v7866_v27  ;;  %v7905_v8 = vld [vmem:[#allocation187_spill] sm:$0xff]  ;;  %v7906_v9 = vpack.c.bf16 %v7018_v20, %v7018_v20  ;;  %v7910_v27 = vld [vmem:[#allocation188_spill] sm:$0xff]  ;;  %v7914_v20 = vld [vmem:[#allocation189_spill] sm:$0xff] }
 0x491   :  { %3283 = vmatmul.mubr.bf16.vlgmr.msra.gmra.mrb[44].mxu0 %v7867_v45  ;;  %3323 = vmatmul.mubr.bf16.vlgmr.msra.gmra.mrb[44].mxu1 %v7868_v13  ;;  %v7911_v45 = vld [vmem:[#allocation164_spill] sm:$0xff] }
 0x492   :  { %4119 = vmatpush3.bf16.msra.mxu0 %v7869_v14  ;;  %4141 = vmatpush3.bf16.msra.mxu1 %v7870_v43  ;;  %v7912_v13 = vld [vmem:[#allocation180_spill] sm:$0xff]  ;;  %v7913_v14 = vld [vmem:[#allocation173_spill] sm:$0xff] }
 0x493   :  { %4120 = vmatprep.subr.bf16.mxu0 %v7871_v31  ;;  %4142 = vmatprep.subr.bf16.mxu1 %v7872_v22  ;;  %v7915_v43 = vld [vmem:[#allocation165_spill] sm:$0xff]  ;;  %v7918_v31 = vld [vmem:[#allocation190_spill] sm:$0xff] }
 0x494   :  { %3362 = vmatprep.mubr.bf16.mxu0 %v2729_v48  ;;  %3402 = vmatprep.mubr.bf16.mxu1 %v2731_v36  ;;  %v7881_v48 = vld [vmem:[#allocation133_spill] sm:$0xff]  ;;  %v7883_v36 = vld [vmem:[#allocation142_spill] sm:$0xff] }
 0x495   :  { %v7919_v22 = vld [vmem:[#allocation166_spill] sm:$0xff] }
 0x496   :  { %4121 = vmatpush3.bf16.msra.mxu0 %v7873_v7  ;;  %4143 = vmatpush3.bf16.msra.mxu1 %v7874_v57  ;;  %v7920_v7 = vld [vmem:[#allocation182_spill] sm:$0xff]  ;;  %v7921_v57 = vld [vmem:[#allocation175_spill] sm:$0xff] }
 0x497   :  { %4122 = vmatprep.subr.bf16.mxu0 %v7875_v23  ;;  %4144 = vmatprep.subr.bf16.mxu1 %v7876_v4  ;;  %v7922_v23 = vld [vmem:[#allocation191_spill] sm:$0xff] }
 0x498   :  { %v7923_v4 = vld [vmem:[#allocation167_spill] sm:$0xff] }
 0x49a   :  { %4123 = vmatpush3.bf16.msra.mxu0 %v7877_v28  ;;  %4145 = vmatpush3.bf16.msra.mxu1 %v7878_v16  ;;  %v7924_v28 = vld [vmem:[#allocation183_spill] sm:$0xff]  ;;  %v7925_v16 = vld [vmem:[#allocation176_spill] sm:$0xff] }
 0x49b   :  { %4124 = vmatprep.subr.bf16.mxu0 %v7879_v24  ;;  %4146 = vmatprep.subr.bf16.mxu1 %v7880_v2  ;;  %v7926_v24 = vld [vmem:[#allocation192_spill] sm:$0xff] }
 0x49c   :  { %v7927_v2 = vld [vmem:[#allocation168_spill] sm:$0xff] }
 0x49e   :  { %4125 = vmatpush3.bf16.msra.mxu0 %v7881_v48  ;;  %4147 = vmatpush3.bf16.msra.mxu1 %v7882_v40  ;;  %v7928_v48 = vld [vmem:[#allocation184_spill] sm:$0xff]  ;;  %v7929_v40 = vld [vmem:[#allocation177_spill] sm:$0xff] }
 0x49f   :  { %4126 = vmatprep.subr.bf16.mxu0 %v7883_v36  ;;  %4148 = vmatprep.subr.bf16.mxu1 %v7884_v21  ;;  %v7930_v36 = vld [vmem:[#allocation193_spill] sm:$0xff] }
 0x4a0   :  { %v7931_v21 = vld [vmem:[#allocation169_spill] sm:$0xff] }
 0x4a2   :  { %4127 = vmatpush3.bf16.msra.mxu0 %v7885_v30  ;;  %4149 = vmatpush3.bf16.msra.mxu1 %v7886_v18  ;;  %v7932_v30 = vld [vmem:[#allocation185_spill] sm:$0xff]  ;;  %v7933_v18 = vld [vmem:[#allocation202_spill] sm:$0xff] }
 0x4a3   :  { %4128 = vmatprep.subr.bf16.mxu0 %v7887_v63  ;;  %4150 = vmatprep.subr.bf16.mxu1 %v7888_v58  ;;  %v7934_v63 = vld [vmem:[#allocation218_spill] sm:$0xff]  ;;  %v7935_v58 = vpack.c.bf16 %v7002_v44, %v7002_v44  ;;  %v7941_v44 = vld [vmem:[#allocation195_spill] sm:$0xff] }
 0x4a6   :  { %4129 = vmatpush3.bf16.msra.mxu0 %v7889_v49  ;;  %4151 = vmatpush3.bf16.msra.mxu1 %v7890_v59  ;;  %v7936_v49 = vpack.c.bf16 %v7014_v61, %v7014_v61  ;;  %v7937_v59 = vld [vmem:[#allocation194_spill] sm:$0xff]  ;;  %v7942_v61 = vld [vmem:[#allocation211_spill] sm:$0xff] }
 0x4a7   :  { %4130 = vmatprep.subr.bf16.mxu0 %v7891_v25  ;;  %4152 = vmatprep.subr.bf16.mxu1 %v7892_v5  ;;  %v7938_v25 = vld [vmem:[#allocation210_spill] sm:$0xff]  ;;  %v7939_v5 = vld [vmem:[#allocation203_spill] sm:$0xff] }
 0x4aa   :  { %4131 = vmatpush3.bf16.msra.mxu0 %v7893_v1  ;;  %4153 = vmatpush3.bf16.msra.mxu1 %v7894_v17  ;;  %v7940_v1 = vld [vmem:[#allocation219_spill] sm:$0xff]  ;;  %v7943_v17 = vld [vmem:[#allocation204_spill] sm:$0xff] }
 0x4ab   :  { %4132 = vmatprep.subr.bf16.mxu0 %v7895_v10  ;;  %4154 = vmatprep.subr.bf16.mxu1 %v7896_v26  ;;  %v7944_v10 = vld [vmem:[#allocation220_spill] sm:$0xff] }
 0x4ac   :  { %v7945_v26 = vld [vmem:[#allocation196_spill] sm:$0xff] }
 0x4ae   :  { %4133 = vmatpush3.bf16.msra.mxu0 %v7897_v3  ;;  %4155 = vmatpush3.bf16.msra.mxu1 %v7898_v34  ;;  %v7946_v3 = vld [vmem:[#allocation212_spill] sm:$0xff]  ;;  %v7947_v34 = vld [vmem:[#allocation205_spill] sm:$0xff] }
 0x4af   :  { %4162 = vmatprep.subr.bf16.mxu0 %v7899_v37  ;;  %4184 = vmatprep.subr.bf16.mxu1 %v7900_v51  ;;  %v7952_v37 = vld [vmem:[#allocation222_spill] sm:$0xff] }
 0x4b0   :  { %v7953_v51 = vld [vmem:[#allocation198_spill] sm:$0xff] }
 0x4b1   :  { %3363 = vmatmul.mubr.bf16.vlgmr.msra.gmra.mrb[48].mxu0 %v2728_v33  ;;  %3403 = vmatmul.mubr.bf16.vlgmr.msra.gmra.mrb[48].mxu1 %v7901_v6  ;;  %v7909_v33 = vld [vmem:[#allocation172_spill] sm:$0xff]  ;;  %v7954_v6 = vld [vmem:[#allocation214_spill] sm:$0xff] }
 0x4b2   :  { %4163 = vmatpush3.bf16.msra.mxu0 %v7902_v55  ;;  %4185 = vmatpush3.bf16.msra.mxu1 %v7903_v41  ;;  %v7955_v55 = vld [vmem:[#allocation207_spill] sm:$0xff] }
 0x4b3   :  { %4164 = vmatprep.subr.bf16.mxu0 %v7904_v0  ;;  %4186 = vmatprep.subr.bf16.mxu1 %v7905_v8  ;;  %v7956_v41 = vld [vmem:[#allocation223_spill] sm:$0xff] }
 0x4b4   :  { %3442 = vmatprep.mubr.bf16.mxu0 %v7906_v9  ;;  %3482 = vmatprep.mubr.bf16.mxu1 %v2735_v53  ;;  %v7917_v53 = vld [vmem:[#allocation174_spill] sm:$0xff]  ;;  %v7957_v0 = vld [vmem:[#allocation199_spill] sm:$0xff]  ;;  %v7959_v9 = vld [vmem:[#allocation208_spill] sm:$0xff] }
 0x4b5   :  { %v7958_v8 = vld [vmem:[#allocation215_spill] sm:$0xff] }
 0x4b6   :  { %4165 = vmatpush3.bf16.msra.mxu0 %v7907_v42  ;;  %4187 = vmatpush3.bf16.msra.mxu1 %v7908_v19  ;;  %v7960_v42 = vld [vmem:[#allocation224_spill] sm:$0xff] }
 0x4b7   :  { %4166 = vmatprep.subr.bf16.mxu0 %v7909_v33  ;;  %4188 = vmatprep.subr.bf16.mxu1 %v7910_v27  ;;  %v7961_v19 = vld [vmem:[#allocation200_spill] sm:$0xff]  ;;  %v7963_v27 = vld [vmem:[#allocation209_spill] sm:$0xff] }
 0x4b8   :  { %v7962_v33 = vld [vmem:[#allocation216_spill] sm:$0xff] }
 0x4ba   :  { %4167 = vmatpush3.bf16.msra.mxu0 %v7911_v45  ;;  %4189 = vmatpush3.bf16.msra.mxu1 %v7912_v13  ;;  %v7964_v45 = vld [vmem:[#allocation225_spill] sm:$0xff] }
 0x4bb   :  { %4168 = vmatprep.subr.bf16.mxu0 %v7913_v14  ;;  %4190 = vmatprep.subr.bf16.mxu1 %v7914_v20  ;;  %v7965_v13 = vld [vmem:[#allocation201_spill] sm:$0xff]  ;;  %v7967_v20 = vld [vmem:[#allocation234_spill] sm:$0xff] }
 0x4bc   :  { %v7966_v14 = vld [vmem:[#allocation217_spill] sm:$0xff] }
 0x4be   :  { %4169 = vmatpush3.bf16.msra.mxu0 %v7915_v43  ;;  %4191 = vmatpush3.bf16.msra.mxu1 %v7916_v11  ;;  %v7968_v43 = vld [vmem:[#allocation250_spill] sm:$0xff]  ;;  %v7969_v11 = vpack.c.bf16 %v7046_v32, %v7046_v32  ;;  %v7975_v32 = vld [vmem:[#allocation243_spill] sm:$0xff] }
 0x4bf   :  { %4170 = vmatprep.subr.bf16.mxu0 %v7917_v53  ;;  %4192 = vmatprep.subr.bf16.mxu1 %v7918_v31  ;;  %v7970_v53 = vld [vmem:[#allocation226_spill] sm:$0xff] }
 0x4c0   :  { %v7971_v31 = vld [vmem:[#allocation242_spill] sm:$0xff] }
 0x4c2   :  { %4171 = vmatpush3.bf16.msra.mxu0 %v7919_v22  ;;  %4193 = vmatpush3.bf16.msra.mxu1 %v7920_v7  ;;  %v7972_v22 = vld [vmem:[#allocation235_spill] sm:$0xff] }
 0x4c3   :  { %4172 = vmatprep.subr.bf16.mxu0 %v7921_v57  ;;  %4194 = vmatprep.subr.bf16.mxu1 %v7922_v23  ;;  %v7973_v7 = vld [vmem:[#allocation251_spill] sm:$0xff]  ;;  %v7977_v57 = vld [vmem:[#allocation252_spill] sm:$0xff] }
 0x4c4   :  { %v7978_v23 = vld [vmem:[#allocation228_spill] sm:$0xff] }
 0x4c6   :  { %4173 = vmatpush3.bf16.msra.mxu0 %v7923_v4  ;;  %4195 = vmatpush3.bf16.msra.mxu1 %v7924_v28  ;;  %v7979_v4 = vld [vmem:[#allocation244_spill] sm:$0xff]  ;;  %v7980_v28 = vld [vmem:[#allocation237_spill] sm:$0xff] }
 0x4c7   :  { %4174 = vmatprep.subr.bf16.mxu0 %v7925_v16  ;;  %4196 = vmatprep.subr.bf16.mxu1 %v7926_v24  ;;  %v7985_v16 = vld [vmem:[#allocation254_spill] sm:$0xff] }
 0x4c8   :  { %v7986_v24 = vld [vmem:[#allocation230_spill] sm:$0xff] }
 0x4ca   :  { %4175 = vmatpush3.bf16.msra.mxu0 %v7927_v2  ;;  %4197 = vmatpush3.bf16.msra.mxu1 %v7928_v48  ;;  %v7987_v2 = vld [vmem:[#allocation246_spill] sm:$0xff]  ;;  %v7988_v48 = vld [vmem:[#allocation239_spill] sm:$0xff] }
 0x4cb   :  { %4176 = vmatprep.subr.bf16.mxu0 %v7929_v40  ;;  %4198 = vmatprep.subr.bf16.mxu1 %v7930_v36  ;;  %v7989_v40 = vld [vmem:[#allocation255_spill] sm:$0xff] }
 0x4ce   :  { %4177 = vmatpush3.bf16.msra.mxu0 %v7931_v21  ;;  %4199 = vmatpush3.bf16.msra.mxu1 %v7932_v30 }
 0x4cf   :  { %4206 = vmatprep.subr.bf16.mxu0 %v7933_v18  ;;  %4228 = vmatprep.subr.bf16.mxu1 %v7934_v63 }
 0x4d1   :  { %3443 = vmatmul.mubr.bf16.vlgmr.msra.gmra.mrb[52].mxu0 %v7935_v58  ;;  %3483 = vmatmul.mubr.bf16.vlgmr.msra.gmra.mrb[52].mxu1 %v7936_v49 }
 0x4d2   :  { %4207 = vmatpush3.bf16.msra.mxu0 %v7937_v59  ;;  %4229 = vmatpush3.bf16.msra.mxu1 %v7938_v25  ;;  %v7990_v25 = vld [vmem:[#allocation231_spill] sm:$0xff] }
 0x4d3   :  { %4208 = vmatprep.subr.bf16.mxu0 %v7939_v5  ;;  %4230 = vmatprep.subr.bf16.mxu1 %v7940_v1  ;;  %v7991_v5 = vld [vmem:[#allocation247_spill] sm:$0xff] }
 0x4d4   :  { %3522 = vmatprep.mubr.bf16.mxu0 %v2737_v46  ;;  %3562 = vmatprep.mubr.bf16.mxu1 %v2739_v29  ;;  %v7949_v46 = vld [vmem:[#allocation197_spill] sm:$0xff]  ;;  %v7951_v29 = vld [vmem:[#allocation206_spill] sm:$0xff] }
 0x4d6   :  { %4209 = vmatpush3.bf16.msra.mxu0 %v7941_v44  ;;  %4231 = vmatpush3.bf16.msra.mxu1 %v7942_v61  ;;  %v7992_v61 = vld [vmem:[#allocation240_spill] sm:$0xff] }
 0x4d7   :  { %4210 = vmatprep.subr.bf16.mxu0 %v7943_v17  ;;  %4232 = vmatprep.subr.bf16.mxu1 %v7944_v10  ;;  %v7993_v17 = vld [vmem:[#allocation256_spill] sm:$0xff]  ;;  %v7994_v10 = vld [vmem:[#allocation258_spill] sm:$0xff] }
 0x4da   :  { %4211 = vmatpush3.bf16.msra.mxu0 %v7945_v26  ;;  %4233 = vmatpush3.bf16.msra.mxu1 %v7946_v3 }
 0x4db   :  { %4212 = vmatprep.subr.bf16.mxu0 %v7947_v34  ;;  %4234 = vmatprep.subr.bf16.mxu1 %v7948_v56  ;;  %v7995_v34 = vld [vmem:[#allocation232_spill] sm:$0xff] }
 0x4dc   :  { %v7996_v56 = vld [vmem:[#allocation248_spill] sm:$0xff] }
 0x4de   :  { %4213 = vmatpush3.bf16.msra.mxu0 %v7949_v46  ;;  %4235 = vmatpush3.bf16.msra.mxu1 %v7950_v12  ;;  %v7997_v46 = vld [vmem:[#allocation241_spill] sm:$0xff] }
 0x4df   :  { %4214 = vmatprep.subr.bf16.mxu0 %v7951_v29  ;;  %4236 = vmatprep.subr.bf16.mxu1 %v7952_v37  ;;  %v7998_v12 = vld [vmem:[#allocation257_spill] sm:$0xff] }
 0x4e0   :  { %v7999_v29 = vld [vmem:[#allocation233_spill] sm:$0xff] }
 0x4e1   :  { %v8000_v37 = vld [vmem:[#allocation249_spill] sm:$0xff] }
 0x4e2   :  { %4215 = vmatpush3.bf16.msra.mxu0 %v7953_v51  ;;  %4237 = vmatpush3.bf16.msra.mxu1 %v7954_v6  ;;  %v8001_v51 = vmov 0.0  }
 0x4e3   :  { %4216 = vmatprep.subr.bf16.mxu0 %v7955_v55  ;;  %4238 = vmatprep.subr.bf16.mxu1 %v7956_v41 }
 0x4e6   :  { %4217 = vmatpush3.bf16.msra.mxu0 %v7957_v0  ;;  %4239 = vmatpush3.bf16.msra.mxu1 %v7958_v8 }
 0x4e7   :  { %4218 = vmatprep.subr.bf16.mxu0 %v7959_v9  ;;  %4240 = vmatprep.subr.bf16.mxu1 %v7960_v42 }
 0x4ea   :  { %4219 = vmatpush3.bf16.msra.mxu0 %v7961_v19  ;;  %4241 = vmatpush3.bf16.msra.mxu1 %v7962_v33 }
 0x4eb   :  { %4220 = vmatprep.subr.bf16.mxu0 %v7963_v27  ;;  %4242 = vmatprep.subr.bf16.mxu1 %v7964_v45 }
 0x4ee   :  { %4221 = vmatpush3.bf16.msra.mxu0 %v7965_v13  ;;  %4243 = vmatpush3.bf16.msra.mxu1 %v7966_v14 }
 0x4ef   :  { %4250 = vmatprep.subr.bf16.mxu0 %v7967_v20  ;;  %4272 = vmatprep.subr.bf16.mxu1 %v7968_v43 }
 0x4f1   :  { %3523 = vmatmul.mubr.bf16.vlgmr.msra.gmra.mrb[56].mxu0 %v2736_v47  ;;  %3563 = vmatmul.mubr.bf16.vlgmr.msra.gmra.mrb[56].mxu1 %v7969_v11  ;;  %v7976_v47 = vld [vmem:[#allocation236_spill] sm:$0xff] }
 0x4f2   :  { %4251 = vmatpush3.bf16.msra.mxu0 %v7970_v53  ;;  %4273 = vmatpush3.bf16.msra.mxu1 %v7971_v31 }
 0x4f3   :  { %4252 = vmatprep.subr.bf16.mxu0 %v7972_v22  ;;  %4274 = vmatprep.subr.bf16.mxu1 %v7973_v7 }
 0x4f4   :  { %3602 = vmatprep.mubr.bf16.mxu0 %v2741_v38  ;;  %3642 = vmatprep.mubr.bf16.mxu1 %v2743_v52  ;;  %v7982_v38 = vld [vmem:[#allocation229_spill] sm:$0xff]  ;;  %v7984_v52 = vld [vmem:[#allocation238_spill] sm:$0xff] }
 0x4f6   :  { %4253 = vmatpush3.bf16.msra.mxu0 %v7974_v39  ;;  %4275 = vmatpush3.bf16.msra.mxu1 %v7975_v32  ;;  %v4412_v39 = vld [vmem:[%s7489_s4] sm:$0xff]   ;;  %v4413_v32 = vld [vmem:[%s7489_s4 + $0x8] sm:$0xff]  }
 0x4f7   :  { %4254 = vmatprep.subr.bf16.mxu0 %v7976_v47  ;;  %4276 = vmatprep.subr.bf16.mxu1 %v7977_v57  ;;  %v4414_v47 = vld [vmem:[%s7489_s4 + $0x10] sm:$0xff]   ;;  %v4415_v57 = vld [vmem:[%s7489_s4 + $0x18] sm:$0xff]  }
 0x4fa   :  { %4255 = vmatpush3.bf16.msra.mxu0 %v7978_v23  ;;  %4277 = vmatpush3.bf16.msra.mxu1 %v7979_v4  ;;  %v4416_v23 = vld [vmem:[%s7489_s4 + $0x20] sm:$0xff]   ;;  %v4417_v4 = vld [vmem:[%s7489_s4 + $0x28] sm:$0xff]  }
 0x4fb   :  { %4256 = vmatprep.subr.bf16.mxu0 %v7980_v28  ;;  %4278 = vmatprep.subr.bf16.mxu1 %v7981_v60 }
 0x4fe   :  { %4257 = vmatpush3.bf16.msra.mxu0 %v7982_v38  ;;  %4279 = vmatpush3.bf16.msra.mxu1 %v7983_v62 }
 0x4ff   :  { %4258 = vmatprep.subr.bf16.mxu0 %v7984_v52  ;;  %4280 = vmatprep.subr.bf16.mxu1 %v7985_v16 }
 0x502   :  { %4259 = vmatpush3.bf16.msra.mxu0 %v7986_v24  ;;  %4281 = vmatpush3.bf16.msra.mxu1 %v7987_v2 }
 0x503   :  { %4260 = vmatprep.subr.bf16.mxu0 %v7988_v48  ;;  %4282 = vmatprep.subr.bf16.mxu1 %v7989_v40 }
 0x504   :  { %v3958_v36 = vpop.f32.mrb[32].mxu0  ;;  %v3980_v21 = vpop.f32.mrb[32].mxu1 }
 0x505   :  { %v3959_v30 = vpop.f32.mrb[33].mxu0  ;;  %v3981_v18 = vpop.f32.mrb[33].mxu1 }
 0x506   :  { %v3960_v63 = vadd.f32 %v3959_v30, %v3958_v36  ;;  %v3982_v58 = vadd.f32 %v3981_v18, %v3980_v21  ;;  %v3961_v49 = vpop.f32.mrb[34].mxu0  ;;  %v3983_v59 = vpop.f32.mrb[34].mxu1  ;;  %4261 = vmatpush3.bf16.msra.mxu0 %v7990_v25  ;;  %4283 = vmatpush3.bf16.msra.mxu1 %v7991_v5  ;;  %v4418_v36 = vld [vmem:[%s7489_s4 + $0x30] sm:$0xff]   ;;  %v4419_v18 = vld [vmem:[%s7489_s4 + $0x38] sm:$0xff]   ;;  %s4452_s4 = smov [#allocation7]  }
 0x507   :  { %v3962_v1 = vpop.f32.mrb[35].mxu0  ;;  %v3984_v44 = vpop.f32.mrb[35].mxu1  ;;  %4262 = vmatprep.subr.bf16.mxu0 %v7992_v61  ;;  %4284 = vmatprep.subr.bf16.mxu1 %v7993_v17  ;;  %s3769_s10 = sshll.u32 %s4452_s4, 4  ;;  %s3770_s10 = int_to_ptr.vmem [resolvable:$true] %s3769_s10 }
 0x508   :  { %v3045_v26 = vadd.f32 %v3960_v63, %v7994_v10  ;;  %s4420_s11 = scalar_lea.vmem %s3770_s10, 32  ;;  %p4425_p1 = scmp.lt.s32.totalorder %s3770_s10, %s3770_s10 }
 0x509   :  { %p4421_p0 = scmp.ne.s32.totalorder %s3770_s10, %s4420_s11  ;;  %p4426_p2 = scmp.lt.s32.totalorder %s4420_s11, %s4420_s11 }
 0x50a   :  { %v3085_v3 = vadd.f32 %v3982_v58, %v3045_v26  ;;  %4263 = vmatpush3.bf16.msra.mxu0 %v7995_v34  ;;  %4285 = vmatpush3.bf16.msra.mxu1 %v7996_v56 }
 0x50b   :  { %4264 = vmatprep.subr.bf16.mxu0 %v7997_v46  ;;  %4286 = vmatprep.subr.bf16.mxu1 %v7998_v12  ;;  %p4427_p3 = por %p4426_p2, %p4425_p1 }
 0x50d   :  { %p4428_p4 = pnand %p4427_p3, %p4421_p0 }
 0x50e   :  { %4265 = vmatpush3.bf16.msra.mxu0 %v7999_v29  ;;  %4287 = vmatpush3.bf16.msra.mxu1 %v8000_v37 }
 0x50f   :  { %4345 = vmatprep.subr.bf16.mxu0 %v8001_v51 }
 0x511   :  { %3603 = vmatmul.mubr.bf16.vlgmr.msra.gmra.mrb[60].mxu0 %v2740_v35  ;;  %3643 = vmatmul.mubr.bf16.vlgmr.msra.gmra.mrb[60].mxu1 %v2742_v54 }
 0x512   :  { %4346 = vmatpush3.bf16.msra.mxu0 %v4412_v39  ;;  %4361 = vmatprep.mubr.msk.bf16.mxu0 %vm4451_vm14, %v8001_v51 }
 0x513   :  { %4347 = vmatprep.subr.bf16.mxu0 %v8001_v51 }
 0x516   :  { %4348 = vmatpush3.bf16.msra.mxu0 %v4413_v32 }
 0x517   :  { %4349 = vmatprep.subr.bf16.mxu0 %v8001_v51 }
 0x51a   :  { %4350 = vmatpush3.bf16.msra.mxu0 %v4414_v47 }
 0x51b   :  { %4351 = vmatprep.subr.bf16.mxu0 %v8001_v51 }
 0x51e   :  { %4352 = vmatpush3.bf16.msra.mxu0 %v4415_v57 }
 0x51f   :  { %4353 = vmatprep.subr.bf16.mxu0 %v8001_v51 }
 0x522   :  { %4354 = vmatpush3.bf16.msra.mxu0 %v4416_v23 }
 0x523   :  { %4355 = vmatprep.subr.bf16.mxu0 %v8001_v51 }
 0x524   :  { %v4002_v6 = vpop.f32.mrb[36].mxu0  ;;  %v4024_v55 = vpop.f32.mrb[36].mxu1 }
 0x525   :  { %v4003_v41 = vpop.f32.mrb[37].mxu0  ;;  %v4025_v0 = vpop.f32.mrb[37].mxu1 }
 0x526   :  { %v4004_v8 = vadd.f32 %v4003_v41, %v4002_v6  ;;  %v4026_v9 = vadd.f32 %v4025_v0, %v4024_v55  ;;  %v4005_v42 = vpop.f32.mrb[38].mxu0  ;;  %v4027_v19 = vpop.f32.mrb[38].mxu1  ;;  %4356 = vmatpush3.bf16.msra.mxu0 %v4417_v4 }
 0x527   :  { %v4006_v33 = vpop.f32.mrb[39].mxu0  ;;  %v4028_v27 = vpop.f32.mrb[39].mxu1  ;;  %4357 = vmatprep.subr.bf16.mxu0 %v8001_v51 }
 0x528   :  { %v3125_v45 = vadd.f32 %v4004_v8, %v3085_v3 }
 0x52a   :  { %v3165_v13 = vadd.f32 %v4026_v9, %v3125_v45  ;;  %4358 = vmatpush3.bf16.msra.mxu0 %v4418_v36 }
 0x52b   :  { %4359 = vmatprep.subr.bf16.mxu0 %v8001_v51 }
 0x52e   :  { %4360 = vmatpush3.bf16.msra.mxu0 %v4419_v18 }
 0x544   :  { %v4046_v14 = vpop.f32.mrb[40].mxu0  ;;  %v4068_v20 = vpop.f32.mrb[40].mxu1 }
 0x545   :  { %v4047_v50 = vpop.f32.mrb[41].mxu0  ;;  %v4069_v35 = vpop.f32.mrb[41].mxu1 }
 0x546   :  { %v4048_v43 = vadd.f32 %v4047_v50, %v4046_v14  ;;  %v4070_v11 = vadd.f32 %v4069_v35, %v4068_v20  ;;  %v4049_v15 = vpop.f32.mrb[42].mxu0  ;;  %v4071_v54 = vpop.f32.mrb[42].mxu1 }
 0x547   :  { %v4050_v53 = vpop.f32.mrb[43].mxu0  ;;  %v4072_v31 = vpop.f32.mrb[43].mxu1 }
 0x548   :  { %v3205_v22 = vadd.f32 %v4048_v43, %v3165_v13 }
 0x54a   :  { %v3245_v7 = vadd.f32 %v4070_v11, %v3205_v22 }
 0x564   :  { %v4090_v28 = vpop.f32.mrb[44].mxu0  ;;  %v4112_v60 = vpop.f32.mrb[44].mxu1 }
 0x565   :  { %v4091_v38 = vpop.f32.mrb[45].mxu0  ;;  %v4113_v62 = vpop.f32.mrb[45].mxu1 }
 0x566   :  { %v4092_v52 = vadd.f32 %v4091_v38, %v4090_v28  ;;  %v4114_v16 = vadd.f32 %v4113_v62, %v4112_v60  ;;  %v4093_v24 = vpop.f32.mrb[46].mxu0  ;;  %v4115_v2 = vpop.f32.mrb[46].mxu1  ;;  %v8002_v60 = vld [vmem:[#allocation259_spill] sm:$0xff] }
 0x567   :  { %v4094_v48 = vpop.f32.mrb[47].mxu0  ;;  %v4116_v40 = vpop.f32.mrb[47].mxu1 }
 0x568   :  { %v3285_v21 = vadd.f32 %v4092_v52, %v3245_v7 }
 0x56a   :  { %v3325_v30 = vadd.f32 %v4114_v16, %v3285_v21 }
 0x584   :  { %v4134_v63 = vpop.f32.mrb[48].mxu0  ;;  %v4156_v58 = vpop.f32.mrb[48].mxu1 }
 0x585   :  { %v4135_v49 = vpop.f32.mrb[49].mxu0  ;;  %v4157_v59 = vpop.f32.mrb[49].mxu1 }
 0x586   :  { %v4136_v25 = vadd.f32 %v4135_v49, %v4134_v63  ;;  %v4158_v5 = vadd.f32 %v4157_v59, %v4156_v58  ;;  %v4137_v1 = vpop.f32.mrb[50].mxu0  ;;  %v4159_v44 = vpop.f32.mrb[50].mxu1 }
 0x587   :  { %v4138_v61 = vpop.f32.mrb[51].mxu0  ;;  %v4160_v17 = vpop.f32.mrb[51].mxu1 }
 0x588   :  { %v3365_v10 = vadd.f32 %v4136_v25, %v3325_v30 }
 0x58a   :  { %v3405_v26 = vadd.f32 %v4158_v5, %v3365_v10 }
 0x5a4   :  { %v4178_v3 = vpop.f32.mrb[52].mxu0  ;;  %v4200_v34 = vpop.f32.mrb[52].mxu1 }
 0x5a5   :  { %v4179_v56 = vpop.f32.mrb[53].mxu0  ;;  %v4201_v46 = vpop.f32.mrb[53].mxu1 }
 0x5a6   :  { %v4180_v12 = vadd.f32 %v4179_v56, %v4178_v3  ;;  %v4202_v29 = vadd.f32 %v4201_v46, %v4200_v34  ;;  %v4181_v37 = vpop.f32.mrb[54].mxu0  ;;  %v4203_v51 = vpop.f32.mrb[54].mxu1 }
 0x5a7   :  { %v4182_v6 = vpop.f32.mrb[55].mxu0  ;;  %v4204_v55 = vpop.f32.mrb[55].mxu1 }
 0x5a8   :  { %v3445_v41 = vadd.f32 %v4180_v12, %v3405_v26 }
 0x5aa   :  { %v3485_v0 = vadd.f32 %v4202_v29, %v3445_v41 }
 0x5c4   :  { %v4222_v8 = vpop.f32.mrb[56].mxu0  ;;  %v4244_v9 = vpop.f32.mrb[56].mxu1 }
 0x5c5   :  { %v4223_v42 = vpop.f32.mrb[57].mxu0  ;;  %v4245_v19 = vpop.f32.mrb[57].mxu1 }
 0x5c6   :  { %v4224_v33 = vadd.f32 %v4223_v42, %v4222_v8  ;;  %v4246_v27 = vadd.f32 %v4245_v19, %v4244_v9  ;;  %v4225_v45 = vpop.f32.mrb[58].mxu0  ;;  %v4247_v13 = vpop.f32.mrb[58].mxu1 }
 0x5c7   :  { %v4226_v14 = vpop.f32.mrb[59].mxu0  ;;  %v4248_v20 = vpop.f32.mrb[59].mxu1 }
 0x5c8   :  { %v3525_v50 = vadd.f32 %v4224_v33, %v3485_v0 }
 0x5ca   :  { %v3565_v35 = vadd.f32 %v4246_v27, %v3525_v50 }
 0x5e4   :  { %v4266_v43 = vpop.f32.mrb[60].mxu0  ;;  %v4288_v11 = vpop.f32.mrb[60].mxu1 }
 0x5e5   :  { %v4267_v15 = vpop.f32.mrb[61].mxu0  ;;  %v4289_v54 = vpop.f32.mrb[61].mxu1 }
 0x5e6   :  { %v4268_v53 = vadd.f32 %v4267_v15, %v4266_v43  ;;  %v4290_v31 = vadd.f32 %v4289_v54, %v4288_v11  ;;  %v4269_v22 = vpop.f32.mrb[62].mxu0  ;;  %v4291_v7 = vpop.f32.mrb[62].mxu1 }
 0x5e7   :  { %v4270_v39 = vpop.f32.mrb[63].mxu0  ;;  %v4292_v32 = vpop.f32.mrb[63].mxu1 }
 0x5e8   :  { %v3605_v47 = vadd.f32 %v4268_v53, %v3565_v35 }
 0x5ea   :  { %v3645_v57 = vadd.f32 %v4290_v31, %v3605_v47 }
 0x5ec   :  { %v3650_v23 = vmax.f32 %v3645_v57, 0.0 }
 0x5ee   :  { %v3651_v4 = vpack.c.bf16 %v3650_v23, %v3650_v23 }
 0x5f0   :  { %4362 = vmatmul.mubr.bf16.vlgmr.msra.gmra.mrb[64].mxu0 %v3651_v4 }
 0x6c3   :  { %v3756_v28 = vpop.f32.mrb[64].mxu0 }
 0x6c4   :  { %v3757_v38 = vadd.f32 %v8002_v60, %v3756_v28  ;;  %v4363_v62 = vpop.f32.mrb[65].mxu0 }
 0x6c5   :  { %v3759_v52 = vpop.f32.mrb[66].mxu0 }
 0x6c6   :  { %3762 = vst [vmem:[#allocation7] sm:$0x3] %v3757_v38  ;;  %v4364_v16 = vpop.f32.mrb[67].mxu0 }
 0x6c7   :  { %4431 = shalt.err (!%p4428_p4)
}
 0x6c8   :  { %s4432_s13 = scalar_lea.hbm %s7491_s6, 32 }
 0x6c9   :  { %p4433_p5 = scmp.ne.s32.totalorder %s7491_s6, %s4432_s13  ;;  %p4436_p6 = scmp.lt.u32.totalorder %s4432_s13, %s7491_s6 }
 0x6cb   :  { %p4438_p7 = pnand %p4436_p6, %p4433_p5 }
 0x6cd   :  { %4441 = shalt.err (!%p4438_p7)
}
 0x6ce   :  { %3772 = dma.vmem_to_hbm [thread:$0]  %s3770_s10, 32, %s7491_s6, [#allocation8]  }
 0x6cf   :  { %4444 = dma.done.wait [#allocation8], 32  }
 0x6d0   :  { %4445 = vsyncadd [#allocation8], 4294967264 }
 0x6d1   :  { %3776 = vsyncpa [#allocation8], 1 }
 0x6d2   :  { %3777 = vsyncmov [#allocation3] }
 0x6d5   :  { %s3778_s2 = vpop.sfrf %3777 }
 0x6d6   :  { %p3856_p8 = scmp.ne.s32.totalorder %s3778_s2, 0 }
 0x6d8   :  { %3782 = shalt.err (%p3856_p8)  }

</bundles_post_ra>
